<compile_context>
chip_gen: v7x
topology: tpu7x:2x2x1
jax: 0.10.0
libtpu: 0.0.40
codegen_flags: <defaults>
</compile_context>

<pallas_src>
import functools

import numpy as np

import jax
import jax.numpy as jnp
from jax import lax
from jax.experimental import pallas as pl
from jax.experimental.pallas import tpu as pltpu

BN_EPS = 1e-5
_VMEM = pl.BlockSpec(memory_space=pltpu.MemorySpace.VMEM)


# ----------------------------------------------------------------------------
# In-kernel helpers
# ----------------------------------------------------------------------------
def _bn_relu(y, gamma, beta):
    """Train-mode BatchNorm (per-channel batch stats) + ReLU, single pass.

    y: (M, C) f32; gamma/beta: (1, C) f32.
    Stats via sum / sum-of-squares (one data pass), folded into one FMA.
    """
    inv_m = 1.0 / y.shape[0]
    mean = jnp.sum(y, axis=0, keepdims=True) * inv_m
    ex2 = jnp.sum(y * y, axis=0, keepdims=True) * inv_m
    var = ex2 - mean * mean                              # biased variance
    scale = gamma * lax.rsqrt(var + BN_EPS)
    shift = beta - mean * scale
    return jnp.maximum(y * scale + shift, 0.0)


def residual_bottleneck_kernel(x_ref, mask_ref, w1_ref, w2_ref, w3_ref,
                               g1_ref, b1_ref, g2_ref, b2_ref,
                               g3_ref, b3_ref, o_ref, *, img_w):
    """Fused ResidualBlock: o = x + relu(bn3(conv3(relu(bn2(conv2(
                                     relu(bn1(conv1(x)))))))))

    x_ref:    (M, C)          f32   flattened NHWC input, M = N*H*W
    mask_ref: (9, M, 1)       f32   per-tap row-validity masks (3x3, pad=1)
    w1_ref:   (C, Cmid)       bf16  1x1 conv weight
    w2_ref:   (9, Cmid, Cmid) bf16  3x3 conv weight, tap-major (KH*KW, Cin, Cout)
    w3_ref:   (Cmid, C)       bf16  1x1 conv weight
    g*/b*:    (1, Cmid|C)     f32   BatchNorm weight / bias
    o_ref:    (M, C)          f32
    """
    m = x_ref.shape[0]

    # ---- ConvBlock 1: 1x1 conv + BN + ReLU -------------------------------
    y1 = jnp.dot(x_ref[...].astype(jnp.bfloat16), w1_ref[...],
                 preferred_element_type=jnp.float32)
    h1 = _bn_relu(y1, g1_ref[...], b1_ref[...])           # (M, Cmid) f32

    # ---- ConvBlock 2: 3x3 conv (pad=1) + BN + ReLU -----------------------
    # Tap (di, dj) reads the row shifted by delta = (di-1)*W + (dj-1): an XLU
    # sublane rotation plus a 0/1 validity mask implementing the zero padding
    # (valid rows never wrap across image boundaries, so the rotation is exact).
    acc = None
    for t in range(9):
        di, dj = divmod(t, 3)
        delta = (di - 1) * img_w + (dj - 1)
        rolled = h1 if delta == 0 else pltpu.roll(h1, shift=(-delta) % m, axis=0)
        shifted = (rolled * mask_ref[t]).astype(jnp.bfloat16)
        term = jnp.dot(shifted, w2_ref[t], preferred_element_type=jnp.float32)
        acc = term if acc is None else acc + term
    h2 = _bn_relu(acc, g2_ref[...], b2_ref[...])          # (M, Cmid) f32

    # ---- ConvBlock 3: 1x1 conv + BN + ReLU -------------------------------
    y3 = jnp.dot(h2.astype(jnp.bfloat16), w3_ref[...],
                 preferred_element_type=jnp.float32)
    z = _bn_relu(y3, g3_ref[...], b3_ref[...])            # (M, C) f32

    # ---- Residual add: re-read the untouched f32 input (short live range) -
    o_ref[...] = x_ref[...] + z


# ----------------------------------------------------------------------------
# Host-side glue
# ----------------------------------------------------------------------------
def _tap_masks(n, h, w):
    """(9, M, 1) f32 row-validity masks for a 3x3 conv, stride 1, pad 1."""
    ii, jj = np.meshgrid(np.arange(h), np.arange(w), indexing="ij")
    i = np.tile(ii.reshape(-1), n)        # spatial row of each flattened row
    j = np.tile(jj.reshape(-1), n)
    masks = np.zeros((9, n * h * w, 1), np.float32)
    for t in range(9):
        oi, oj = t // 3 - 1, t % 3 - 1
        valid = (i + oi >= 0) & (i + oi < h) & (j + oj >= 0) & (j + oj < w)
        masks[t, :, 0] = valid.astype(np.float32)
    return masks


def residual_block_forward(params, x_nchw):
    """ResidualBlock.forward: x + module(x).  x_nchw: (N, C, H, W) f32."""
    n, c, h, w = x_nchw.shape
    m = n * h * w
    cmid = params["w1"].shape[-1]
    # NCHW -> NHWC -> (M, C): channels on the 128-lane axis (layout glue only).
    x_rows = jnp.transpose(x_nchw, (0, 2, 3, 1)).reshape(m, c).astype(jnp.float32)
    masks = jnp.asarray(_tap_masks(n, h, w))              # (9, M, 1), tiny

    flops = 2 * m * c * cmid + 9 * 2 * m * cmid * cmid + 2 * m * cmid * c
    bytes_accessed = (2 * 4 * m * c                               # x in + out
                      + 4 * 9 * m                                 # masks
                      + 2 * (c * cmid + 9 * cmid * cmid + cmid * c)  # bf16 W
                      + 4 * 2 * (2 * cmid + c))                   # BN params

    out = pl.pallas_call(
        functools.partial(residual_bottleneck_kernel, img_w=w),
        out_shape=jax.ShapeDtypeStruct((m, c), jnp.float32),
        in_specs=[_VMEM] * 11,
        out_specs=_VMEM,
        cost_estimate=pl.CostEstimate(flops=flops,
                                      transcendentals=2 * cmid + c,
                                      bytes_accessed=bytes_accessed),
    )(x_rows, masks,
      params["w1"], params["w2"], params["w3"],
      params["g1"], params["b1"], params["g2"], params["b2"],
      params["g3"], params["b3"])

    return jnp.transpose(out.reshape(n, h, w, c), (0, 3, 1, 2))


# ----------------------------------------------------------------------------
# Parameters (deterministic, synthetic).
# NOTE: conv weights use (KH, KW, Cin, Cout) layout; real PyTorch weights
# (Cout, Cin, KH, KW) would need a transpose before use.
# ----------------------------------------------------------------------------
def init_params(key, c, cmid):
    ks = jax.random.split(key, 9)
    w1 = 0.05 * jax.random.normal(ks[0], (c, cmid), jnp.float32)
    w2 = 0.05 * jax.random.normal(ks[1], (3, 3, cmid, cmid), jnp.float32)
    w3 = 0.05 * jax.random.normal(ks[2], (cmid, c), jnp.float32)
    bn = lambda kg, kb, ch: (
        1.0 + 0.1 * jax.random.normal(kg, (1, ch), jnp.float32),
        0.1 * jax.random.normal(kb, (1, ch), jnp.float32))
    g1, b1 = bn(ks[3], ks[4], cmid)
    g2, b2 = bn(ks[5], ks[6], cmid)
    g3, b3 = bn(ks[7], ks[8], c)
    return {
        "w1": w1.astype(jnp.bfloat16),
        "w2": w2.reshape(9, cmid, cmid).astype(jnp.bfloat16),  # tap-major
        "w3": w3.astype(jnp.bfloat16),
        "g1": g1, "b1": b1, "g2": g2, "b2": b2, "g3": g3, "b3": b3,
    }


# ----------------------------------------------------------------------------
# Pure-JAX reference (independent im2col via padding; same bf16 matmul
# operands / f32 accumulation as the kernel, classic two-pass BN stats)
# ----------------------------------------------------------------------------
def _bn_relu_ref(y, gamma, beta):
    mean = jnp.mean(y, axis=0, keepdims=True)
    var = jnp.mean(jnp.square(y - mean), axis=0, keepdims=True)
    scale = gamma * lax.rsqrt(var + BN_EPS)
    shift = beta - mean * scale
    return jnp.maximum(y * scale + shift, 0.0)


def residual_block_ref(params, x_nchw):
    n, c, h, w = x_nchw.shape
    m = n * h * w
    cmid = params["w1"].shape[-1]
    xr = jnp.transpose(x_nchw, (0, 2, 3, 1)).reshape(m, c).astype(jnp.float32)

    y1 = jnp.dot(xr.astype(jnp.bfloat16), params["w1"],
                 preferred_element_type=jnp.float32)
    h1 = _bn_relu_ref(y1, params["g1"], params["b1"])
    h1p = jnp.pad(h1.reshape(n, h, w, cmid).astype(jnp.bfloat16),
                  ((0, 0), (1, 1), (1, 1), (0, 0)))
    acc = jnp.zeros((m, cmid), jnp.float32)
    for t, (di, dj) in enumerate((a, b) for a in range(3) for b in range(3)):
        patch = h1p[:, di:di + h, dj:dj + w, :].reshape(m, cmid)
        acc = acc + jnp.dot(patch, params["w2"][t],
                            preferred_element_type=jnp.float32)
    h2 = _bn_relu_ref(acc, params["g2"], params["b2"])
    y3 = jnp.dot(h2.astype(jnp.bfloat16), params["w3"],
                 preferred_element_type=jnp.float32)
    z = _bn_relu_ref(y3, params["g3"], params["b3"])
    out = xr + z
    return jnp.transpose(out.reshape(n, h, w, c), (0, 3, 1, 2))


# ----------------------------------------------------------------------------
if __name__ == "__main__":
    key = jax.random.PRNGKey(0)
    key, kx = jax.random.split(key)

    N, C, H, W = 2, 128, 8, 8   # matches the r1 residual block in simp_ResNet9
    CMID = 32
    x = jax.random.normal(kx, (N, C, H, W), jnp.float32)   # NCHW, like PyTorch
    params = init_params(key, C, CMID)

    fwd = jax.jit(residual_block_forward)
    out = fwd(params, x)
    jax.block_until_ready(out)
    assert out.shape == (N, C, H, W), out.shape

    ref = residual_block_ref(params, x)
    max_err = float(jnp.max(jnp.abs(out - ref)))
    assert max_err < 2e-2, f"max abs error vs reference: {max_err}"

    print("KERNEL_OK")
</pallas_src>

<mosaic_0001>
module attributes {stable_mosaic.version = 11 : i64} {
  func.func @residual_bottleneck_kernel(%arg0: memref<128x128xf32, #tpu.memory_space<vmem>>, %arg1: memref<9x128x1xf32, #tpu.memory_space<vmem>>, %arg2: memref<128x32xbf16, #tpu.memory_space<vmem>>, %arg3: memref<9x32x32xbf16, #tpu.memory_space<vmem>>, %arg4: memref<32x128xbf16, #tpu.memory_space<vmem>>, %arg5: memref<1x32xf32, #tpu.memory_space<vmem>>, %arg6: memref<1x32xf32, #tpu.memory_space<vmem>>, %arg7: memref<1x32xf32, #tpu.memory_space<vmem>>, %arg8: memref<1x32xf32, #tpu.memory_space<vmem>>, %arg9: memref<1x128xf32, #tpu.memory_space<vmem>>, %arg10: memref<1x128xf32, #tpu.memory_space<vmem>>, %arg11: memref<128x128xf32, #tpu.memory_space<vmem>>) attributes {dimension_semantics = [], scalar_prefetch = 0 : i64, scratch_operands = 0 : i64, tpu.core_type = #tpu.core_type<tc>} {
    %c0 = arith.constant 0 : index
    %c0_0 = arith.constant 0 : index
    %0 = vector.load %arg0[%c0, %c0_0] : memref<128x128xf32, #tpu.memory_space<vmem>>, vector<128x128xf32>
    %1 = arith.truncf %0 : vector<128x128xf32> to vector<128x128xbf16>
    %c0_1 = arith.constant 0 : index
    %c0_2 = arith.constant 0 : index
    %2 = vector.load %arg2[%c0_1, %c0_2] : memref<128x32xbf16, #tpu.memory_space<vmem>>, vector<128x32xbf16>
    %cst = arith.constant dense<0.000000e+00> : vector<128x32xf32>
    %3 = tpu.matmul %1, %2, %cst {dimension_numbers = #tpu.dot_dimension_numbers<[1], [0], [0], [1], [0, 0, 1, 1], [], []>} : vector<128x128xbf16>, vector<128x32xbf16>, vector<128x32xf32> -> vector<128x32xf32>
    %c0_3 = arith.constant 0 : index
    %c0_4 = arith.constant 0 : index
    %4 = vector.load %arg5[%c0_3, %c0_4] : memref<1x32xf32, #tpu.memory_space<vmem>>, vector<1x32xf32>
    %c0_5 = arith.constant 0 : index
    %c0_6 = arith.constant 0 : index
    %5 = vector.load %arg6[%c0_5, %c0_6] : memref<1x32xf32, #tpu.memory_space<vmem>>, vector<1x32xf32>
    %cst_7 = arith.constant dense<0.000000e+00> : vector<32xf32>
    %6 = vector.multi_reduction <add>, %3, %cst_7 [0] : vector<128x32xf32> to vector<32xf32>
    %7 = vector.shape_cast %6 : vector<32xf32> to vector<1x32xf32>
    %cst_8 = arith.constant 7.812500e-03 : f32
    %8 = vector.broadcast %cst_8 : f32 to vector<1x32xf32>
    %9 = arith.mulf %7, %8 : vector<1x32xf32>
    %10 = arith.mulf %3, %3 : vector<128x32xf32>
    %cst_9 = arith.constant dense<0.000000e+00> : vector<32xf32>
    %11 = vector.multi_reduction <add>, %10, %cst_9 [0] : vector<128x32xf32> to vector<32xf32>
    %12 = vector.shape_cast %11 : vector<32xf32> to vector<1x32xf32>
    %cst_10 = arith.constant 7.812500e-03 : f32
    %13 = vector.broadcast %cst_10 : f32 to vector<1x32xf32>
    %14 = arith.mulf %12, %13 : vector<1x32xf32>
    %15 = arith.mulf %9, %9 : vector<1x32xf32>
    %16 = arith.subf %14, %15 : vector<1x32xf32>
    %cst_11 = arith.constant 9.99999974E-6 : f32
    %17 = vector.broadcast %cst_11 : f32 to vector<1x32xf32>
    %18 = arith.addf %16, %17 : vector<1x32xf32>
    %19 = math.rsqrt %18 : vector<1x32xf32>
    %20 = arith.mulf %4, %19 : vector<1x32xf32>
    %21 = arith.mulf %9, %20 : vector<1x32xf32>
    %22 = arith.subf %5, %21 : vector<1x32xf32>
    %23 = vector.broadcast %20 : vector<1x32xf32> to vector<128x32xf32>
    %24 = arith.mulf %3, %23 : vector<128x32xf32>
    %25 = vector.broadcast %22 : vector<1x32xf32> to vector<128x32xf32>
    %26 = arith.addf %24, %25 : vector<128x32xf32>
    %cst_12 = arith.constant 0.000000e+00 : f32
    %27 = vector.broadcast %cst_12 : f32 to vector<128x32xf32>
    %28 = arith.maximumf %26, %27 : vector<128x32xf32>
    %c9_i32 = arith.constant 9 : i32
    %29 = tpu.dynamic_rotate %28 by %c9_i32 dim 0 : vector<128x32xf32>, i32 -> vector<128x32xf32>
    %c0_13 = arith.constant 0 : index
    %c0_14 = arith.constant 0 : index
    %c0_15 = arith.constant 0 : index
    %30 = vector.load %arg1[%c0_13, %c0_14, %c0_15] : memref<9x128x1xf32, #tpu.memory_space<vmem>>, vector<1x128x1xf32>
    %31 = vector.shape_cast %30 : vector<1x128x1xf32> to vector<128x1xf32>
    %32 = vector.broadcast %31 : vector<128x1xf32> to vector<128x32xf32>
    %33 = arith.mulf %29, %32 : vector<128x32xf32>
    %34 = arith.truncf %33 : vector<128x32xf32> to vector<128x32xbf16>
    %c0_16 = arith.constant 0 : index
    %c0_17 = arith.constant 0 : index
    %c0_18 = arith.constant 0 : index
    %35 = vector.load %arg3[%c0_16, %c0_17, %c0_18] : memref<9x32x32xbf16, #tpu.memory_space<vmem>>, vector<1x32x32xbf16>
    %36 = vector.shape_cast %35 : vector<1x32x32xbf16> to vector<32x32xbf16>
    %cst_19 = arith.constant dense<0.000000e+00> : vector<128x32xf32>
    %37 = tpu.matmul %34, %36, %cst_19 {dimension_numbers = #tpu.dot_dimension_numbers<[1], [0], [0], [1], [0, 0, 1, 1], [], []>} : vector<128x32xbf16>, vector<32x32xbf16>, vector<128x32xf32> -> vector<128x32xf32>
    %c8_i32 = arith.constant 8 : i32
    %38 = tpu.dynamic_rotate %28 by %c8_i32 dim 0 : vector<128x32xf32>, i32 -> vector<128x32xf32>
    %c1 = arith.constant 1 : index
    %c0_20 = arith.constant 0 : index
    %c0_21 = arith.constant 0 : index
    %39 = vector.load %arg1[%c1, %c0_20, %c0_21] : memref<9x128x1xf32, #tpu.memory_space<vmem>>, vector<1x128x1xf32>
    %40 = vector.shape_cast %39 : vector<1x128x1xf32> to vector<128x1xf32>
    %41 = vector.broadcast %40 : vector<128x1xf32> to vector<128x32xf32>
    %42 = arith.mulf %38, %41 : vector<128x32xf32>
    %43 = arith.truncf %42 : vector<128x32xf32> to vector<128x32xbf16>
    %c1_22 = arith.constant 1 : index
    %c0_23 = arith.constant 0 : index
    %c0_24 = arith.constant 0 : index
    %44 = vector.load %arg3[%c1_22, %c0_23, %c0_24] : memref<9x32x32xbf16, #tpu.memory_space<vmem>>, vector<1x32x32xbf16>
    %45 = vector.shape_cast %44 : vector<1x32x32xbf16> to vector<32x32xbf16>
    %cst_25 = arith.constant dense<0.000000e+00> : vector<128x32xf32>
    %46 = tpu.matmul %43, %45, %cst_25 {dimension_numbers = #tpu.dot_dimension_numbers<[1], [0], [0], [1], [0, 0, 1, 1], [], []>} : vector<128x32xbf16>, vector<32x32xbf16>, vector<128x32xf32> -> vector<128x32xf32>
    %47 = arith.addf %37, %46 : vector<128x32xf32>
    %c7_i32 = arith.constant 7 : i32
    %48 = tpu.dynamic_rotate %28 by %c7_i32 dim 0 : vector<128x32xf32>, i32 -> vector<128x32xf32>
    %c2 = arith.constant 2 : index
    %c0_26 = arith.constant 0 : index
    %c0_27 = arith.constant 0 : index
    %49 = vector.load %arg1[%c2, %c0_26, %c0_27] : memref<9x128x1xf32, #tpu.memory_space<vmem>>, vector<1x128x1xf32>
    %50 = vector.shape_cast %49 : vector<1x128x1xf32> to vector<128x1xf32>
    %51 = vector.broadcast %50 : vector<128x1xf32> to vector<128x32xf32>
    %52 = arith.mulf %48, %51 : vector<128x32xf32>
    %53 = arith.truncf %52 : vector<128x32xf32> to vector<128x32xbf16>
    %c2_28 = arith.constant 2 : index
    %c0_29 = arith.constant 0 : index
    %c0_30 = arith.constant 0 : index
    %54 = vector.load %arg3[%c2_28, %c0_29, %c0_30] : memref<9x32x32xbf16, #tpu.memory_space<vmem>>, vector<1x32x32xbf16>
    %55 = vector.shape_cast %54 : vector<1x32x32xbf16> to vector<32x32xbf16>
    %cst_31 = arith.constant dense<0.000000e+00> : vector<128x32xf32>
    %56 = tpu.matmul %53, %55, %cst_31 {dimension_numbers = #tpu.dot_dimension_numbers<[1], [0], [0], [1], [0, 0, 1, 1], [], []>} : vector<128x32xbf16>, vector<32x32xbf16>, vector<128x32xf32> -> vector<128x32xf32>
    %57 = arith.addf %47, %56 : vector<128x32xf32>
    %c1_i32 = arith.constant 1 : i32
    %58 = tpu.dynamic_rotate %28 by %c1_i32 dim 0 : vector<128x32xf32>, i32 -> vector<128x32xf32>
    %c3 = arith.constant 3 : index
    %c0_32 = arith.constant 0 : index
    %c0_33 = arith.constant 0 : index
    %59 = vector.load %arg1[%c3, %c0_32, %c0_33] : memref<9x128x1xf32, #tpu.memory_space<vmem>>, vector<1x128x1xf32>
    %60 = vector.shape_cast %59 : vector<1x128x1xf32> to vector<128x1xf32>
    %61 = vector.broadcast %60 : vector<128x1xf32> to vector<128x32xf32>
    %62 = arith.mulf %58, %61 : vector<128x32xf32>
    %63 = arith.truncf %62 : vector<128x32xf32> to vector<128x32xbf16>
    %c3_34 = arith.constant 3 : index
    %c0_35 = arith.constant 0 : index
    %c0_36 = arith.constant 0 : index
    %64 = vector.load %arg3[%c3_34, %c0_35, %c0_36] : memref<9x32x32xbf16, #tpu.memory_space<vmem>>, vector<1x32x32xbf16>
    %65 = vector.shape_cast %64 : vector<1x32x32xbf16> to vector<32x32xbf16>
    %cst_37 = arith.constant dense<0.000000e+00> : vector<128x32xf32>
    %66 = tpu.matmul %63, %65, %cst_37 {dimension_numbers = #tpu.dot_dimension_numbers<[1], [0], [0], [1], [0, 0, 1, 1], [], []>} : vector<128x32xbf16>, vector<32x32xbf16>, vector<128x32xf32> -> vector<128x32xf32>
    %67 = arith.addf %57, %66 : vector<128x32xf32>
    %c4 = arith.constant 4 : index
    %c0_38 = arith.constant 0 : index
    %c0_39 = arith.constant 0 : index
    %68 = vector.load %arg1[%c4, %c0_38, %c0_39] : memref<9x128x1xf32, #tpu.memory_space<vmem>>, vector<1x128x1xf32>
    %69 = vector.shape_cast %68 : vector<1x128x1xf32> to vector<128x1xf32>
    %70 = vector.broadcast %69 : vector<128x1xf32> to vector<128x32xf32>
    %71 = arith.mulf %28, %70 : vector<128x32xf32>
    %72 = arith.truncf %71 : vector<128x32xf32> to vector<128x32xbf16>
    %c4_40 = arith.constant 4 : index
    %c0_41 = arith.constant 0 : index
    %c0_42 = arith.constant 0 : index
    %73 = vector.load %arg3[%c4_40, %c0_41, %c0_42] : memref<9x32x32xbf16, #tpu.memory_space<vmem>>, vector<1x32x32xbf16>
    %74 = vector.shape_cast %73 : vector<1x32x32xbf16> to vector<32x32xbf16>
    %cst_43 = arith.constant dense<0.000000e+00> : vector<128x32xf32>
    %75 = tpu.matmul %72, %74, %cst_43 {dimension_numbers = #tpu.dot_dimension_numbers<[1], [0], [0], [1], [0, 0, 1, 1], [], []>} : vector<128x32xbf16>, vector<32x32xbf16>, vector<128x32xf32> -> vector<128x32xf32>
    %76 = arith.addf %67, %75 : vector<128x32xf32>
    %c127_i32 = arith.constant 127 : i32
    %77 = tpu.dynamic_rotate %28 by %c127_i32 dim 0 : vector<128x32xf32>, i32 -> vector<128x32xf32>
    %c5 = arith.constant 5 : index
    %c0_44 = arith.constant 0 : index
    %c0_45 = arith.constant 0 : index
    %78 = vector.load %arg1[%c5, %c0_44, %c0_45] : memref<9x128x1xf32, #tpu.memory_space<vmem>>, vector<1x128x1xf32>
    %79 = vector.shape_cast %78 : vector<1x128x1xf32> to vector<128x1xf32>
    %80 = vector.broadcast %79 : vector<128x1xf32> to vector<128x32xf32>
    %81 = arith.mulf %77, %80 : vector<128x32xf32>
    %82 = arith.truncf %81 : vector<128x32xf32> to vector<128x32xbf16>
    %c5_46 = arith.constant 5 : index
    %c0_47 = arith.constant 0 : index
    %c0_48 = arith.constant 0 : index
    %83 = vector.load %arg3[%c5_46, %c0_47, %c0_48] : memref<9x32x32xbf16, #tpu.memory_space<vmem>>, vector<1x32x32xbf16>
    %84 = vector.shape_cast %83 : vector<1x32x32xbf16> to vector<32x32xbf16>
    %cst_49 = arith.constant dense<0.000000e+00> : vector<128x32xf32>
    %85 = tpu.matmul %82, %84, %cst_49 {dimension_numbers = #tpu.dot_dimension_numbers<[1], [0], [0], [1], [0, 0, 1, 1], [], []>} : vector<128x32xbf16>, vector<32x32xbf16>, vector<128x32xf32> -> vector<128x32xf32>
    %86 = arith.addf %76, %85 : vector<128x32xf32>
    %c121_i32 = arith.constant 121 : i32
    %87 = tpu.dynamic_rotate %28 by %c121_i32 dim 0 : vector<128x32xf32>, i32 -> vector<128x32xf32>
    %c6 = arith.constant 6 : index
    %c0_50 = arith.constant 0 : index
    %c0_51 = arith.constant 0 : index
    %88 = vector.load %arg1[%c6, %c0_50, %c0_51] : memref<9x128x1xf32, #tpu.memory_space<vmem>>, vector<1x128x1xf32>
    %89 = vector.shape_cast %88 : vector<1x128x1xf32> to vector<128x1xf32>
    %90 = vector.broadcast %89 : vector<128x1xf32> to vector<128x32xf32>
    %91 = arith.mulf %87, %90 : vector<128x32xf32>
    %92 = arith.truncf %91 : vector<128x32xf32> to vector<128x32xbf16>
    %c6_52 = arith.constant 6 : index
    %c0_53 = arith.constant 0 : index
    %c0_54 = arith.constant 0 : index
    %93 = vector.load %arg3[%c6_52, %c0_53, %c0_54] : memref<9x32x32xbf16, #tpu.memory_space<vmem>>, vector<1x32x32xbf16>
    %94 = vector.shape_cast %93 : vector<1x32x32xbf16> to vector<32x32xbf16>
    %cst_55 = arith.constant dense<0.000000e+00> : vector<128x32xf32>
    %95 = tpu.matmul %92, %94, %cst_55 {dimension_numbers = #tpu.dot_dimension_numbers<[1], [0], [0], [1], [0, 0, 1, 1], [], []>} : vector<128x32xbf16>, vector<32x32xbf16>, vector<128x32xf32> -> vector<128x32xf32>
    %96 = arith.addf %86, %95 : vector<128x32xf32>
    %c120_i32 = arith.constant 120 : i32
    %97 = tpu.dynamic_rotate %28 by %c120_i32 dim 0 : vector<128x32xf32>, i32 -> vector<128x32xf32>
    %c7 = arith.constant 7 : index
    %c0_56 = arith.constant 0 : index
    %c0_57 = arith.constant 0 : index
    %98 = vector.load %arg1[%c7, %c0_56, %c0_57] : memref<9x128x1xf32, #tpu.memory_space<vmem>>, vector<1x128x1xf32>
    %99 = vector.shape_cast %98 : vector<1x128x1xf32> to vector<128x1xf32>
    %100 = vector.broadcast %99 : vector<128x1xf32> to vector<128x32xf32>
    %101 = arith.mulf %97, %100 : vector<128x32xf32>
    %102 = arith.truncf %101 : vector<128x32xf32> to vector<128x32xbf16>
    %c7_58 = arith.constant 7 : index
    %c0_59 = arith.constant 0 : index
    %c0_60 = arith.constant 0 : index
    %103 = vector.load %arg3[%c7_58, %c0_59, %c0_60] : memref<9x32x32xbf16, #tpu.memory_space<vmem>>, vector<1x32x32xbf16>
    %104 = vector.shape_cast %103 : vector<1x32x32xbf16> to vector<32x32xbf16>
    %cst_61 = arith.constant dense<0.000000e+00> : vector<128x32xf32>
    %105 = tpu.matmul %102, %104, %cst_61 {dimension_numbers = #tpu.dot_dimension_numbers<[1], [0], [0], [1], [0, 0, 1, 1], [], []>} : vector<128x32xbf16>, vector<32x32xbf16>, vector<128x32xf32> -> vector<128x32xf32>
    %106 = arith.addf %96, %105 : vector<128x32xf32>
    %c119_i32 = arith.constant 119 : i32
    %107 = tpu.dynamic_rotate %28 by %c119_i32 dim 0 : vector<128x32xf32>, i32 -> vector<128x32xf32>
    %c8 = arith.constant 8 : index
    %c0_62 = arith.constant 0 : index
    %c0_63 = arith.constant 0 : index
    %108 = vector.load %arg1[%c8, %c0_62, %c0_63] : memref<9x128x1xf32, #tpu.memory_space<vmem>>, vector<1x128x1xf32>
    %109 = vector.shape_cast %108 : vector<1x128x1xf32> to vector<128x1xf32>
    %110 = vector.broadcast %109 : vector<128x1xf32> to vector<128x32xf32>
    %111 = arith.mulf %107, %110 : vector<128x32xf32>
    %112 = arith.truncf %111 : vector<128x32xf32> to vector<128x32xbf16>
    %c8_64 = arith.constant 8 : index
    %c0_65 = arith.constant 0 : index
    %c0_66 = arith.constant 0 : index
    %113 = vector.load %arg3[%c8_64, %c0_65, %c0_66] : memref<9x32x32xbf16, #tpu.memory_space<vmem>>, vector<1x32x32xbf16>
    %114 = vector.shape_cast %113 : vector<1x32x32xbf16> to vector<32x32xbf16>
    %cst_67 = arith.constant dense<0.000000e+00> : vector<128x32xf32>
    %115 = tpu.matmul %112, %114, %cst_67 {dimension_numbers = #tpu.dot_dimension_numbers<[1], [0], [0], [1], [0, 0, 1, 1], [], []>} : vector<128x32xbf16>, vector<32x32xbf16>, vector<128x32xf32> -> vector<128x32xf32>
    %116 = arith.addf %106, %115 : vector<128x32xf32>
    %c0_68 = arith.constant 0 : index
    %c0_69 = arith.constant 0 : index
    %117 = vector.load %arg7[%c0_68, %c0_69] : memref<1x32xf32, #tpu.memory_space<vmem>>, vector<1x32xf32>
    %c0_70 = arith.constant 0 : index
    %c0_71 = arith.constant 0 : index
    %118 = vector.load %arg8[%c0_70, %c0_71] : memref<1x32xf32, #tpu.memory_space<vmem>>, vector<1x32xf32>
    %cst_72 = arith.constant dense<0.000000e+00> : vector<32xf32>
    %119 = vector.multi_reduction <add>, %116, %cst_72 [0] : vector<128x32xf32> to vector<32xf32>
    %120 = vector.shape_cast %119 : vector<32xf32> to vector<1x32xf32>
    %cst_73 = arith.constant 7.812500e-03 : f32
    %121 = vector.broadcast %cst_73 : f32 to vector<1x32xf32>
    %122 = arith.mulf %120, %121 : vector<1x32xf32>
    %123 = arith.mulf %116, %116 : vector<128x32xf32>
    %cst_74 = arith.constant dense<0.000000e+00> : vector<32xf32>
    %124 = vector.multi_reduction <add>, %123, %cst_74 [0] : vector<128x32xf32> to vector<32xf32>
    %125 = vector.shape_cast %124 : vector<32xf32> to vector<1x32xf32>
    %cst_75 = arith.constant 7.812500e-03 : f32
    %126 = vector.broadcast %cst_75 : f32 to vector<1x32xf32>
    %127 = arith.mulf %125, %126 : vector<1x32xf32>
    %128 = arith.mulf %122, %122 : vector<1x32xf32>
    %129 = arith.subf %127, %128 : vector<1x32xf32>
    %cst_76 = arith.constant 9.99999974E-6 : f32
    %130 = vector.broadcast %cst_76 : f32 to vector<1x32xf32>
    %131 = arith.addf %129, %130 : vector<1x32xf32>
    %132 = math.rsqrt %131 : vector<1x32xf32>
    %133 = arith.mulf %117, %132 : vector<1x32xf32>
    %134 = arith.mulf %122, %133 : vector<1x32xf32>
    %135 = arith.subf %118, %134 : vector<1x32xf32>
    %136 = vector.broadcast %133 : vector<1x32xf32> to vector<128x32xf32>
    %137 = arith.mulf %116, %136 : vector<128x32xf32>
    %138 = vector.broadcast %135 : vector<1x32xf32> to vector<128x32xf32>
    %139 = arith.addf %137, %138 : vector<128x32xf32>
    %cst_77 = arith.constant 0.000000e+00 : f32
    %140 = vector.broadcast %cst_77 : f32 to vector<128x32xf32>
    %141 = arith.maximumf %139, %140 : vector<128x32xf32>
    %142 = arith.truncf %141 : vector<128x32xf32> to vector<128x32xbf16>
    %c0_78 = arith.constant 0 : index
    %c0_79 = arith.constant 0 : index
    %143 = vector.load %arg4[%c0_78, %c0_79] : memref<32x128xbf16, #tpu.memory_space<vmem>>, vector<32x128xbf16>
    %cst_80 = arith.constant dense<0.000000e+00> : vector<128x128xf32>
    %144 = tpu.matmul %142, %143, %cst_80 {dimension_numbers = #tpu.dot_dimension_numbers<[1], [0], [0], [1], [0, 0, 1, 1], [], []>} : vector<128x32xbf16>, vector<32x128xbf16>, vector<128x128xf32> -> vector<128x128xf32>
    %c0_81 = arith.constant 0 : index
    %c0_82 = arith.constant 0 : index
    %145 = vector.load %arg9[%c0_81, %c0_82] : memref<1x128xf32, #tpu.memory_space<vmem>>, vector<1x128xf32>
    %c0_83 = arith.constant 0 : index
    %c0_84 = arith.constant 0 : index
    %146 = vector.load %arg10[%c0_83, %c0_84] : memref<1x128xf32, #tpu.memory_space<vmem>>, vector<1x128xf32>
    %cst_85 = arith.constant dense<0.000000e+00> : vector<128xf32>
    %147 = vector.multi_reduction <add>, %144, %cst_85 [0] : vector<128x128xf32> to vector<128xf32>
    %148 = vector.shape_cast %147 : vector<128xf32> to vector<1x128xf32>
    %cst_86 = arith.constant 7.812500e-03 : f32
    %149 = vector.broadcast %cst_86 : f32 to vector<1x128xf32>
    %150 = arith.mulf %148, %149 : vector<1x128xf32>
    %151 = arith.mulf %144, %144 : vector<128x128xf32>
    %cst_87 = arith.constant dense<0.000000e+00> : vector<128xf32>
    %152 = vector.multi_reduction <add>, %151, %cst_87 [0] : vector<128x128xf32> to vector<128xf32>
    %153 = vector.shape_cast %152 : vector<128xf32> to vector<1x128xf32>
    %cst_88 = arith.constant 7.812500e-03 : f32
    %154 = vector.broadcast %cst_88 : f32 to vector<1x128xf32>
    %155 = arith.mulf %153, %154 : vector<1x128xf32>
    %156 = arith.mulf %150, %150 : vector<1x128xf32>
    %157 = arith.subf %155, %156 : vector<1x128xf32>
    %cst_89 = arith.constant 9.99999974E-6 : f32
    %158 = vector.broadcast %cst_89 : f32 to vector<1x128xf32>
    %159 = arith.addf %157, %158 : vector<1x128xf32>
    %160 = math.rsqrt %159 : vector<1x128xf32>
    %161 = arith.mulf %145, %160 : vector<1x128xf32>
    %162 = arith.mulf %150, %161 : vector<1x128xf32>
    %163 = arith.subf %146, %162 : vector<1x128xf32>
    %164 = vector.broadcast %161 : vector<1x128xf32> to vector<128x128xf32>
    %165 = arith.mulf %144, %164 : vector<128x128xf32>
    %166 = vector.broadcast %163 : vector<1x128xf32> to vector<128x128xf32>
    %167 = arith.addf %165, %166 : vector<128x128xf32>
    %cst_90 = arith.constant 0.000000e+00 : f32
    %168 = vector.broadcast %cst_90 : f32 to vector<128x128xf32>
    %169 = arith.maximumf %167, %168 : vector<128x128xf32>
    %c0_91 = arith.constant 0 : index
    %c0_92 = arith.constant 0 : index
    %170 = vector.load %arg0[%c0_91, %c0_92] : memref<128x128xf32, #tpu.memory_space<vmem>>, vector<128x128xf32>
    %171 = arith.addf %170, %169 : vector<128x128xf32>
    %c0_93 = arith.constant 0 : index
    %c0_94 = arith.constant 0 : index
    %172 = vector.load %arg11[%c0_93, %c0_94] : memref<128x128xf32, #tpu.memory_space<vmem>>, vector<128x128xf32>
    tpu.vector_store %arg11[%c0_93, %c0_94], %171 {strides = array<i32>} : memref<128x128xf32, #tpu.memory_space<vmem>>, vector<128x128xf32>,
    return
  }
}

</mosaic_0001>

<bundles_post_ra>
// kernel: residual_block_forward.1
= control target key start
LH: loop header
LB: loop body
LE: loop exit
PB: predicated region body
PF: predicated region fallthrough
CT: control target
= control target key end

     0   :  { %16 = vsyncpa [#allocation3], 0  ;;  %s5927_s0 = inlined_call_operand.hbm [shape: f32[128,128], index: 0, kind: input, shape index: {}]   ;;  %s5928_s1 = inlined_call_operand.hbm [shape: f32[9,128,1], index: 1, kind: input, shape index: {}]   ;;  %s5929_s2 = inlined_call_operand.vmem [shape: bf16[128,32], index: 2, kind: input, shape index: {}]   ;;  %s5930_s3 = inlined_call_operand.hbm [shape: bf16[9,32,32], index: 3, kind: input, shape index: {}]   ;;  %s5931_s4 = inlined_call_operand.vmem [shape: bf16[32,128], index: 4, kind: input, shape index: {}]   ;;  %s5932_s5 = inlined_call_operand.vmem [shape: f32[1,32], index: 5, kind: input, shape index: {}]   ;;  %s5933_s6 = inlined_call_operand.vmem [shape: f32[1,32], index: 6, kind: input, shape index: {}]   ;;  %s5934_s7 = inlined_call_operand.vmem [shape: f32[1,32], index: 7, kind: input, shape index: {}]   ;;  %s5935_s8 = inlined_call_operand.vmem [shape: f32[1,32], index: 8, kind: input, shape index: {}]   ;;  %s5936_s9 = inlined_call_operand.vmem [shape: f32[1,128], index: 9, kind: input, shape index: {}]   ;;  %s5937_s10 = inlined_call_operand.vmem [shape: f32[1,128], index: 10, kind: input, shape index: {}]   ;;  %s5938_s11 = inlined_call_operand.hbm [shape: f32[128,128], index: 11, kind: output, shape index: {}]  }
   0x1   :  { %17 = vsyncpa [#allocation6], 0 }
   0x2   :  { %18 = vsyncpa [#allocation4], 0  ;;  %s4161_s17 = smov [#allocation5]   ;;  %s4162_s19 = smov [#allocation2]  }
   0x3   :  { %s36_s18 = sshll.u32 %s4161_s17, 4  ;;  %s24_s20 = sshll.u32 %s4162_s19, 4  ;;  %s37_s18 = int_to_ptr.vmem [resolvable:$true] %s36_s18  ;;  %s4230_s20 = int_to_ptr.vmem [resolvable:$true] %s24_s20 }
   0x4   :  { %s4067_s23 = scalar_lea.hbm %s5928_s1, 18432 }
   0x5   :  { %p4068_p0 = scmp.ne.s32.totalorder %s5928_s1, %s4067_s23  ;;  %p4071_p1 = scmp.lt.u32.totalorder %s4067_s23, %s5928_s1 }
   0x7   :  { %p4073_p2 = pnand %p4071_p1, %p4068_p0 }
   0x9   :  { %4076 = shalt.err (!%p4073_p2)
}
   0xa   :  { %s4077_s28 = scalar_lea.vmem %s37_s18, 18432  ;;  %p4082_p4 = scmp.lt.s32.totalorder %s37_s18, %s37_s18 }
   0xb   :  { %p4078_p3 = scmp.ne.s32.totalorder %s37_s18, %s4077_s28  ;;  %p4083_p5 = scmp.lt.s32.totalorder %s4077_s28, %s4077_s28 }
   0xd   :  { %p4084_p6 = por %p4083_p5, %p4082_p4 }
   0xf   :  { %p4085_p7 = pnand %p4084_p6, %p4078_p3 }
  0x11   :  { %4088 = shalt.err (!%p4085_p7)
}
  0x12   :  { %s4163_s29 = smov 128   ;;  %s4164_s30 = smov 8  }
  0x13   :  { %42 = dma.hbm_to_vmem [thread:$0]  %s5928_s1, 18432, %s37_s18, [#allocation6], %s4163_s29, %s4163_s29, %s4164_s30  }
  0x14   :  { %s4089_s16 = scalar_lea.hbm %s5927_s0, 2048 }
  0x15   :  { %p4090_p8 = scmp.ne.s32.totalorder %s5927_s0, %s4089_s16  ;;  %p4093_p9 = scmp.lt.u32.totalorder %s4089_s16, %s5927_s0 }
  0x17   :  { %p4095_p10 = pnand %p4093_p9, %p4090_p8 }
  0x19   :  { %4098 = shalt.err (!%p4095_p10)
}
  0x1a   :  { %s4099_s23 = scalar_lea.vmem %s4230_s20, 2048  ;;  %p4104_p12 = scmp.lt.s32.totalorder %s4230_s20, %s4230_s20 }
  0x1b   :  { %p4100_p11 = scmp.ne.s32.totalorder %s4230_s20, %s4099_s23  ;;  %p4105_p13 = scmp.lt.s32.totalorder %s4099_s23, %s4099_s23 }
  0x1d   :  { %p4106_p0 = por %p4105_p13, %p4104_p12 }
  0x1f   :  { %p4107_p1 = pnand %p4106_p0, %p4100_p11 }
  0x21   :  { %4110 = shalt.err (!%p4107_p1)
}
  0x22   :  { %30 = dma.hbm_to_vmem [thread:$0]  %s5927_s0, 2048, %s4230_s20, [#allocation3], %s4163_s29, %s4163_s29, %s4164_s30  }
  0x23   :  { %s4165_s24 = smov [#allocation7]   ;;  %s4111_s28 = scalar_lea.hbm %s5930_s3, 2304 }
  0x24   :  { %s50_s25 = sshll.u32 %s4165_s24, 4  ;;  %p4112_p2 = scmp.ne.s32.totalorder %s5930_s3, %s4111_s28  ;;  %s51_s25 = int_to_ptr.vmem [resolvable:$true] %s50_s25 }
  0x25   :  { %p4115_p3 = scmp.lt.u32.totalorder %s4111_s28, %s5930_s3 }
  0x27   :  { %p4117_p4 = pnand %p4115_p3, %p4112_p2 }
  0x29   :  { %4120 = shalt.err (!%p4117_p4)
}
  0x2a   :  { %s4121_s16 = scalar_lea.vmem %s51_s25, 2304  ;;  %p4126_p6 = scmp.lt.s32.totalorder %s51_s25, %s51_s25 }
  0x2b   :  { %p4122_p5 = scmp.ne.s32.totalorder %s51_s25, %s4121_s16  ;;  %p4127_p7 = scmp.lt.s32.totalorder %s4121_s16, %s4121_s16 }
  0x2d   :  { %p4128_p8 = por %p4127_p7, %p4126_p6 }
  0x2f   :  { %p4129_p9 = pnand %p4128_p8, %p4122_p5 }
  0x31   :  { %4132 = shalt.err (!%p4129_p9)
}
  0x32   :  { %s4166_s0 = smov 64   ;;  %s4167_s20 = smov 4  }
  0x33   :  { %56 = dma.hbm_to_vmem [thread:$0]  %s5930_s3, 2304, %s51_s25, [#allocation6], %s4166_s0, %s4166_s0, %s4167_s20  }
  0x34   :  { %4155 = dma.done.wait [#allocation3], 2048  }
  0x35   :  { %4156 = vsyncadd [#allocation3], 4294965248 }
  0x36   :  { %4157 = dma.done.wait [#allocation6], 20736  }
  0x37   :  { %4158 = vsyncadd [#allocation6], 4294946560  ;;  %v4168_v0 = vmov 0   ;;  %v1290_v1 = vld [vmem:[#allocation5 + $0x190] sm:$0xff]  ;;  %v1288_v2 = vld [vmem:[#allocation5 + $0x180] sm:$0xff]  ;;  %vm268_vm0 = vcmask 261120  }
  0x38   :  { %4016 = vset.pattern.permute.xlu1 %v4168_v0  ;;  %4015 = vset.pattern.permute.xlu0 %v4168_v0  ;;  %v4017_v3 = vld [vmem:[%s5929_s2] sm:$0xff]   ;;  %v1291_v4 = vld [vmem:[#allocation5 + $0x198] sm:$0xff]  ;;  %v1289_v5 = vld [vmem:[#allocation5 + $0x188] sm:$0xff] }
  0x39   :  { %1316 = vperm.xlu1 %4016, %v1290_v1   ;;  %1306 = vperm.xlu0 %4015, %v1288_v2   ;;  %v4018_v6 = vld [vmem:[%s5929_s2 + $0x8] sm:$0xff]   ;;  %v1292_v8 = vld [vmem:[#allocation5 + $0x1a0] sm:$0xff]  ;;  %v4019_v9 = vld [vmem:[%s5929_s2 + $0x10] sm:$0xff]  }
  0x3a   :  { %3646 = vmatprep.subr.bf16.mxu0 %v4017_v3  ;;  %v1293_v7 = vld [vmem:[#allocation5 + $0x1a8] sm:$0xff]  ;;  %v1295_v10 = vld [vmem:[#allocation5 + $0x1b8] sm:$0xff]  ;;  %v1294_v11 = vld [vmem:[#allocation5 + $0x1b0] sm:$0xff] }
  0x3b   :  { %3647 = vmatpush3.bf16.msra.mxu0 %v4017_v3  ;;  %v4020_v12 = vld [vmem:[%s5929_s2 + $0x18] sm:$0xff]   ;;  %v1297_v13 = vld [vmem:[#allocation5 + $0x1c8] sm:$0xff]  ;;  %v1296_v14 = vld [vmem:[#allocation5 + $0x1c0] sm:$0xff] }
  0x3c   :  { %3648 = vmatprep.subr.bf16.mxu0 %v4018_v6  ;;  %v4021_v15 = vld [vmem:[%s5929_s2 + $0x20] sm:$0xff]   ;;  %v82_v17 = vld [vmem:[#allocation2 + $0x8] sm:$0xff]  ;;  %v1299_v19 = vld [vmem:[#allocation5 + $0x1d8] sm:$0xff] }
  0x3d   :  { %1321 = vperm.xlu1 %4016, %v1291_v4   ;;  %1311 = vperm.xlu0 %4015, %v1289_v5   ;;  %v81_v16 = vld [vmem:[#allocation2] sm:$0xff]  ;;  %v1298_v20 = vld [vmem:[#allocation5 + $0x1d0] sm:$0xff]  ;;  %v4022_v21 = vld [vmem:[%s5929_s2 + $0x28] sm:$0xff]  }
  0x3e   :  { %v97_v18 = vpack.c.bf16 %v82_v17, %v81_v16  ;;  %v1301_v22 = vld [vmem:[#allocation5 + $0x1e8] sm:$0xff]  ;;  %v1300_v23 = vld [vmem:[#allocation5 + $0x1e0] sm:$0xff]  ;;  %v4023_v24 = vld [vmem:[%s5929_s2 + $0x30] sm:$0xff]  }
  0x3f   :  { %3649 = vmatpush3.bf16.msra.mxu0 %v4018_v6  ;;  %v1303_v25 = vld [vmem:[#allocation5 + $0x1f8] sm:$0xff]  ;;  %v1302_v26 = vld [vmem:[#allocation5 + $0x1f0] sm:$0xff]  ;;  %v85_v30 = vld [vmem:[#allocation2 + $0x20] sm:$0xff] }
  0x40   :  { %3650 = vmatprep.subr.bf16.mxu0 %v4019_v9  ;;  %3662 = vmatprep.mubr.bf16.mxu0 %v97_v18  ;;  %v4024_v27 = vld [vmem:[%s5929_s2 + $0x38] sm:$0xff]   ;;  %v83_v28 = vld [vmem:[#allocation2 + $0x10] sm:$0xff]  ;;  %v86_v31 = vld [vmem:[#allocation2 + $0x28] sm:$0xff] }
  0x41   :  { %1331 = vperm.xlu1 %4016, %v1293_v7   ;;  %1326 = vperm.xlu0 %4015, %v1292_v8   ;;  %v84_v29 = vld [vmem:[#allocation2 + $0x18] sm:$0xff]  ;;  %v1564_v32 = vld [vmem:[#allocation5 + $0x208] sm:$0xff]  ;;  %v1563_v33 = vld [vmem:[#allocation5 + $0x200] sm:$0xff]  ;;  %v99_v35 = vpack.c.bf16 %v86_v31, %v85_v30 }
  0x42   :  { %v98_v34 = vpack.c.bf16 %v84_v29, %v83_v28  ;;  %v1566_v36 = vld [vmem:[#allocation5 + $0x218] sm:$0xff]  ;;  %v1565_v37 = vld [vmem:[#allocation5 + $0x210] sm:$0xff]  ;;  %v89_v40 = vld [vmem:[#allocation2 + $0x40] sm:$0xff] }
  0x43   :  { %3651 = vmatpush3.bf16.msra.mxu0 %v4019_v9  ;;  %v87_v38 = vld [vmem:[#allocation2 + $0x30] sm:$0xff]  ;;  %v88_v39 = vld [vmem:[#allocation2 + $0x38] sm:$0xff]  ;;  %v90_v41 = vld [vmem:[#allocation2 + $0x48] sm:$0xff] }
  0x44   :  { %3652 = vmatprep.subr.bf16.mxu0 %v4020_v12  ;;  %v1568_v42 = vld [vmem:[#allocation5 + $0x228] sm:$0xff]  ;;  %v1567_v43 = vld [vmem:[#allocation5 + $0x220] sm:$0xff]  ;;  %v100_v44 = vpack.c.bf16 %v88_v39, %v87_v38  ;;  %v101_v45 = vpack.c.bf16 %v90_v41, %v89_v40  ;;  %v1570_v46 = vld [vmem:[#allocation5 + $0x238] sm:$0xff] }
  0x45   :  { %1341 = vperm.xlu1 %4016, %v1295_v10   ;;  %1336 = vperm.xlu0 %4015, %v1294_v11   ;;  %v1569_v47 = vld [vmem:[#allocation5 + $0x230] sm:$0xff]  ;;  %v92_v49 = vld [vmem:[#allocation2 + $0x58] sm:$0xff]  ;;  %v1572_v50 = vld [vmem:[#allocation5 + $0x248] sm:$0xff] }
  0x46   :  { %v91_v48 = vld [vmem:[#allocation2 + $0x50] sm:$0xff]  ;;  %v1571_v51 = vld [vmem:[#allocation5 + $0x240] sm:$0xff]  ;;  %v94_v53 = vld [vmem:[#allocation2 + $0x68] sm:$0xff] }
  0x47   :  { %3653 = vmatpush3.bf16.msra.mxu0 %v4020_v12  ;;  %v93_v52 = vld [vmem:[#allocation2 + $0x60] sm:$0xff]  ;;  %v102_v54 = vpack.c.bf16 %v92_v49, %v91_v48  ;;  %v1574_v55 = vld [vmem:[#allocation5 + $0x258] sm:$0xff]  ;;  %v1573_v57 = vld [vmem:[#allocation5 + $0x250] sm:$0xff] }
  0x48   :  { %3654 = vmatprep.subr.bf16.mxu0 %v4021_v15  ;;  %v103_v56 = vpack.c.bf16 %v94_v53, %v93_v52  ;;  %v95_v58 = vld [vmem:[#allocation2 + $0x70] sm:$0xff]  ;;  %v1576_v59 = vld [vmem:[#allocation5 + $0x268] sm:$0xff]  ;;  %v96_v60 = vld [vmem:[#allocation2 + $0x78] sm:$0xff] }
  0x49   :  { %1351 = vperm.xlu1 %4016, %v1297_v13   ;;  %1346 = vperm.xlu0 %4015, %v1296_v14   ;;  %v1575_v61 = vld [vmem:[#allocation5 + $0x260] sm:$0xff]  ;;  %v104_v62 = vpack.c.bf16 %v96_v60, %v95_v58  ;;  %v1578_v63 = vld [vmem:[#allocation5 + $0x278] sm:$0xff]  ;;  %v1577_v0 = vld [vmem:[#allocation5 + $0x270] sm:$0xff] }
  0x4a   :  { %v1839_v1 = vld [vmem:[#allocation5 + $0x288] sm:$0xff]  ;;  %v1838_v2 = vld [vmem:[#allocation5 + $0x280] sm:$0xff]  ;;  %v1841_v3 = vld [vmem:[#allocation5 + $0x298] sm:$0xff] }
  0x4b   :  { %3655 = vmatpush3.bf16.msra.mxu0 %v4021_v15  ;;  %v1840_v4 = vld [vmem:[#allocation5 + $0x290] sm:$0xff]  ;;  %v1843_v5 = vld [vmem:[#allocation5 + $0x2a8] sm:$0xff]  ;;  %v1842_v6 = vld [vmem:[#allocation5 + $0x2a0] sm:$0xff] }
  0x4c   :  { %3656 = vmatprep.subr.bf16.mxu0 %v4022_v21  ;;  %v1845_v7 = vld [vmem:[#allocation5 + $0x2b8] sm:$0xff]  ;;  %v1844_v8 = vld [vmem:[#allocation5 + $0x2b0] sm:$0xff]  ;;  %v1847_v9 = vld [vmem:[#allocation5 + $0x2c8] sm:$0xff] }
  0x4d   :  { %1361 = vperm.xlu1 %4016, %v1299_v19   ;;  %1356 = vperm.xlu0 %4015, %v1298_v20   ;;  %v1846_v10 = vld [vmem:[#allocation5 + $0x2c0] sm:$0xff]  ;;  %v1849_v11 = vld [vmem:[#allocation5 + $0x2d8] sm:$0xff]  ;;  %v1848_v12 = vld [vmem:[#allocation5 + $0x2d0] sm:$0xff] }
  0x4e   :  { %v1851_v13 = vld [vmem:[#allocation5 + $0x2e8] sm:$0xff]  ;;  %v1850_v14 = vld [vmem:[#allocation5 + $0x2e0] sm:$0xff]  ;;  %v1853_v15 = vld [vmem:[#allocation5 + $0x2f8] sm:$0xff] }
  0x4f   :  { %3657 = vmatpush3.bf16.msra.mxu0 %v4022_v21  ;;  %v1852_v16 = vld [vmem:[#allocation5 + $0x2f0] sm:$0xff]  ;;  %v589_v17 = vld [vmem:[#allocation5 + $0x88] sm:$0xff]  ;;  %v588_v18 = vld [vmem:[#allocation5 + $0x80] sm:$0xff] }
  0x50   :  { %3658 = vmatprep.subr.bf16.mxu0 %v4023_v24  ;;  %v2114_v19 = vld [vmem:[#allocation5 + $0x308] sm:$0xff]  ;;  %v2113_v20 = vld [vmem:[#allocation5 + $0x300] sm:$0xff]  ;;  %v591_v21 = vld [vmem:[#allocation5 + $0x98] sm:$0xff] }
  0x51   :  { %1371 = vperm.xlu1 %4016, %v1301_v22   ;;  %1366 = vperm.xlu0 %4015, %v1300_v23   ;;  %v590_v22 = vld [vmem:[#allocation5 + $0x90] sm:$0xff]  ;;  %v2116_v23 = vld [vmem:[#allocation5 + $0x318] sm:$0xff]  ;;  %v2117_v28 = vld [vmem:[#allocation5 + $0x320] sm:$0xff] }
  0x52   :  { %v595_v29 = vld [vmem:[#allocation5 + $0xb8] sm:$0xff]  ;;  %v594_v30 = vld [vmem:[#allocation5 + $0xb0] sm:$0xff]  ;;  %v2121_v38 = vld [vmem:[#allocation5 + $0x340] sm:$0xff] }
  0x53   :  { %3659 = vmatpush3.bf16.msra.mxu0 %v4023_v24  ;;  %v2115_v24 = vld [vmem:[#allocation5 + $0x310] sm:$0xff]  ;;  %v2120_v31 = vld [vmem:[#allocation5 + $0x338] sm:$0xff]  ;;  %v601_v49 = vld [vmem:[#allocation5 + $0xe8] sm:$0xff] }
  0x54   :  { %3660 = vmatprep.subr.bf16.mxu0 %v4024_v27  ;;  %v599_v41 = vld [vmem:[#allocation5 + $0xd8] sm:$0xff]  ;;  %v2126_v53 = vld [vmem:[#allocation5 + $0x368] sm:$0xff]  ;;  %v602_v58 = vld [vmem:[#allocation5 + $0xf0] sm:$0xff] }
  0x55   :  { %1381 = vperm.xlu1 %4016, %v1303_v25   ;;  %1376 = vperm.xlu0 %4015, %v1302_v26   ;;  %v593_v25 = vld [vmem:[#allocation5 + $0xa8] sm:$0xff]  ;;  %v592_v26 = vld [vmem:[#allocation5 + $0xa0] sm:$0xff] }
  0x57   :  { %3661 = vmatpush3.bf16.msra.mxu0 %v4024_v27  ;;  %v2118_v27 = vld [vmem:[#allocation5 + $0x328] sm:$0xff] }
  0x59   :  { %1586 = vperm.xlu1 %4016, %v1564_v32   ;;  %1581 = vperm.xlu0 %4015, %v1563_v33   ;;  %v2119_v32 = vld [vmem:[#allocation5 + $0x330] sm:$0xff]  ;;  %v597_v33 = vld [vmem:[#allocation5 + $0xc8] sm:$0xff] }
  0x5a   :  { %3663 = vmatmul.mubr.bf16.vlgmr.msra.gmra.mrb[0].mxu0 %v98_v34  ;;  %v596_v34 = vld [vmem:[#allocation5 + $0xc0] sm:$0xff] }
  0x5b   :  { %3666 = vmatprep.mubr.bf16.mxu0 %v99_v35 }
  0x5d   :  { %1596 = vperm.xlu1 %4016, %v1566_v36   ;;  %1591 = vperm.xlu0 %4015, %v1565_v37   ;;  %v2122_v37 = vld [vmem:[#allocation5 + $0x348] sm:$0xff] }
  0x61   :  { %1606 = vperm.xlu1 %4016, %v1568_v42   ;;  %1601 = vperm.xlu0 %4015, %v1567_v43   ;;  %v598_v42 = vld [vmem:[#allocation5 + $0xd0] sm:$0xff] }
  0x62   :  { %3667 = vmatmul.mubr.bf16.gmra.mrb[4].mxu0 %v100_v44 }
  0x63   :  { %3670 = vmatprep.mubr.bf16.mxu0 %v101_v45  ;;  %v2124_v45 = vld [vmem:[#allocation5 + $0x358] sm:$0xff] }
  0x65   :  { %1616 = vperm.xlu1 %4016, %v1570_v46   ;;  %1611 = vperm.xlu0 %4015, %v1569_v47   ;;  %v2123_v46 = vld [vmem:[#allocation5 + $0x350] sm:$0xff] }
  0x69   :  { %1626 = vperm.xlu1 %4016, %v1572_v50   ;;  %1621 = vperm.xlu0 %4015, %v1571_v51   ;;  %v600_v50 = vld [vmem:[#allocation5 + $0xe0] sm:$0xff] }
  0x6a   :  { %3671 = vmatmul.mubr.bf16.gmra.mrb[8].mxu0 %v102_v54  ;;  %v2125_v54 = vld [vmem:[#allocation5 + $0x360] sm:$0xff] }
  0x6b   :  { %3674 = vmatprep.mubr.bf16.mxu0 %v103_v56 }
  0x6d   :  { %1636 = vperm.xlu1 %4016, %v1574_v55   ;;  %1631 = vperm.xlu0 %4015, %v1573_v57   ;;  %v603_v57 = vld [vmem:[#allocation5 + $0xf8] sm:$0xff] }
  0x71   :  { %1646 = vperm.xlu1 %4016, %v1576_v59   ;;  %1641 = vperm.xlu0 %4015, %v1575_v61   ;;  %v2128_v61 = vld [vmem:[#allocation5 + $0x378] sm:$0xff] }
  0x72   :  { %3675 = vmatmul.mubr.bf16.gmra.mrb[12].mxu0 %v104_v62  ;;  %v2127_v62 = vld [vmem:[#allocation5 + $0x370] sm:$0xff] }
  0x75   :  { %1656 = vperm.xlu1 %4016, %v1578_v63   ;;  %1651 = vperm.xlu0 %4015, %v1577_v0  }
  0x79   :  { %1861 = vperm.xlu1 %4016, %v1839_v1   ;;  %1856 = vperm.xlu0 %4015, %v1838_v2   ;;  %v464_v1 = vld [vmem:[#allocation5 + $0x8] sm:$0xff]  ;;  %v463_v2 = vld [vmem:[#allocation5] sm:$0xff] }
  0x7d   :  { %1871 = vperm.xlu1 %4016, %v1841_v3   ;;  %1866 = vperm.xlu0 %4015, %v1840_v4  }
  0x81   :  { %1881 = vperm.xlu1 %4016, %v1843_v5   ;;  %1876 = vperm.xlu0 %4015, %v1842_v6   ;;  %v2389_v5 = vld [vmem:[#allocation5 + $0x388] sm:$0xff]  ;;  %v2388_v6 = vld [vmem:[#allocation5 + $0x380] sm:$0xff] }
  0x85   :  { %1891 = vperm.xlu1 %4016, %v1845_v7   ;;  %1886 = vperm.xlu0 %4015, %v1844_v8  }
  0x89   :  { %1901 = vperm.xlu1 %4016, %v1847_v9   ;;  %1896 = vperm.xlu0 %4015, %v1846_v10   ;;  %v466_v9 = vld [vmem:[#allocation5 + $0x18] sm:$0xff]  ;;  %v465_v10 = vld [vmem:[#allocation5 + $0x10] sm:$0xff] }
  0x8d   :  { %1911 = vperm.xlu1 %4016, %v1849_v11   ;;  %1906 = vperm.xlu0 %4015, %v1848_v12  }
  0x91   :  { %1921 = vperm.xlu1 %4016, %v1851_v13   ;;  %1916 = vperm.xlu0 %4015, %v1850_v14   ;;  %v2391_v13 = vld [vmem:[#allocation5 + $0x398] sm:$0xff]  ;;  %v2390_v14 = vld [vmem:[#allocation5 + $0x390] sm:$0xff] }
  0x95   :  { %1931 = vperm.xlu1 %4016, %v1853_v15   ;;  %1926 = vperm.xlu0 %4015, %v1852_v16  }
  0x99   :  { %611 = vperm.xlu1 %4016, %v589_v17   ;;  %606 = vperm.xlu0 %4015, %v588_v18   ;;  %v468_v17 = vld [vmem:[#allocation5 + $0x28] sm:$0xff]  ;;  %v467_v18 = vld [vmem:[#allocation5 + $0x20] sm:$0xff] }
  0x9d   :  { %2136 = vperm.xlu1 %4016, %v2114_v19   ;;  %2131 = vperm.xlu0 %4015, %v2113_v20  }
  0xa1   :  { %621 = vperm.xlu1 %4016, %v591_v21   ;;  %616 = vperm.xlu0 %4015, %v590_v22   ;;  %v2393_v21 = vld [vmem:[#allocation5 + $0x3a8] sm:$0xff]  ;;  %v2392_v22 = vld [vmem:[#allocation5 + $0x3a0] sm:$0xff] }
  0xa5   :  { %2146 = vperm.xlu1 %4016, %v2116_v23   ;;  %2141 = vperm.xlu0 %4015, %v2115_v24  }
  0xa9   :  { %631 = vperm.xlu1 %4016, %v593_v25   ;;  %626 = vperm.xlu0 %4015, %v592_v26   ;;  %v470_v25 = vld [vmem:[#allocation5 + $0x38] sm:$0xff]  ;;  %v469_v26 = vld [vmem:[#allocation5 + $0x30] sm:$0xff] }
  0xad   :  { %2156 = vperm.xlu1 %4016, %v2118_v27   ;;  %2151 = vperm.xlu0 %4015, %v2117_v28  }
  0xb1   :  { %641 = vperm.xlu1 %4016, %v595_v29   ;;  %636 = vperm.xlu0 %4015, %v594_v30   ;;  %v2395_v29 = vld [vmem:[#allocation5 + $0x3b8] sm:$0xff]  ;;  %v2394_v30 = vld [vmem:[#allocation5 + $0x3b0] sm:$0xff] }
  0xb5   :  { %2166 = vperm.xlu1 %4016, %v2120_v31   ;;  %2161 = vperm.xlu0 %4015, %v2119_v32  }
  0xb8   :  { %v4303_v35 = vpop.permute.xlu1 %1316  ;;  %v4305_v36 = vpop.permute.xlu0 %1306 }
  0xb9   :  { %6004 = vst [vmem:[#allocation12_spill] sm:$0xff] %v4305_v36  ;;  %651 = vperm.xlu1 %4016, %v597_v33   ;;  %646 = vperm.xlu0 %4015, %v596_v34   ;;  %v472_v33 = vld [vmem:[#allocation5 + $0x48] sm:$0xff]  ;;  %v471_v34 = vld [vmem:[#allocation5 + $0x40] sm:$0xff] }
  0xbc   :  { %v4307_v39 = vpop.permute.xlu1 %1321  ;;  %v4309_v40 = vpop.permute.xlu0 %1311 }
  0xbd   :  { %6005 = vst [vmem:[#allocation13_spill] sm:$0xff] %v4309_v40  ;;  %2176 = vperm.xlu1 %4016, %v2122_v37   ;;  %2171 = vperm.xlu0 %4015, %v2121_v38  }
  0xc0   :  { %v4311_v43 = vpop.permute.xlu1 %1331  ;;  %v4313_v44 = vpop.permute.xlu0 %1326 }
  0xc1   :  { %661 = vperm.xlu1 %4016, %v599_v41   ;;  %656 = vperm.xlu0 %4015, %v598_v42   ;;  %v2397_v41 = vld [vmem:[#allocation5 + $0x3c8] sm:$0xff]  ;;  %v2396_v42 = vld [vmem:[#allocation5 + $0x3c0] sm:$0xff] }
  0xc4   :  { %v4315_v47 = vpop.permute.xlu1 %1341  ;;  %v4317_v48 = vpop.permute.xlu0 %1336 }
  0xc5   :  { %6006 = vst [vmem:[#allocation14_spill] sm:$0xff] %v4315_v47  ;;  %2186 = vperm.xlu1 %4016, %v2124_v45   ;;  %2181 = vperm.xlu0 %4015, %v2123_v46  }
  0xc8   :  { %v4319_v51 = vpop.permute.xlu1 %1351  ;;  %v4321_v52 = vpop.permute.xlu0 %1346 }
  0xc9   :  { %6007 = vst [vmem:[#allocation15_spill] sm:$0xff] %v4319_v51  ;;  %6008 = vst [vmem:[#allocation16_spill] sm:$0xff] %v4321_v52  ;;  %671 = vperm.xlu1 %4016, %v601_v49   ;;  %666 = vperm.xlu0 %4015, %v600_v50   ;;  %v474_v49 = vld [vmem:[#allocation5 + $0x58] sm:$0xff]  ;;  %v473_v50 = vld [vmem:[#allocation5 + $0x50] sm:$0xff] }
  0xcc   :  { %v4323_v55 = vpop.permute.xlu1 %1361  ;;  %v4325_v56 = vpop.permute.xlu0 %1356 }
  0xcd   :  { %6009 = vst [vmem:[#allocation17_spill] sm:$0xff] %v4323_v55  ;;  %6010 = vst [vmem:[#allocation18_spill] sm:$0xff] %v4325_v56  ;;  %2196 = vperm.xlu1 %4016, %v2126_v53   ;;  %2191 = vperm.xlu0 %4015, %v2125_v54  }
  0xd0   :  { %v4327_v59 = vpop.permute.xlu1 %1371  ;;  %v4329_v60 = vpop.permute.xlu0 %1366 }
  0xd1   :  { %6011 = vst [vmem:[#allocation19_spill] sm:$0xff] %v4329_v60  ;;  %681 = vperm.xlu1 %4016, %v603_v57   ;;  %676 = vperm.xlu0 %4015, %v602_v58   ;;  %v2399_v57 = vld [vmem:[#allocation5 + $0x3d8] sm:$0xff]  ;;  %v2398_v58 = vld [vmem:[#allocation5 + $0x3d0] sm:$0xff] }
  0xd4   :  { %v4331_v63 = vpop.permute.xlu1 %1381  ;;  %v4333_v0 = vpop.permute.xlu0 %1376 }
  0xd5   :  { %2206 = vperm.xlu1 %4016, %v2128_v61   ;;  %2201 = vperm.xlu0 %4015, %v2127_v62  }
  0xd8   :  { %v4335_v3 = vpop.permute.xlu1 %1586  ;;  %v4337_v4 = vpop.permute.xlu0 %1581 }
  0xd9   :  { %6012 = vst [vmem:[#allocation20_spill] sm:$0xff] %v4335_v3  ;;  %6013 = vst [vmem:[#allocation21_spill] sm:$0xff] %v4337_v4  ;;  %486 = vperm.xlu1 %4016, %v464_v1   ;;  %481 = vperm.xlu0 %4015, %v463_v2   ;;  %v476_v1 = vld [vmem:[#allocation5 + $0x68] sm:$0xff]  ;;  %v475_v2 = vld [vmem:[#allocation5 + $0x60] sm:$0xff] }
  0xdc   :  { %v4339_v7 = vpop.permute.xlu1 %1596  ;;  %v4341_v8 = vpop.permute.xlu0 %1591 }
  0xdd   :  { %6014 = vst [vmem:[#allocation22_spill] sm:$0xff] %v4339_v7  ;;  %6015 = vst [vmem:[#allocation23_spill] sm:$0xff] %v4341_v8  ;;  %2411 = vperm.xlu1 %4016, %v2389_v5   ;;  %2406 = vperm.xlu0 %4015, %v2388_v6  }
  0xe0   :  { %v4343_v11 = vpop.permute.xlu1 %1606  ;;  %v4345_v12 = vpop.permute.xlu0 %1601 }
  0xe1   :  { %6016 = vst [vmem:[#allocation24_spill] sm:$0xff] %v4343_v11  ;;  %6017 = vst [vmem:[#allocation25_spill] sm:$0xff] %v4345_v12  ;;  %496 = vperm.xlu1 %4016, %v466_v9   ;;  %491 = vperm.xlu0 %4015, %v465_v10   ;;  %v2401_v9 = vld [vmem:[#allocation5 + $0x3e8] sm:$0xff]  ;;  %v2400_v10 = vld [vmem:[#allocation5 + $0x3e0] sm:$0xff] }
  0xe4   :  { %v4347_v15 = vpop.permute.xlu1 %1616  ;;  %v4349_v16 = vpop.permute.xlu0 %1611 }
  0xe5   :  { %6018 = vst [vmem:[#allocation26_spill] sm:$0xff] %v4347_v15  ;;  %6019 = vst [vmem:[#allocation27_spill] sm:$0xff] %v4349_v16  ;;  %2421 = vperm.xlu1 %4016, %v2391_v13   ;;  %2416 = vperm.xlu0 %4015, %v2390_v14  }
  0xe8   :  { %v4351_v19 = vpop.permute.xlu1 %1626  ;;  %v4353_v20 = vpop.permute.xlu0 %1621 }
  0xe9   :  { %6020 = vst [vmem:[#allocation28_spill] sm:$0xff] %v4351_v19  ;;  %6021 = vst [vmem:[#allocation29_spill] sm:$0xff] %v4353_v20  ;;  %506 = vperm.xlu1 %4016, %v468_v17   ;;  %501 = vperm.xlu0 %4015, %v467_v18   ;;  %v478_v17 = vld [vmem:[#allocation5 + $0x78] sm:$0xff]  ;;  %v477_v18 = vld [vmem:[#allocation5 + $0x70] sm:$0xff] }
  0xec   :  { %v4355_v23 = vpop.permute.xlu1 %1636  ;;  %v4357_v24 = vpop.permute.xlu0 %1631 }
  0xed   :  { %6022 = vst [vmem:[#allocation30_spill] sm:$0xff] %v4355_v23  ;;  %6023 = vst [vmem:[#allocation31_spill] sm:$0xff] %v4357_v24  ;;  %2431 = vperm.xlu1 %4016, %v2393_v21   ;;  %2426 = vperm.xlu0 %4015, %v2392_v22   ;;  %v4025_v21 = vld [vmem:[#allocation7 + $0x10] sm:$0xff]  }
  0xee   :  { %3678 = vmatprep.subr.bf16.mxu0 %v4025_v21 }
  0xef   :  { %3679 = vmatpush3.bf16.msra.mxu0 %v4025_v21  ;;  %v4407_v21 = vld [vmem:[#allocation7 + $0x40] sm:$0xff]  }
  0xf0   :  { %v4359_v27 = vpop.permute.xlu1 %1646  ;;  %v4361_v28 = vpop.permute.xlu0 %1641  ;;  %6046 = vst [vmem:[#allocation54_spill] sm:$0xff] %v4407_v21 }
  0xf1   :  { %6024 = vst [vmem:[#allocation32_spill] sm:$0xff] %v4359_v27  ;;  %6025 = vst [vmem:[#allocation33_spill] sm:$0xff] %v4361_v28  ;;  %516 = vperm.xlu1 %4016, %v470_v25   ;;  %511 = vperm.xlu0 %4015, %v469_v26   ;;  %v4026_v26 = vld [vmem:[#allocation7 + $0x30] sm:$0xff]   ;;  %v4448_v28 = vld [vmem:[#allocation7] sm:$0xff]  }
  0xf2   :  { %3738 = vmatprep.subr.bf16.mxu1 %v4026_v26  ;;  %6054 = vst [vmem:[#allocation62_spill] sm:$0xff] %v4448_v28 }
  0xf3   :  { %3739 = vmatpush3.bf16.msra.mxu1 %v4026_v26 }
  0xf4   :  { %v4363_v31 = vpop.permute.xlu1 %1656  ;;  %v4365_v32 = vpop.permute.xlu0 %1651 }
  0xf5   :  { %6026 = vst [vmem:[#allocation34_spill] sm:$0xff] %v4363_v31  ;;  %6027 = vst [vmem:[#allocation35_spill] sm:$0xff] %v4365_v32  ;;  %2441 = vperm.xlu1 %4016, %v2395_v29   ;;  %2436 = vperm.xlu0 %4015, %v2394_v30   ;;  %v2403_v29 = vld [vmem:[#allocation5 + $0x3f8] sm:$0xff]  ;;  %v2402_v30 = vld [vmem:[#allocation5 + $0x3f0] sm:$0xff] }
  0xf6   :  { %v2668_v32 = vld [vmem:[#allocation5 + $0x428] sm:$0xff] }
  0xf8   :  { %v4367_v37 = vpop.permute.xlu1 %1861  ;;  %v4369_v38 = vpop.permute.xlu0 %1856 }
  0xf9   :  { %6028 = vst [vmem:[#allocation36_spill] sm:$0xff] %v4367_v37  ;;  %6029 = vst [vmem:[#allocation37_spill] sm:$0xff] %v4369_v38  ;;  %526 = vperm.xlu1 %4016, %v472_v33   ;;  %521 = vperm.xlu0 %4015, %v471_v34  }
  0xfc   :  { %v4371_v45 = vpop.permute.xlu1 %1871  ;;  %v4373_v46 = vpop.permute.xlu0 %1866 }
  0xfd   :  { %6030 = vst [vmem:[#allocation38_spill] sm:$0xff] %v4371_v45  ;;  %6031 = vst [vmem:[#allocation39_spill] sm:$0xff] %v4373_v46  ;;  %2451 = vperm.xlu1 %4016, %v2397_v41   ;;  %2446 = vperm.xlu0 %4015, %v2396_v42   ;;  %v1014_v41 = vld [vmem:[#allocation5 + $0x108] sm:$0xff]  ;;  %v1013_v42 = vld [vmem:[#allocation5 + $0x100] sm:$0xff] }
 0x100   :  { %v4375_v53 = vpop.permute.xlu1 %1881  ;;  %v4377_v54 = vpop.permute.xlu0 %1876 }
 0x101   :  { %6032 = vst [vmem:[#allocation40_spill] sm:$0xff] %v4375_v53  ;;  %6033 = vst [vmem:[#allocation41_spill] sm:$0xff] %v4377_v54  ;;  %536 = vperm.xlu1 %4016, %v474_v49   ;;  %531 = vperm.xlu0 %4015, %v473_v50   ;;  %v4027_v49 = vld [vmem:[#allocation7 + $0x18] sm:$0xff]  }
 0x102   :  { %3680 = vmatprep.subr.bf16.mxu0 %v4027_v49 }
 0x103   :  { %3681 = vmatpush3.bf16.msra.mxu0 %v4027_v49 }
 0x104   :  { %v4379_v61 = vpop.permute.xlu1 %1891  ;;  %v4381_v62 = vpop.permute.xlu0 %1886  ;;  %3698 = vmatprep.subr.bf16.mxu0 %v4448_v28  ;;  %v1027_v28 = vld [vmem:[#allocation5 + $0x170] sm:$0xff] }
 0x105   :  { %6034 = vst [vmem:[#allocation42_spill] sm:$0xff] %v4379_v61  ;;  %6035 = vst [vmem:[#allocation43_spill] sm:$0xff] %v4381_v62  ;;  %2461 = vperm.xlu1 %4016, %v2399_v57   ;;  %2456 = vperm.xlu0 %4015, %v2398_v58   ;;  %v2664_v58 = vld [vmem:[#allocation5 + $0x408] sm:$0xff] }
 0x108   :  { %v4383_v5 = vpop.permute.xlu1 %1901  ;;  %v4385_v6 = vpop.permute.xlu0 %1896 }
 0x109   :  { %6036 = vst [vmem:[#allocation44_spill] sm:$0xff] %v4383_v5  ;;  %6037 = vst [vmem:[#allocation45_spill] sm:$0xff] %v4385_v6  ;;  %546 = vperm.xlu1 %4016, %v476_v1   ;;  %541 = vperm.xlu0 %4015, %v475_v2   ;;  %v2663_v1 = vld [vmem:[#allocation5 + $0x400] sm:$0xff]  ;;  %v4028_v2 = vld [vmem:[#allocation7 + $0x38] sm:$0xff]  }
 0x10a   :  { %3740 = vmatprep.subr.bf16.mxu1 %v4028_v2  ;;  %v2669_v5 = vld [vmem:[#allocation5 + $0x430] sm:$0xff] }
 0x10b   :  { %3741 = vmatpush3.bf16.msra.mxu1 %v4028_v2 }
 0x10c   :  { %v4387_v13 = vpop.permute.xlu1 %1911  ;;  %v4389_v14 = vpop.permute.xlu0 %1906  ;;  %3758 = vmatprep.subr.bf16.mxu1 %v4407_v21 }
 0x10d   :  { %6038 = vst [vmem:[#allocation46_spill] sm:$0xff] %v4387_v13  ;;  %6039 = vst [vmem:[#allocation47_spill] sm:$0xff] %v4389_v14  ;;  %2471 = vperm.xlu1 %4016, %v2401_v9   ;;  %2466 = vperm.xlu0 %4015, %v2400_v10  }
 0x110   :  { %v4391_v22 = vpop.permute.xlu1 %1921  ;;  %v4393_v25 = vpop.permute.xlu0 %1916 }
 0x111   :  { %6040 = vst [vmem:[#allocation48_spill] sm:$0xff] %v4391_v22  ;;  %6041 = vst [vmem:[#allocation49_spill] sm:$0xff] %v4393_v25  ;;  %556 = vperm.xlu1 %4016, %v478_v17   ;;  %551 = vperm.xlu0 %4015, %v477_v18   ;;  %v1016_v17 = vld [vmem:[#allocation5 + $0x118] sm:$0xff]  ;;  %v1015_v18 = vld [vmem:[#allocation5 + $0x110] sm:$0xff] }
 0x112   :  { %v2667_v22 = vld [vmem:[#allocation5 + $0x420] sm:$0xff] }
 0x114   :  { %v4395_v33 = vpop.permute.xlu1 %1931  ;;  %v4397_v34 = vpop.permute.xlu0 %1926 }
 0x115   :  { %6042 = vst [vmem:[#allocation50_spill] sm:$0xff] %v4395_v33  ;;  %6043 = vst [vmem:[#allocation51_spill] sm:$0xff] %v4397_v34  ;;  %2481 = vperm.xlu1 %4016, %v2403_v29   ;;  %2476 = vperm.xlu0 %4015, %v2402_v30   ;;  %v2666_v30 = vld [vmem:[#allocation5 + $0x418] sm:$0xff] }
 0x118   :  { %v4399_v50 = vpop.permute.xlu1 %611  ;;  %v4401_v57 = vpop.permute.xlu0 %606 }
 0x119   :  { %6044 = vst [vmem:[#allocation52_spill] sm:$0xff] %v4399_v50  ;;  %6045 = vst [vmem:[#allocation53_spill] sm:$0xff] %v4401_v57  ;;  %1036 = vperm.xlu1 %4016, %v1014_v41   ;;  %1031 = vperm.xlu0 %4015, %v1013_v42   ;;  %v2665_v41 = vld [vmem:[#allocation5 + $0x410] sm:$0xff] }
 0x11c   :  { %v4403_v9 = vpop.permute.xlu1 %2136  ;;  %v4405_v10 = vpop.permute.xlu0 %2131 }
 0x11d   :  { %2686 = vperm.xlu1 %4016, %v2664_v58   ;;  %2681 = vperm.xlu0 %4015, %v2663_v1   ;;  %v1018_v58 = vld [vmem:[#allocation5 + $0x128] sm:$0xff]  ;;  %v1017_v1 = vld [vmem:[#allocation5 + $0x120] sm:$0xff] }
 0x120   :  { %v4409_v26 = vpop.permute.xlu1 %621  ;;  %v4411_v29 = vpop.permute.xlu0 %616 }
 0x121   :  { %6047 = vst [vmem:[#allocation55_spill] sm:$0xff] %v4409_v26  ;;  %6048 = vst [vmem:[#allocation56_spill] sm:$0xff] %v4411_v29  ;;  %1046 = vperm.xlu1 %4016, %v1016_v17   ;;  %1041 = vperm.xlu0 %4015, %v1015_v18  }
 0x124   :  { %v4414_v42 = vpop.permute.xlu1 %2146  ;;  %v4416_v49 = vpop.permute.xlu0 %2141 }
 0x125   :  { %2696 = vperm.xlu1 %4016, %v2666_v30   ;;  %2691 = vperm.xlu0 %4015, %v2665_v41   ;;  %v1020_v30 = vld [vmem:[#allocation5 + $0x138] sm:$0xff]  ;;  %v1019_v41 = vld [vmem:[#allocation5 + $0x130] sm:$0xff] }
 0x128   :  { %v4418_v2 = vpop.permute.xlu1 %631  ;;  %v4420_v31 = vpop.permute.xlu0 %626 }
 0x129   :  { %6049 = vst [vmem:[#allocation57_spill] sm:$0xff] %v4418_v2  ;;  %6050 = vst [vmem:[#allocation58_spill] sm:$0xff] %v4420_v31  ;;  %1056 = vperm.xlu1 %4016, %v1018_v58   ;;  %1051 = vperm.xlu0 %4015, %v1017_v1  }
 0x12c   :  { %v4422_v17 = vpop.permute.xlu1 %2156  ;;  %v4424_v18 = vpop.permute.xlu0 %2151 }
 0x12d   :  { %6051 = vst [vmem:[#allocation59_spill] sm:$0xff] %v4422_v17  ;;  %2706 = vperm.xlu1 %4016, %v2668_v32   ;;  %2701 = vperm.xlu0 %4015, %v2667_v22   ;;  %v4426_v34 = vpop.f32.mrb[0].mxu0  ;;  %v2670_v22 = vld [vmem:[#allocation5 + $0x438] sm:$0xff] }
 0x12e   :  { %v4428_v13 = vpop.f32.mrb[1].mxu0  ;;  %v309_v33 = vmul.f32 %v4426_v34, %v4426_v34  ;;  %v272_v24 = vsel %vm268_vm0, %v4426_v34, 0.0 }
 0x12f   :  { %v307_v58 = vmul.f32 %v4428_v13, %v4428_v13  ;;  %v4436_v1 = vpop.f32.mrb[2].mxu0  ;;  %v269_v6 = vsel %vm268_vm0, %v4428_v13, 0.0 }
 0x130   :  { %v4430_v25 = vpop.permute.xlu1 %641  ;;  %v4432_v14 = vpop.permute.xlu0 %636  ;;  %v310_v62 = vmul.f32 %v4436_v1, %v4436_v1  ;;  %v326_v11 = vsel %vm268_vm0, %v309_v33, 0.0 }
 0x131   :  { %6052 = vst [vmem:[#allocation60_spill] sm:$0xff] %v4430_v25  ;;  %6053 = vst [vmem:[#allocation61_spill] sm:$0xff] %v4432_v14  ;;  %1066 = vperm.xlu1 %4016, %v1020_v30   ;;  %1061 = vperm.xlu0 %4015, %v1019_v41   ;;  %v4438_v32 = vpop.f32.mrb[3].mxu0  ;;  %v323_v19 = vsel %vm268_vm0, %v307_v58, 0.0  ;;  %v274_v58 = vsel %vm268_vm0, %v4436_v1, 0.0 }
 0x132   :  { %v270_v27 = vsel %vm268_vm0, %v4438_v32, 0.0  ;;  %v308_v61 = vmul.f32 %v4438_v32, %v4438_v32 }
 0x133   :  { %v271_v30 = vadd.f32 %v270_v27, %v269_v6  ;;  %v1022_v27 = vld [vmem:[#allocation5 + $0x148] sm:$0xff]  ;;  %v1021_v6 = vld [vmem:[#allocation5 + $0x140] sm:$0xff] }
 0x134   :  { %v4450_v41 = vpop.permute.xlu1 %2166  ;;  %v4452_v23 = vpop.permute.xlu0 %2161  ;;  %v324_v20 = vsel %vm268_vm0, %v308_v61, 0.0 }
 0x135   :  { %6055 = vst [vmem:[#allocation63_spill] sm:$0xff] %v4450_v41  ;;  %6056 = vst [vmem:[#allocation64_spill] sm:$0xff] %v4452_v23  ;;  %2716 = vperm.xlu1 %4016, %v2670_v22   ;;  %2711 = vperm.xlu0 %4015, %v2669_v5   ;;  %v273_v53 = vadd.f32 %v272_v24, %v271_v30  ;;  %v325_v15 = vadd.f32 %v324_v20, %v323_v19  ;;  %v4460_v16 = vpop.f32.mrb[4].mxu0  ;;  %v328_v5 = vsel %vm268_vm0, %v310_v62, 0.0 }
 0x136   :  { %v4466_v12 = vpop.f32.mrb[5].mxu0  ;;  %v313_v7 = vmul.f32 %v4460_v16, %v4460_v16 }
 0x137   :  { %v327_v45 = vadd.f32 %v326_v11, %v325_v15  ;;  %v275_v54 = vadd.f32 %v274_v58, %v273_v53  ;;  %v276_v61 = vsel %vm268_vm0, %v4466_v12, 0.0  ;;  %v311_v19 = vmul.f32 %v4466_v12, %v4466_v12  ;;  %v4477_v33 = vpop.f32.mrb[6].mxu0  ;;  %v2672_v53 = vld [vmem:[#allocation5 + $0x448] sm:$0xff]  ;;  %v2671_v58 = vld [vmem:[#allocation5 + $0x440] sm:$0xff] }
 0x138   :  { %v4472_v20 = vpop.permute.xlu1 %651  ;;  %v4474_v24 = vpop.permute.xlu0 %646 }
 0x139   :  { %6057 = vst [vmem:[#allocation65_spill] sm:$0xff] %v4472_v20  ;;  %6058 = vst [vmem:[#allocation66_spill] sm:$0xff] %v4474_v24  ;;  %1076 = vperm.xlu1 %4016, %v1022_v27   ;;  %1071 = vperm.xlu0 %4015, %v1021_v6   ;;  %v277_v22 = vadd.f32 %v276_v61, %v275_v54  ;;  %v329_v30 = vadd.f32 %v328_v5, %v327_v45  ;;  %v330_v11 = vsel %vm268_vm0, %v311_v19, 0.0  ;;  %v4480_v15 = vpop.f32.mrb[7].mxu0 }
 0x13a   :  { %v278_v8 = vsel %vm268_vm0, %v4480_v15, 0.0  ;;  %v312_v62 = vmul.f32 %v4480_v15, %v4480_v15  ;;  %v280_v54 = vsel %vm268_vm0, %v4460_v16, 0.0  ;;  %v314_v61 = vmul.f32 %v4477_v33, %v4477_v33 }
 0x13b   :  { %v331_v46 = vadd.f32 %v330_v11, %v329_v30  ;;  %v279_v27 = vadd.f32 %v278_v8, %v277_v22  ;;  %v1024_v30 = vld [vmem:[#allocation5 + $0x158] sm:$0xff]  ;;  %v1023_v8 = vld [vmem:[#allocation5 + $0x150] sm:$0xff]  ;;  %v334_v22 = vsel %vm268_vm0, %v313_v7, 0.0  ;;  %v282_v11 = vsel %vm268_vm0, %v4477_v33, 0.0 }
 0x13c   :  { %v4488_v6 = vpop.permute.xlu1 %2176  ;;  %v4490_v45 = vpop.permute.xlu0 %2171  ;;  %v332_v19 = vsel %vm268_vm0, %v312_v62, 0.0 }
 0x13d   :  { %6059 = vst [vmem:[#allocation67_spill] sm:$0xff] %v4488_v6  ;;  %6060 = vst [vmem:[#allocation68_spill] sm:$0xff] %v4490_v45  ;;  %2726 = vperm.xlu1 %4016, %v2672_v53   ;;  %2721 = vperm.xlu0 %4015, %v2671_v58   ;;  %v281_v5 = vadd.f32 %v280_v54, %v279_v27  ;;  %v333_v37 = vadd.f32 %v332_v19, %v331_v46  ;;  %v4497_v3 = vpop.f32.mrb[8].mxu0  ;;  %v336_v27 = vsel %vm268_vm0, %v314_v61, 0.0 }
 0x13e   :  { %v4502_v4 = vpop.f32.mrb[9].mxu0  ;;  %v317_v60 = vmul.f32 %v4497_v3, %v4497_v3 }
 0x13f   :  { %v335_v38 = vadd.f32 %v334_v22, %v333_v37  ;;  %v283_v55 = vadd.f32 %v282_v11, %v281_v5  ;;  %v284_v62 = vsel %vm268_vm0, %v4502_v4, 0.0  ;;  %v315_v53 = vmul.f32 %v4502_v4, %v4502_v4  ;;  %v4513_v7 = vpop.f32.mrb[10].mxu0  ;;  %v2674_v22 = vld [vmem:[#allocation5 + $0x458] sm:$0xff]  ;;  %v2673_v11 = vld [vmem:[#allocation5 + $0x450] sm:$0xff] }
 0x140   :  { %v4508_v46 = vpop.permute.xlu1 %661  ;;  %v4510_v58 = vpop.permute.xlu0 %656  ;;  %6063 = vst [vmem:[#allocation71_spill] sm:$0xff] %v4513_v7 }
 0x141   :  { %6061 = vst [vmem:[#allocation69_spill] sm:$0xff] %v4508_v46  ;;  %6062 = vst [vmem:[#allocation70_spill] sm:$0xff] %v4510_v58  ;;  %1086 = vperm.xlu1 %4016, %v1024_v30   ;;  %1081 = vperm.xlu0 %4015, %v1023_v8   ;;  %v285_v54 = vadd.f32 %v284_v62, %v283_v55  ;;  %v337_v19 = vadd.f32 %v336_v27, %v335_v38  ;;  %v338_v37 = vsel %vm268_vm0, %v315_v53, 0.0  ;;  %v4516_v5 = vpop.f32.mrb[11].mxu0 }
 0x142   :  { %v286_v46 = vsel %vm268_vm0, %v4516_v5, 0.0  ;;  %v316_v61 = vmul.f32 %v4516_v5, %v4516_v5  ;;  %v288_v38 = vsel %vm268_vm0, %v4497_v3, 0.0  ;;  %v318_v62 = vmul.f32 %v4513_v7, %v4513_v7 }
 0x143   :  { %v339_v58 = vadd.f32 %v338_v37, %v337_v19  ;;  %v287_v30 = vadd.f32 %v286_v46, %v285_v54  ;;  %v1026_v19 = vld [vmem:[#allocation5 + $0x168] sm:$0xff]  ;;  %v1025_v46 = vld [vmem:[#allocation5 + $0x160] sm:$0xff]  ;;  %v342_v54 = vsel %vm268_vm0, %v317_v60, 0.0  ;;  %v290_v37 = vsel %vm268_vm0, %v4513_v7, 0.0  ;;  %v1028_v7 = vld [vmem:[#allocation5 + $0x178] sm:$0xff] }
 0x144   :  { %v4524_v8 = vpop.permute.xlu1 %2186  ;;  %v4526_v55 = vpop.permute.xlu0 %2181  ;;  %v340_v53 = vsel %vm268_vm0, %v316_v61, 0.0 }
 0x145   :  { %6064 = vst [vmem:[#allocation72_spill] sm:$0xff] %v4524_v8  ;;  %6065 = vst [vmem:[#allocation73_spill] sm:$0xff] %v4526_v55  ;;  %2736 = vperm.xlu1 %4016, %v2674_v22   ;;  %2731 = vperm.xlu0 %4015, %v2673_v11   ;;  %v289_v27 = vadd.f32 %v288_v38, %v287_v30  ;;  %v341_v21 = vadd.f32 %v340_v53, %v339_v58  ;;  %v4533_v20 = vpop.f32.mrb[12].mxu0  ;;  %v344_v30 = vsel %vm268_vm0, %v318_v62, 0.0 }
 0x146   :  { %v4538_v55 = vpop.f32.mrb[13].mxu0  ;;  %v321_v25 = vmul.f32 %v4533_v20, %v4533_v20 }
 0x147   :  { %v343_v8 = vadd.f32 %v342_v54, %v341_v21  ;;  %v291_v24 = vadd.f32 %v290_v37, %v289_v27  ;;  %v292_v61 = vsel %vm268_vm0, %v4538_v55, 0.0  ;;  %v319_v22 = vmul.f32 %v4538_v55, %v4538_v55  ;;  %v4549_v60 = vpop.f32.mrb[14].mxu0  ;;  %v2676_v54 = vld [vmem:[#allocation5 + $0x468] sm:$0xff]  ;;  %v2675_v37 = vld [vmem:[#allocation5 + $0x460] sm:$0xff] }
 0x148   :  { %v4544_v58 = vpop.permute.xlu1 %671  ;;  %v4546_v11 = vpop.permute.xlu0 %666 }
 0x149   :  { %6066 = vst [vmem:[#allocation74_spill] sm:$0xff] %v4544_v58  ;;  %6067 = vst [vmem:[#allocation75_spill] sm:$0xff] %v4546_v11  ;;  %1096 = vperm.xlu1 %4016, %v1026_v19   ;;  %1091 = vperm.xlu0 %4015, %v1025_v46   ;;  %v293_v38 = vadd.f32 %v292_v61, %v291_v24  ;;  %v345_v53 = vadd.f32 %v344_v30, %v343_v8  ;;  %v346_v21 = vsel %vm268_vm0, %v319_v22, 0.0  ;;  %v4552_v27 = vpop.f32.mrb[15].mxu0 }
 0x14a   :  { %v294_v11 = vsel %vm268_vm0, %v4552_v27, 0.0  ;;  %v320_v62 = vmul.f32 %v4552_v27, %v4552_v27  ;;  %v296_v8 = vsel %vm268_vm0, %v4533_v20, 0.0  ;;  %v322_v61 = vmul.f32 %v4549_v60, %v4549_v60 }
 0x14b   :  { %v347_v58 = vadd.f32 %v346_v21, %v345_v53  ;;  %v295_v19 = vadd.f32 %v294_v11, %v293_v38  ;;  %v350_v11 = vsel %vm268_vm0, %v321_v25, 0.0  ;;  %v298_v38 = vsel %vm268_vm0, %v4549_v60, 0.0 }
 0x14c   :  { %v4560_v46 = vpop.permute.xlu1 %2196  ;;  %v4562_v24 = vpop.permute.xlu0 %2191  ;;  %v348_v22 = vsel %vm268_vm0, %v320_v62, 0.0  ;;  %v352_v6 = vsel %vm268_vm0, %v322_v61, 0.0  ;;  %v2677_v62 = vld [vmem:[#allocation5 + $0x470] sm:$0xff] }
 0x14d   :  { %2746 = vperm.xlu1 %4016, %v2676_v54   ;;  %2741 = vperm.xlu0 %4015, %v2675_v37   ;;  %v297_v30 = vadd.f32 %v296_v8, %v295_v19  ;;  %v349_v14 = vadd.f32 %v348_v22, %v347_v58  ;;  %v2678_v58 = vld [vmem:[#allocation5 + $0x478] sm:$0xff] }
 0x14f   :  { %v299_v53 = vadd.f32 %v298_v38, %v297_v30  ;;  %v351_v21 = vadd.f32 %v350_v11, %v349_v14 }
 0x150   :  { %v4572_v45 = vpop.permute.xlu1 %681  ;;  %v4574_v51 = vpop.permute.xlu0 %676 }
 0x151   :  { %1106 = vperm.xlu1 %4016, %v1028_v7   ;;  %1101 = vperm.xlu0 %4015, %v1027_v28   ;;  %v300_v54 = vrot.slane %v299_v53, 4  ;;  %v353_v37 = vadd.f32 %v352_v6, %v351_v21 }
 0x153   :  { %v301_v19 = vadd.f32 %v300_v54, %v299_v53  ;;  %v354_v8 = vrot.slane %v353_v37, 4 }
 0x154   :  { %v4577_v25 = vpop.permute.xlu1 %2206  ;;  %v4579_v22 = vpop.permute.xlu0 %2201 }
 0x155   :  { %2756 = vperm.xlu1 %4016, %v2678_v58   ;;  %2751 = vperm.xlu0 %4015, %v2677_v62   ;;  %v302_v14 = vrot.slane %v301_v19, 2  ;;  %v355_v30 = vadd.f32 %v354_v8, %v353_v37 }
 0x157   :  { %v303_v11 = vadd.f32 %v302_v14, %v301_v19  ;;  %v356_v38 = vrot.slane %v355_v30, 2 }
 0x158   :  { %v4581_v56 = vpop.permute.xlu1 %486  ;;  %v4583_v7 = vpop.permute.xlu0 %481 }
 0x159   :  { %v304_v28 = vrot.slane %v303_v11, 1  ;;  %v357_v6 = vadd.f32 %v356_v38, %v355_v30  ;;  %v369_v30 = vlaneseq }
 0x15b   :  { %v305_v61 = vadd.f32 %v304_v28, %v303_v11  ;;  %v358_v21 = vrot.slane %v357_v6, 1  ;;  %v4601_v28 = vshrl.u32 %v369_v30, 7  ;;  %v267_v30 = vld [vmem:[%s5933_s6] sm:$0x1] }
 0x15c   :  { %v4585_v53 = vpop.permute.xlu1 %2411  ;;  %v4587_v54 = vpop.permute.xlu0 %2406 }
 0x15d   :  { %v306_v40 = vmul.f32 0.0078125, %v305_v61  ;;  %v359_v36 = vadd.f32 %v358_v21, %v357_v6  ;;  %v266_v61 = vld [vmem:[%s5932_s5] sm:$0x1]  ;;  %v4611_v21 = vsub.s32 0, %v4601_v28  ;;  %vm446_vm1 = vcmp.lt.s32.totalorder %v4601_v28, 1 }
 0x15e   :  { %vm995_vm2 = vcmp.lt.s32.totalorder %v4601_v28, 7 }
 0x15f   :  { %v360_v58 = vmul.f32 0.0078125, %v359_v36  ;;  %v361_v62 = vmul.f32 %v306_v40, %v306_v40  ;;  %6068 = vst [vmem:[#allocation76_spill] sm:$0xff] %v4611_v21 }
 0x160   :  { %v4589_v2 = vpop.permute.xlu1 %496  ;;  %v4591_v37 = vpop.permute.xlu0 %491 }
 0x161   :  { %v362_v19 = vsub.f32 %v360_v58, %v361_v62 }
 0x163   :  { %v363_v8 = vadd.f32 1e-05, %v362_v19 }
 0x164   :  { %v4593_v14 = vpop.permute.xlu1 %2421  ;;  %v4595_v31 = vpop.permute.xlu0 %2416 }
 0x165   :  { %4045 = vrsqrt.f32 %v363_v8 }
 0x168   :  { %v4597_v11 = vpop.permute.xlu1 %506  ;;  %v4599_v38 = vpop.permute.xlu0 %501 }
 0x16c   :  { %v4603_v36 = vpop.permute.xlu1 %2431  ;;  %v4605_v6 = vpop.permute.xlu0 %2426 }
 0x16f   :  { %v4046_v58 = vpop.eup %4045 }
 0x170   :  { %v4613_v62 = vpop.permute.xlu1 %516  ;;  %v4615_v19 = vpop.permute.xlu0 %511  ;;  %v365_v8 = vmul.f32 %v4046_v58, %v266_v61 }
 0x172   :  { %v366_v26 = vmul.f32 %v365_v8, %v306_v40  ;;  %v4621_v29 = vrot.slane %v365_v8, %v4611_v21 }
 0x174   :  { %v4624_v23 = vpop.permute.xlu1 %2441  ;;  %v4626_v47 = vpop.permute.xlu0 %2436  ;;  %v367_v41 = vsub.f32 %v267_v30, %v366_v26  ;;  %v387_v52 = vmul.f32 %v4621_v29, %v4552_v27  ;;  %v388_v61 = vmul.f32 %v4533_v20, %v4621_v29  ;;  %v386_v58 = vmul.f32 %v4621_v29, %v4538_v55 }
 0x175   :  { %v374_v40 = vmul.f32 %v4621_v29, %v4428_v13  ;;  %v389_v8 = vmul.f32 %v4549_v60, %v4621_v29  ;;  %v376_v50 = vmul.f32 %v4426_v34, %v4621_v29  ;;  %v375_v26 = vmul.f32 %v4621_v29, %v4438_v32 }
 0x176   :  { %v4643_v27 = vrot.slane %v367_v41, %v4611_v21  ;;  %v378_v20 = vmul.f32 %v4621_v29, %v4466_v12  ;;  %v4649_v55 = vmul.f32 %v4436_v1, %v4621_v29  ;;  %v4653_v13 = vmul.f32 %v4460_v16, %v4621_v29 }
 0x177   :  { %v4657_v34 = vmul.f32 %v4621_v29, %v4480_v15  ;;  %v4661_v32 = vmul.f32 %v4621_v29, %v4502_v4  ;;  %v4665_v41 = vmul.f32 %v4477_v33, %v4621_v29  ;;  %v4673_v16 = vmul.f32 %v4497_v3, %v4621_v29 }
 0x178   :  { %v4667_v12 = vpop.permute.xlu1 %526  ;;  %v4669_v1 = vpop.permute.xlu0 %521  ;;  %v409_v60 = vadd.f32 %v4643_v27, %v387_v52  ;;  %v410_v15 = vadd.f32 %v4643_v27, %v388_v61  ;;  %v408_v30 = vadd.f32 %v4643_v27, %v386_v58  ;;  %v396_v4 = vadd.f32 %v4643_v27, %v374_v40 }
 0x179   :  { %6069 = vst [vmem:[#allocation77_spill] sm:$0xff] %v4667_v12  ;;  %6070 = vst [vmem:[#allocation78_spill] sm:$0xff] %v4669_v1  ;;  %v411_v21 = vadd.f32 %v4643_v27, %v389_v8  ;;  %v398_v33 = vadd.f32 %v4643_v27, %v376_v50  ;;  %v397_v12 = vadd.f32 %v4643_v27, %v375_v26 }
 0x17a   :  { %v400_v1 = vadd.f32 %v4643_v27, %v378_v20  ;;  %v4683_v57 = vmax.f32 %v409_v60, 0.0  ;;  %v4685_v3 = vmax.f32 %v410_v15, 0.0  ;;  %v4687_v17 = vmax.f32 %v408_v30, 0.0 }
 0x17b   :  { %v4689_v52 = vmax.f32 %v396_v4, 0.0  ;;  %v4691_v61 = vmax.f32 %v411_v21, 0.0  ;;  %v4693_v58 = vmax.f32 %v398_v33, 0.0  ;;  %v4695_v40 = vmax.f32 %v397_v12, 0.0 }
 0x17c   :  { %6071 = vst [vmem:[#allocation79_spill] sm:$0xff] %v4683_v57  ;;  %6072 = vst [vmem:[#allocation80_spill] sm:$0xff] %v4685_v3  ;;  %v4697_v8 = vmax.f32 %v400_v1, 0.0  ;;  %v4699_v50 = vpop.permute.xlu1 %2451  ;;  %v4701_v26 = vpop.permute.xlu0 %2446  ;;  %v441_v20 = vrot.slane %v4683_v57, 7  ;;  %v442_v60 = vrot.slane %v4685_v3, 7  ;;  %v5950_v15 = vrot.slane %v4687_v17, 7 }
 0x17d   :  { %6073 = vst [vmem:[#allocation81_spill] sm:$0xff] %v4687_v17  ;;  %6074 = vst [vmem:[#allocation82_spill] sm:$0xff] %v4701_v26  ;;  %v4708_v21 = vmul.f32 %v4572_v45, %v4685_v3  ;;  %v4712_v12 = vmul.f32 %v4574_v51, %v4683_v57  ;;  %v428_v1 = vrot.slane %v4689_v52, 7  ;;  %v443_v30 = vrot.slane %v4691_v61, 7 }
 0x17e   :  { %v4718_v4 = vmul.f32 %v4585_v53, %v4693_v58  ;;  %v4722_v33 = vsel %vm446_vm1, %v441_v20, %v442_v60  ;;  %v4728_v45 = vsel %vm446_vm1, %v5950_v15, %v441_v20  ;;  %v4732_v51 = vmul.f32 %v4587_v54, %v4695_v40 }
 0x17f   :  { %6075 = vst [vmem:[#allocation83_spill] sm:$0xff] %v4712_v12  ;;  %6077 = vst [vmem:[#allocation85_spill] sm:$0xff] %v4728_v45  ;;  %v429_v57 = vrot.slane %v4695_v40, 7  ;;  %v4737_v53 = vmul.f32 %v4333_v0, %v4722_v33  ;;  %v4741_v3 = vmul.f32 %v4560_v46, %v4722_v33  ;;  %v4745_v17 = vmul.f32 %v4327_v59, %v4728_v45 }
 0x180   :  { %6076 = vst [vmem:[#allocation84_spill] sm:$0xff] %v4718_v4  ;;  %6078 = vst [vmem:[#allocation86_spill] sm:$0xff] %v4732_v51  ;;  %v4749_v20 = vmul.f32 %v4562_v24, %v4728_v45  ;;  %v4751_v54 = vpop.permute.xlu1 %536  ;;  %v4753_v15 = vpop.permute.xlu0 %531  ;;  %v4759_v26 = vsel %vm446_vm1, %v443_v30, %v428_v1  ;;  %v447_v46 = vsel %vm446_vm1, %v442_v60, %v443_v30  ;;  %v430_v30 = vrot.slane %v4693_v58, 7 }
 0x181   :  { %6079 = vst [vmem:[#allocation87_spill] sm:$0xff] %v4741_v3  ;;  %6080 = vst [vmem:[#allocation88_spill] sm:$0xff] %v4745_v17  ;;  %v4769_v17 = vmul.f32 %v4577_v25, %v4759_v26  ;;  %v4772_v45 = vmul.f32 %v4331_v63, %v447_v46  ;;  %v4775_v0 = vmul.f32 %v4579_v22, %v447_v46 }
 0x182   :  { %6081 = vst [vmem:[#allocation89_spill] sm:$0xff] %v4749_v20  ;;  %v4779_v12 = vmul.f32 %v4581_v56, %v4759_v26  ;;  %v4782_v60 = vmul.f32 %v4583_v7, %v447_v46  ;;  %v4787_v59 = vsel %vm446_vm1, %v428_v1, %v429_v57  ;;  %v460_v24 = vsel %vm446_vm1, %v429_v57, %v430_v30 }
 0x183   :  { %6082 = vst [vmem:[#allocation90_spill] sm:$0xff] %v4769_v17  ;;  %6083 = vst [vmem:[#allocation91_spill] sm:$0xff] %v4775_v0  ;;  %v4795_v22 = vmul.f32 %v4591_v37, %v4787_v59  ;;  %v4799_v56 = vmul.f32 %v4405_v10, %v4787_v59  ;;  %v4811_v25 = vmul.f32 %v4593_v14, %v4697_v8  ;;  %v432_v1 = vrot.slane %v4697_v8, 7 }
 0x184   :  { %v4801_v7 = vpop.permute.xlu1 %2461  ;;  %v4803_v46 = vpop.permute.xlu0 %2456  ;;  %v399_v37 = vadd.f32 %v4643_v27, %v4649_v55  ;;  %v4816_v10 = vmul.f32 %v4589_v2, %v460_v24  ;;  %v4819_v63 = vmul.f32 %v4303_v35, %v460_v24  ;;  %v4822_v51 = vmul.f32 %v4403_v9, %v460_v24 }
 0x185   :  { %6084 = vst [vmem:[#allocation92_spill] sm:$0xff] %v4795_v22  ;;  %6085 = vst [vmem:[#allocation93_spill] sm:$0xff] %v4799_v56  ;;  %v402_v57 = vadd.f32 %v4643_v27, %v4653_v13  ;;  %v401_v14 = vadd.f32 %v4643_v27, %v4657_v34  ;;  %v404_v2 = vadd.f32 %v4643_v27, %v4661_v32  ;;  %v6133_v22 = vld [vmem:[#allocation62_spill] sm:$0xff] }
 0x186   :  { %6086 = vst [vmem:[#allocation94_spill] sm:$0xff] %v4811_v25  ;;  %6087 = vst [vmem:[#allocation95_spill] sm:$0xff] %v4816_v10  ;;  %v4825_v4 = vmax.f32 %v399_v37, 0.0  ;;  %v403_v55 = vadd.f32 %v4643_v27, %v4665_v41  ;;  %v406_v24 = vadd.f32 %v4643_v27, %v4673_v16  ;;  %v383_v16 = vmul.f32 %v4621_v29, %v4516_v5 }
 0x187   :  { %6088 = vst [vmem:[#allocation96_spill] sm:$0xff] %v4822_v51  ;;  %v4850_v35 = vmax.f32 %v402_v57, 0.0  ;;  %v4852_v0 = vmax.f32 %v401_v14, 0.0  ;;  %v4854_v9 = vmax.f32 %v404_v2, 0.0 }
 0x188   :  { %v4841_v37 = vpop.permute.xlu1 %546  ;;  %v4843_v13 = vpop.permute.xlu0 %541  ;;  %v4847_v34 = vmul.f32 %v4595_v31, %v4825_v4  ;;  %v431_v32 = vrot.slane %v4825_v4, 7  ;;  %v4856_v41 = vmax.f32 %v403_v55, 0.0  ;;  %v4858_v17 = vmax.f32 %v406_v24, 0.0 }
 0x189   :  { %v4870_v14 = vmul.f32 %v4603_v36, %v4850_v35 }
 0x18a   :  { %6089 = vst [vmem:[#allocation97_spill] sm:$0xff] %v4847_v34  ;;  %v458_v31 = vsel %vm446_vm1, %v431_v32, %v432_v1  ;;  %v459_v57 = vsel %vm446_vm1, %v430_v30, %v431_v32  ;;  %v4904_v32 = vmul.f32 %v4624_v23, %v4854_v9 }
 0x18b   :  { %6090 = vst [vmem:[#allocation98_spill] sm:$0xff] %v4870_v14  ;;  %v4873_v2 = vmul.f32 %v4597_v11, %v458_v31  ;;  %v4876_v55 = vmul.f32 %v4313_v44, %v458_v31  ;;  %v4879_v5 = vmul.f32 %v4414_v42, %v458_v31  ;;  %v4882_v24 = vmul.f32 %v4599_v38, %v459_v57  ;;  %v6105_v14 = vld [vmem:[#allocation52_spill] sm:$0xff] }
 0x18c   :  { %v4884_v20 = vpop.permute.xlu1 %2471  ;;  %v4886_v34 = vpop.permute.xlu0 %2466  ;;  %v4889_v30 = vmul.f32 %v4307_v39, %v459_v57  ;;  %v4892_v36 = vmul.f32 %v4416_v49, %v459_v57  ;;  %v4896_v44 = vmul.f32 %v4605_v6, %v4852_v0  ;;  %v433_v42 = vrot.slane %v4852_v0, 7  ;;  %6096 = vst [vmem:[#allocation104_spill] sm:$0xff] %v4904_v32  ;;  %v6104_v32 = vld [vmem:[#allocation53_spill] sm:$0xff] }
 0x18d   :  { %6091 = vst [vmem:[#allocation99_spill] sm:$0xff] %v4873_v2  ;;  %6092 = vst [vmem:[#allocation100_spill] sm:$0xff] %v4879_v5  ;;  %v434_v38 = vrot.slane %v4850_v35, 7  ;;  %v4908_v39 = vmul.f32 %v4626_v47, %v4856_v41  ;;  %v685_v3 = vmul.f32 %v6105_v14, %v4689_v52  ;;  %v6114_v14 = vld [vmem:[#allocation64_spill] sm:$0xff] }
 0x18e   :  { %6093 = vst [vmem:[#allocation101_spill] sm:$0xff] %v4882_v24  ;;  %6094 = vst [vmem:[#allocation102_spill] sm:$0xff] %v4892_v36  ;;  %v457_v57 = vsel %vm446_vm1, %v432_v1, %v433_v42 }
 0x18f   :  { %6095 = vst [vmem:[#allocation103_spill] sm:$0xff] %v4896_v44  ;;  %6097 = vst [vmem:[#allocation105_spill] sm:$0xff] %v4908_v39  ;;  %v456_v23 = vsel %vm446_vm1, %v433_v42, %v434_v38  ;;  %v4921_v11 = vmul.f32 %v4615_v19, %v457_v57  ;;  %v4924_v47 = vmul.f32 %v4311_v43, %v457_v57  ;;  %v6101_v42 = vld [vmem:[#allocation59_spill] sm:$0xff]  ;;  %v435_v19 = vrot.slane %v4856_v41, 7  ;;  %v6108_v43 = vld [vmem:[#allocation16_spill] sm:$0xff] }
 0x190   :  { %v4927_v49 = vmul.f32 %v4424_v18, %v457_v57  ;;  %v4929_v25 = vpop.permute.xlu1 %556  ;;  %v4931_v6 = vpop.permute.xlu0 %551  ;;  %v4934_v31 = vmul.f32 %v4613_v62, %v456_v23  ;;  %v4937_v1 = vmul.f32 %v4317_v48, %v456_v23  ;;  %v4940_v44 = vmul.f32 %v6101_v42, %v456_v23  ;;  %v6106_v23 = vld [vmem:[#allocation77_spill] sm:$0xff] }
 0x191   :  { %6098 = vst [vmem:[#allocation106_spill] sm:$0xff] %v4921_v11  ;;  %v436_v57 = vrot.slane %v4854_v9, 7  ;;  %v4950_v62 = vmul.f32 %v4699_v50, %v4858_v17  ;;  %v405_v42 = vadd.f32 %v4643_v27, %v383_v16  ;;  %v455_v39 = vsel %vm446_vm1, %v434_v38, %v435_v19  ;;  %v6111_v38 = vld [vmem:[#allocation78_spill] sm:$0xff] }
 0x192   :  { %6099 = vst [vmem:[#allocation107_spill] sm:$0xff] %v4927_v49  ;;  %6100 = vst [vmem:[#allocation108_spill] sm:$0xff] %v4934_v31  ;;  %v684_v50 = vmul.f32 %v6104_v32, %v4691_v61  ;;  %v6113_v32 = vld [vmem:[#allocation14_spill] sm:$0xff]  ;;  %v4986_v51 = vmul.f32 %v6114_v14, %v455_v39 }
 0x193   :  { %6102 = vst [vmem:[#allocation59_spill] sm:$0xff] %v4940_v44  ;;  %6103 = vst [vmem:[#allocation109_spill] sm:$0xff] %v4950_v62  ;;  %v454_v18 = vsel %vm446_vm1, %v435_v19, %v436_v57  ;;  %v6109_v44 = vld [vmem:[#allocation63_spill] sm:$0xff]  ;;  %v4980_v19 = vmul.f32 %v6111_v38, %v455_v39  ;;  %v4983_v56 = vmul.f32 %v6113_v32, %v455_v39  ;;  %v4988_v11 = vmax.f32 %v405_v42, 0.0  ;;  %v6118_v38 = vld [vmem:[#allocation58_spill] sm:$0xff] }
 0x194   :  { %v4966_v48 = vpop.permute.xlu1 %2481  ;;  %v4968_v36 = vpop.permute.xlu0 %2476  ;;  %v4971_v16 = vmul.f32 %v6106_v23, %v454_v18  ;;  %v4974_v49 = vmul.f32 %v6108_v43, %v454_v18  ;;  %v4977_v5 = vmul.f32 %v6109_v44, %v454_v18  ;;  %6115 = vst [vmem:[#allocation16_spill] sm:$0xff] %v4986_v51  ;;  %v700_v31 = vpack.c.bf16 %v685_v3, %v684_v50  ;;  %v6116_v43 = vld [vmem:[#allocation56_spill] sm:$0xff]  ;;  %v6117_v44 = vld [vmem:[#allocation55_spill] sm:$0xff]  ;;  %v6119_v3 = vld [vmem:[#allocation82_spill] sm:$0xff] }
 0x195   :  { %6112 = vst [vmem:[#allocation77_spill] sm:$0xff] %v4980_v19  ;;  %v686_v24 = vmul.f32 %v6116_v43, %v4695_v40  ;;  %v687_v18 = vmul.f32 %v6117_v44, %v4693_v58  ;;  %v688_v2 = vmul.f32 %v6118_v38, %v4825_v4  ;;  %v5004_v42 = vmul.f32 %v6119_v3, %v4988_v11  ;;  %v6121_v38 = vld [vmem:[#allocation57_spill] sm:$0xff]  ;;  %v6122_v32 = vld [vmem:[#allocation12_spill] sm:$0xff]  ;;  %v4032_v3 = vld [vmem:[#allocation7 + $0x8] sm:$0xff]  }
 0x196   :  { %6107 = vst [vmem:[#allocation53_spill] sm:$0xff] %v4971_v16  ;;  %6110 = vst [vmem:[#allocation52_spill] sm:$0xff] %v4977_v5  ;;  %v437_v50 = vrot.slane %v4988_v11, 7  ;;  %3682 = vmatprep.mubr.msk.bf16.mxu0 %vm268_vm0, %v700_v31  ;;  %v689_v23 = vmul.f32 %v6121_v38, %v4697_v8  ;;  %v1384_v19 = vmul.f32 %v6122_v32, %v4759_v26  ;;  %v6123_v39 = vld [vmem:[#allocation13_spill] sm:$0xff]  ;;  %v6124_v5 = vrot.slane %v4858_v17, 7  ;;  %v6127_v32 = vld [vmem:[#allocation18_spill] sm:$0xff] }
 0x197   :  { %6120 = vst [vmem:[#allocation63_spill] sm:$0xff] %v5004_v42  ;;  %v701_v44 = vpack.c.bf16 %v687_v18, %v686_v24  ;;  %v1385_v51 = vmul.f32 %v6123_v39, %v4787_v59  ;;  %v6125_v38 = vld [vmem:[#allocation81_spill] sm:$0xff]  ;;  %v6128_v16 = vld [vmem:[#allocation67_spill] sm:$0xff] }
 0x198   :  { %v5008_v14 = vpop.permute.xlu1 %1036  ;;  %v5010_v43 = vpop.permute.xlu0 %1031  ;;  %v452_v24 = vsel %vm446_vm1, %v437_v50, %v6124_v5  ;;  %v453_v18 = vsel %vm446_vm1, %v436_v57, %v437_v50  ;;  %v5029_v26 = vmul.f32 %v4801_v7, %v6125_v38  ;;  %v6130_v5 = vld [vmem:[#allocation15_spill] sm:$0xff]  ;;  %v6131_v50 = vld [vmem:[#allocation68_spill] sm:$0xff]  ;;  %v702_v62 = vpack.c.bf16 %v689_v23, %v688_v2 }
 0x199   :  { %v5032_v59 = vmul.f32 %v4751_v54, %v452_v24  ;;  %v5035_v39 = vmul.f32 %v6127_v32, %v452_v24  ;;  %v5038_v31 = vmul.f32 %v6128_v16, %v452_v24  ;;  %v5041_v42 = vmul.f32 %v4753_v15, %v453_v18  ;;  %3683 = vmatmul.mubr.msk.bf16.vlgmr.msra.gmra.mrb[16].mxu0 %vm268_vm0, %v701_v44  ;;  %v6134_v16 = vld [vmem:[#allocation71_spill] sm:$0xff]  ;;  %v6135_v24 = vld [vmem:[#allocation61_spill] sm:$0xff] }
 0x19a   :  { %6126 = vst [vmem:[#allocation78_spill] sm:$0xff] %v5029_v26  ;;  %v5045_v57 = vmul.f32 %v6130_v5, %v453_v18  ;;  %v5048_v7 = vmul.f32 %v6131_v50, %v453_v18  ;;  %v1400_v54 = vpack.c.bf16 %v1385_v51, %v1384_v19  ;;  %3699 = vmatpush3.bf16.msra.mxu0 %v6133_v22  ;;  %v6136_v18 = vld [vmem:[#allocation60_spill] sm:$0xff]  ;;  %v4030_v2 = vld [vmem:[#allocation7 + $0x48] sm:$0xff]   ;;  %v979_v23 = vrot.slane %v4689_v52, 1 }
 0x19b   :  { %6129 = vst [vmem:[#allocation14_spill] sm:$0xff] %v5038_v31  ;;  %v385_v44 = vmul.f32 %v6134_v16, %v4621_v29  ;;  %v690_v5 = vmul.f32 %v6135_v24, %v4852_v0  ;;  %v691_v50 = vmul.f32 %v6136_v18, %v4850_v35  ;;  %3700 = vmatprep.subr.bf16.mxu0 %v4032_v3  ;;  %v6137_v29 = vld [vmem:[#allocation66_spill] sm:$0xff]  ;;  %v6140_v22 = vld [vmem:[#allocation80_spill] sm:$0xff] }
 0x19c   :  { %6132 = vst [vmem:[#allocation64_spill] sm:$0xff] %v5048_v7  ;;  %v5051_v32 = vpop.permute.xlu1 %2686  ;;  %v5053_v10 = vpop.permute.xlu0 %2681  ;;  %v1404_v51 = vpack.c.bf16 %v5045_v57, %v4974_v49  ;;  %3686 = vmatprep.mubr.msk.bf16.mxu0 %vm268_vm0, %v702_v62  ;;  %3742 = vmatprep.mubr.msk.bf16.mxu1 %vm268_vm0, %v1400_v54  ;;  %v692_v19 = vmul.f32 %v6137_v29, %v4856_v41  ;;  %v5072_v16 = vld [vmem:[#allocation7 + $0x20] sm:$0xff]   ;;  %v6139_v57 = vld [vmem:[#allocation65_spill] sm:$0xff]  ;;  %v6159_v31 = vld [vmem:[#allocation72_spill] sm:$0xff] }
 0x19d   :  { %v407_v24 = vadd.f32 %v4643_v27, %v385_v44  ;;  %v6138_v18 = vpack.c.bf16 %v4889_v30, %v4819_v63  ;;  %v703_v49 = vpack.c.bf16 %v691_v50, %v690_v5  ;;  %v693_v62 = vmul.f32 %v6139_v57, %v4854_v9  ;;  %v6142_v29 = vld [vmem:[#allocation54_spill] sm:$0xff]  ;;  %v6144_v27 = vld [vmem:[#allocation79_spill] sm:$0xff]  ;;  %v6147_v44 = vld [vmem:[#allocation85_spill] sm:$0xff] }
 0x19e   :  { %v5083_v54 = vmul.f32 %v4884_v20, %v6140_v22  ;;  %v6143_v15 = vpack.c.bf16 %v4924_v47, %v4876_v55  ;;  %v5092_v63 = vmul.f32 %v4886_v34, %v6144_v27  ;;  %v5096_v30 = vmul.f32 %v4929_v25, %v4722_v33  ;;  %v6150_v57 = vld [vmem:[#allocation69_spill] sm:$0xff]  ;;  %3701 = vmatpush3.bf16.msra.mxu0 %v4032_v3  ;;  %v5111_v33 = vld [vmem:[#allocation7 + $0x50] sm:$0xff]  }
 0x19f   :  { %3743 = vmatmul.mubr.msk.bf16.vlgmr.msra.gmra.mrb[0].mxu1 %vm268_vm0, %v6138_v18  ;;  %v5100_v5 = vmul.f32 %v4931_v6, %v6147_v44  ;;  %v980_v20 = vrot.slane %v4695_v40, 1  ;;  %v5105_v55 = vmax.f32 %v407_v24, 0.0  ;;  %v704_v47 = vpack.c.bf16 %v693_v62, %v692_v19  ;;  %v6151_v24 = vld [vmem:[#allocation74_spill] sm:$0xff]  ;;  %3718 = vmatprep.subr.bf16.mxu0 %v5072_v16 }
 0x1a0   :  { %6141 = vst [vmem:[#allocation56_spill] sm:$0xff] %v5083_v54  ;;  %3759 = vmatpush3.bf16.msra.mxu1 %v6142_v29  ;;  %3746 = vmatprep.mubr.msk.bf16.mxu1 %vm268_vm0, %v6143_v15  ;;  %6145 = vst [vmem:[#allocation55_spill] sm:$0xff] %v5092_v63  ;;  %v5103_v50 = vpop.permute.xlu1 %1046  ;;  %v1042_v18 = vpop.permute.xlu0 %1041  ;;  %v6149_v15 = vld [vmem:[#allocation70_spill] sm:$0xff]  ;;  %v695_v29 = vmul.f32 %v6150_v57, %v4858_v17  ;;  %v697_v44 = vmul.f32 %v6151_v24, %v6125_v38  ;;  %v6154_v57 = vld [vmem:[#allocation75_spill] sm:$0xff]  ;;  %v981_v6 = vrot.slane %v4693_v58, 1 }
 0x1a1   :  { %6146 = vst [vmem:[#allocation58_spill] sm:$0xff] %v5096_v30  ;;  %6148 = vst [vmem:[#allocation82_spill] sm:$0xff] %v5100_v5  ;;  %v694_v34 = vmul.f32 %v6149_v15, %v4988_v11  ;;  %3760 = vmatprep.subr.bf16.mxu1 %v4030_v2  ;;  %v5121_v19 = vmul.f32 %v4966_v48, %v4689_v52  ;;  %v5126_v3 = vmul.f32 %v4803_v46, %v5105_v55  ;;  %v6158_v54 = vld [vmem:[#allocation19_spill] sm:$0xff]  ;;  %v6161_v5 = vld [vmem:[#allocation73_spill] sm:$0xff] }
 0x1a2   :  { %v439_v62 = vrot.slane %v5105_v55, 7  ;;  %3687 = vmatmul.mubr.msk.bf16.gmra.mrb[20].mxu0 %vm268_vm0, %v703_v49  ;;  %v696_v25 = vmul.f32 %v6154_v57, %v5105_v55  ;;  %v5135_v48 = vmul.f32 %v4968_v36, %v4691_v61  ;;  %v5139_v24 = vsel %vm995_vm2, %v979_v23, %v980_v20 }
 0x1a3   :  { %6152 = vst [vmem:[#allocation57_spill] sm:$0xff] %v5121_v19  ;;  %6153 = vst [vmem:[#allocation12_spill] sm:$0xff] %v5126_v3  ;;  %v705_v15 = vpack.c.bf16 %v695_v29, %v694_v34  ;;  %3690 = vmatprep.mubr.msk.bf16.mxu0 %vm268_vm0, %v704_v47  ;;  %v6156_v47 = vrot.slane %v6125_v38, 7  ;;  %v6204_v19 = vld [vmem:[#allocation101_spill] sm:$0xff] }
 0x1a4   :  { %6155 = vst [vmem:[#allocation13_spill] sm:$0xff] %v5135_v48  ;;  %3761 = vmatpush3.bf16.msra.mxu1 %v4030_v2  ;;  %v2697_v49 = vpop.permute.xlu1 %2696  ;;  %v2692_v34 = vpop.permute.xlu0 %2691  ;;  %v6157_v2 = vrot.slane %v4858_v17, 7  ;;  %v706_v63 = vpack.c.bf16 %v697_v44, %v696_v25  ;;  %v6163_v25 = vpack.c.bf16 %v4983_v56, %v4937_v1  ;;  %v6203_v48 = vld [vmem:[#allocation99_spill] sm:$0xff] }
 0x1a5   :  { %v450_v36 = vsel %vm446_vm1, %v439_v62, %v6156_v47  ;;  %3778 = vmatprep.subr.bf16.mxu1 %v5111_v33  ;;  %v6160_v47 = vld [vmem:[#allocation17_spill] sm:$0xff] }
 0x1a6   :  { %v451_v57 = vsel %vm446_vm1, %v6157_v2, %v439_v62  ;;  %v5155_v46 = vmul.f32 %v4841_v37, %v450_v36  ;;  %v1396_v7 = vmul.f32 %v6158_v54, %v450_v36  ;;  %v5159_v29 = vmul.f32 %v6159_v31, %v450_v36  ;;  %v6164_v54 = vld [vmem:[#allocation88_spill] sm:$0xff]  ;;  %v6171_v37 = vld [vmem:[#allocation39_spill] sm:$0xff] }
 0x1a7   :  { %v5162_v3 = vmul.f32 %v4843_v13, %v451_v57  ;;  %v1395_v26 = vmul.f32 %v6160_v47, %v451_v57  ;;  %v5166_v30 = vmul.f32 %v6161_v5, %v451_v57  ;;  %3747 = vmatmul.mubr.msk.bf16.gmra.mrb[4].mxu1 %vm268_vm0, %v6163_v25  ;;  %v5176_v31 = vmul.f32 %v5008_v14, %v5139_v24  ;;  %v6167_v47 = vld [vmem:[#allocation21_spill] sm:$0xff] }
 0x1a8   :  { %v1406_v13 = vpack.c.bf16 %v6164_v54, %v1396_v7  ;;  %3750 = vmatprep.mubr.msk.bf16.mxu1 %vm268_vm0, %v1404_v51  ;;  %v6165_v5 = vrot.slane %v4691_v61, 1  ;;  %v1057_v1 = vpop.permute.xlu1 %1056  ;;  %v1052_v62 = vpop.permute.xlu0 %1051  ;;  %v6166_v7 = vld [vmem:[#allocation37_spill] sm:$0xff]  ;;  %v982_v57 = vrot.slane %v4825_v4, 1  ;;  %v5204_v25 = vmul.f32 %v6167_v47, %v4689_v52 }
 0x1a9   :  { %6162 = vst [vmem:[#allocation81_spill] sm:$0xff] %v5166_v30  ;;  %v1405_v36 = vpack.c.bf16 %v1395_v26, %v5035_v39  ;;  %v5193_v2 = vmul.f32 %v6166_v7, %v5139_v24  ;;  %v6168_v26 = vld [vmem:[#allocation20_spill] sm:$0xff]  ;;  %v984_v47 = vrot.slane %v4852_v0, 1 }
 0x1aa   :  { %v5186_v56 = vsel %vm995_vm2, %v6165_v5, %v979_v23  ;;  %v1009_v23 = vsel %vm995_vm2, %v980_v20, %v981_v6  ;;  %v5208_v39 = vmul.f32 %v6168_v26, %v4695_v40  ;;  %3691 = vmatmul.mubr.msk.bf16.gmra.mrb[24].mxu0 %vm268_vm0, %v705_v15  ;;  %v1008_v52 = vsel %vm995_vm2, %v981_v6, %v982_v57 }
 0x1ab   :  { %v5197_v51 = vmul.f32 %v5010_v43, %v5186_v56  ;;  %v6169_v43 = vld [vmem:[#allocation36_spill] sm:$0xff]  ;;  %v5217_v7 = vmul.f32 %v5053_v10, %v1009_v23  ;;  %v5219_v20 = vmul.f32 %v1042_v18, %v1009_v23  ;;  %3694 = vmatprep.mubr.msk.bf16.mxu0 %vm268_vm0, %v706_v63  ;;  %v983_v15 = vrot.slane %v4697_v8, 1  ;;  %v6175_v63 = vld [vmem:[#allocation41_spill] sm:$0xff] }
 0x1ac   :  { %v5214_v5 = vmul.f32 %v6169_v43, %v1009_v23  ;;  %v1675_v40 = vpack.c.bf16 %v5208_v39, %v5204_v25  ;;  %v2707_v26 = vpop.permute.xlu1 %2706  ;;  %v2702_v43 = vpop.permute.xlu0 %2701  ;;  %v5229_v14 = vmul.f32 %v6171_v37, %v1008_v52  ;;  %v5232_v10 = vmul.f32 %v5051_v32, %v1008_v52  ;;  %v6173_v25 = vld [vmem:[#allocation23_spill] sm:$0xff]  ;;  %v6174_v37 = vld [vmem:[#allocation22_spill] sm:$0xff] }
 0x1ad   :  { %6170 = vst [vmem:[#allocation18_spill] sm:$0xff] %v5217_v7  ;;  %v5237_v18 = vmul.f32 %v5103_v50, %v1008_v52  ;;  %v1006_v6 = vsel %vm995_vm2, %v983_v15, %v984_v47  ;;  %v1007_v23 = vsel %vm995_vm2, %v982_v57, %v983_v15  ;;  %v5245_v39 = vmul.f32 %v6173_v25, %v4693_v58  ;;  %v6177_v58 = vld [vmem:[#allocation38_spill] sm:$0xff]  ;;  %v6179_v25 = vld [vmem:[#allocation25_spill] sm:$0xff] }
 0x1ae   :  { %6172 = vst [vmem:[#allocation67_spill] sm:$0xff] %v5232_v10  ;;  %v5249_v32 = vmul.f32 %v6174_v37, %v4825_v4  ;;  %v5257_v54 = vmul.f32 %v6175_v63, %v1006_v6  ;;  %v5259_v57 = vmul.f32 %v2697_v49, %v1006_v6  ;;  %v5263_v15 = vmul.f32 %v6177_v58, %v1007_v23  ;;  %v6180_v63 = vld [vmem:[#allocation24_spill] sm:$0xff]  ;;  %v6188_v58 = vld [vmem:[#allocation29_spill] sm:$0xff] }
 0x1af   :  { %3751 = vmatmul.mubr.msk.bf16.gmra.mrb[8].mxu1 %vm268_vm0, %v1405_v36  ;;  %v5265_v4 = vmul.f32 %v2692_v34, %v1007_v23  ;;  %v5271_v37 = vmul.f32 %v6179_v25, %v4697_v8  ;;  %v5275_v49 = vmul.f32 %v6180_v63, %v4852_v0  ;;  %v5277_v44 = vmul.f32 %v1057_v1, %v1006_v6  ;;  %v6181_v25 = vld [vmem:[#allocation27_spill] sm:$0xff]  ;;  %v6184_v63 = vld [vmem:[#allocation26_spill] sm:$0xff]  ;;  %v6201_v10 = vld [vmem:[#allocation92_spill] sm:$0xff] }
 0x1b0   :  { %6176 = vst [vmem:[#allocation15_spill] sm:$0xff] %v5259_v57  ;;  %3754 = vmatprep.mubr.msk.bf16.mxu1 %vm268_vm0, %v1406_v13  ;;  %v1067_v50 = vpop.permute.xlu1 %1066  ;;  %v1062_v52 = vpop.permute.xlu0 %1061  ;;  %v5279_v13 = vmul.f32 %v1052_v62, %v1007_v23  ;;  %v985_v34 = vrot.slane %v4850_v35, 1  ;;  %v986_v8 = vrot.slane %v4856_v41, 1  ;;  %v5289_v7 = vmul.f32 %v6181_v25, %v4850_v35  ;;  %v6182_v0 = vld [vmem:[#allocation83_spill] sm:$0xff]  ;;  %v6186_v25 = vld [vmem:[#allocation40_spill] sm:$0xff] }
 0x1b1   :  { %6178 = vst [vmem:[#allocation68_spill] sm:$0xff] %v5265_v4  ;;  %v6183_v1 = vpack.c.bf16 %v4708_v21, %v6182_v0  ;;  %v5303_v36 = vmul.f32 %v6184_v63, %v4856_v41  ;;  %v6185_v35 = vpack.c.bf16 %v4779_v12, %v4782_v60  ;;  %v6189_v63 = vld [vmem:[#allocation43_spill] sm:$0xff]  ;;  %v987_v4 = vrot.slane %v4854_v9, 1 }
 0x1b2   :  { %v1005_v23 = vsel %vm995_vm2, %v984_v47, %v985_v34  ;;  %v1004_v21 = vsel %vm995_vm2, %v985_v34, %v986_v8  ;;  %v5318_v47 = vmul.f32 %v6188_v58, %v4854_v9  ;;  %v6191_v34 = vld [vmem:[#allocation28_spill] sm:$0xff]  ;;  %v988_v60 = vrot.slane %v4988_v11, 1  ;;  %v6200_v57 = vld [vmem:[#allocation95_spill] sm:$0xff] }
 0x1b3   :  { %3695 = vmatmul.mubr.msk.bf16.gmra.mrb[28].mxu0 %vm268_vm0, %v6183_v1  ;;  %v5312_v0 = vmul.f32 %v6186_v25, %v1005_v23  ;;  %v5314_v1 = vmul.f32 %v2702_v43, %v1005_v23  ;;  %v5321_v62 = vmul.f32 %v6189_v63, %v1004_v21  ;;  %v5323_v12 = vmul.f32 %v2707_v26, %v1004_v21 }
 0x1b4   :  { %3702 = vmatprep.mubr.msk.bf16.mxu0 %vm268_vm0, %v6185_v35  ;;  %v2717_v6 = vpop.permute.xlu1 %2716  ;;  %v2712_v41 = vpop.permute.xlu0 %2711  ;;  %v5329_v35 = vmul.f32 %v6191_v34, %v4988_v11  ;;  %v5333_v25 = vmul.f32 %v1067_v50, %v1004_v21  ;;  %v5335_v58 = vmul.f32 %v1062_v52, %v1005_v23  ;;  %v6192_v26 = vpack.c.bf16 %v4772_v45, %v4737_v53  ;;  %v6193_v50 = vld [vmem:[#allocation31_spill] sm:$0xff]  ;;  %v6194_v53 = vld [vmem:[#allocation30_spill] sm:$0xff]  ;;  %v6195_v23 = vld [vmem:[#allocation33_spill] sm:$0xff] }
 0x1b5   :  { %6187 = vst [vmem:[#allocation62_spill] sm:$0xff] %v5314_v1  ;;  %6190 = vst [vmem:[#allocation71_spill] sm:$0xff] %v5323_v12  ;;  %v5349_v21 = vmul.f32 %v6193_v50, %v4858_v17  ;;  %v1003_v45 = vsel %vm995_vm2, %v986_v8, %v987_v4  ;;  %v5358_v52 = vmul.f32 %v6194_v53, %v5105_v55  ;;  %v6198_v8 = vld [vmem:[#allocation32_spill] sm:$0xff]  ;;  %v4036_v53 = vld [vmem:[#allocation7 + $0x28] sm:$0xff]  }
 0x1b6   :  { %v1002_v50 = vsel %vm995_vm2, %v987_v4, %v988_v60  ;;  %v5369_v9 = vmul.f32 %v2712_v41, %v1003_v45  ;;  %v5373_v34 = vmul.f32 %v6198_v8, %v6144_v27  ;;  %v6202_v4 = vpack.c.bf16 %v6200_v57, %v6201_v10 }
 0x1b7   :  { %3755 = vmatmul.mubr.msk.bf16.gmra.mrb[12].mxu1 %vm268_vm0, %v6192_v26  ;;  %v5362_v26 = vmul.f32 %v6195_v23, %v6125_v38  ;;  %v5375_v1 = vmul.f32 %v2717_v6, %v1002_v50  ;;  %v989_v6 = vrot.slane %v4858_v17, 1  ;;  %v6205_v23 = vpack.c.bf16 %v6203_v48, %v6204_v19 }
 0x1b8   :  { %3762 = vmatprep.mubr.msk.bf16.mxu1 %vm268_vm0, %v1675_v40  ;;  %v1077_v11 = vpop.permute.xlu1 %1076  ;;  %v1072_v63 = vpop.permute.xlu0 %1071  ;;  %v6196_v40 = vld [vmem:[#allocation42_spill] sm:$0xff]  ;;  %6197 = vst [vmem:[#allocation61_spill] sm:$0xff] %v5369_v9  ;;  %v991_v48 = vrot.slane %v6125_v38, 1  ;;  %v6211_v38 = vld [vmem:[#allocation47_spill] sm:$0xff]  ;;  %v6217_v9 = vld [vmem:[#allocation108_spill] sm:$0xff] }
 0x1b9   :  { %v5367_v43 = vmul.f32 %v6196_v40, %v1003_v45  ;;  %6199 = vst [vmem:[#allocation60_spill] sm:$0xff] %v5375_v1  ;;  %v5379_v12 = vmul.f32 %v1077_v11, %v1002_v50  ;;  %v5389_v8 = vmul.f32 %v1072_v63, %v1003_v45  ;;  %v6206_v11 = vld [vmem:[#allocation45_spill] sm:$0xff]  ;;  %v1001_v19 = vsel %vm995_vm2, %v988_v60, %v989_v6  ;;  %v6218_v1 = vld [vmem:[#allocation106_spill] sm:$0xff] }
 0x1ba   :  { %v5397_v30 = vmul.f32 %v6206_v11, %v1002_v50  ;;  %v4034_v45 = vld [vmem:[#allocation7 + $0x58] sm:$0xff]   ;;  %v992_v50 = vrot.slane %v6144_v27, 1  ;;  %v6210_v60 = vpack.c.bf16 %v5249_v32, %v5245_v39 }
 0x1bb   :  { %3703 = vmatmul.mubr.msk.bf16.vlgmr.msra.gmra.mrb[16].mxu0 %vm268_vm0, %v6202_v4  ;;  %v990_v4 = vrot.slane %v5105_v55, 1  ;;  %v6208_v55 = vld [vmem:[#allocation44_spill] sm:$0xff] }
 0x1bc   :  { %3706 = vmatprep.mubr.msk.bf16.mxu0 %vm268_vm0, %v6205_v23  ;;  %3719 = vmatpush3.bf16.msra.mxu0 %v5072_v16  ;;  %v2727_v57 = vpop.permute.xlu1 %2726  ;;  %v2722_v63 = vpop.permute.xlu0 %2721  ;;  %v6207_v23 = vld [vmem:[#allocation50_spill] sm:$0xff]  ;;  %v5416_v10 = vmul.f32 %v6208_v55, %v1001_v19 }
 0x1bd   :  { %3720 = vmatprep.subr.bf16.mxu0 %v4036_v53  ;;  %v5411_v11 = vmul.f32 %v6207_v23, %v5186_v56  ;;  %v1000_v16 = vsel %vm995_vm2, %v989_v6, %v990_v4  ;;  %v5418_v41 = vmul.f32 %v2722_v63, %v1001_v19  ;;  %v998_v23 = vsel %vm995_vm2, %v991_v48, %v992_v50 }
 0x1be   :  { %v5425_v17 = vmul.f32 %v6211_v38, %v1000_v16  ;;  %v5427_v27 = vmul.f32 %v2727_v57, %v1000_v16  ;;  %v999_v6 = vsel %vm995_vm2, %v990_v4, %v991_v48  ;;  %v6213_v63 = vpack.c.bf16 %v5275_v49, %v5271_v37  ;;  %v6214_v57 = vld [vmem:[#allocation49_spill] sm:$0xff]  ;;  %v6215_v38 = vld [vmem:[#allocation46_spill] sm:$0xff] }
 0x1bf   :  { %6209 = vst [vmem:[#allocation66_spill] sm:$0xff] %v5418_v41  ;;  %3763 = vmatmul.mubr.msk.bf16.vlgmr.msra.gmra.mrb[0].mxu1 %vm268_vm0, %v6210_v60  ;;  %v5441_v60 = vmul.f32 %v6214_v57, %v998_v23  ;;  %v5444_v40 = vmul.f32 %v6215_v38, %v999_v6  ;;  %v993_v4 = vrot.slane %v6140_v22, 1  ;;  %v4037_v48 = vld [vmem:[#allocation7 + $0x60] sm:$0xff]   ;;  %v6216_v57 = vrot.slane %v4691_v61, 1  ;;  %v6223_v41 = vld [vmem:[#allocation77_spill] sm:$0xff] }
 0x1c0   :  { %6212 = vst [vmem:[#allocation65_spill] sm:$0xff] %v5427_v27  ;;  %3779 = vmatpush3.bf16.msra.mxu1 %v5111_v33  ;;  %3766 = vmatprep.mubr.msk.bf16.mxu1 %vm268_vm0, %v6213_v63  ;;  %v1087_v32 = vpop.permute.xlu1 %1086  ;;  %v1082_v55 = vpop.permute.xlu0 %1081  ;;  %v6219_v33 = vpack.c.bf16 %v6217_v9, %v6218_v1  ;;  %v6222_v63 = vld [vmem:[#allocation53_spill] sm:$0xff] }
 0x1c1   :  { %3780 = vmatprep.subr.bf16.mxu1 %v4034_v45  ;;  %3721 = vmatpush3.bf16.msra.mxu0 %v4036_v53  ;;  %v5449_v37 = vmul.f32 %v1087_v32, %v1000_v16  ;;  %v5451_v49 = vmul.f32 %v1082_v55, %v1001_v19  ;;  %v996_v38 = vsel %vm995_vm2, %v993_v4, %v6216_v57  ;;  %v6220_v19 = vld [vmem:[#allocation51_spill] sm:$0xff]  ;;  %v6221_v32 = vld [vmem:[#allocation48_spill] sm:$0xff] }
 0x1c2   :  { %v997_v39 = vsel %vm995_vm2, %v992_v50, %v993_v4  ;;  %v5468_v16 = vmul.f32 %v6220_v19, %v996_v38  ;;  %v6224_v27 = vpack.c.bf16 %v6222_v63, %v6223_v41 }
 0x1c3   :  { %3707 = vmatmul.mubr.msk.bf16.gmra.mrb[20].mxu0 %vm268_vm0, %v6219_v33  ;;  %v1130_v53 = vpack.c.bf16 %v5449_v37, %v5451_v49  ;;  %v1947_v55 = vmul.f32 %v6221_v32, %v997_v39  ;;  %v6225_v37 = vpack.c.bf16 %v5303_v36, %v5289_v7  ;;  %v6228_v36 = vpack.c.bf16 %v5155_v46, %v5162_v3  ;;  %v6232_v32 = vld [vmem:[#allocation34_spill] sm:$0xff] }
 0x1c4   :  { %3710 = vmatprep.mubr.msk.bf16.mxu0 %vm268_vm0, %v6224_v27  ;;  %3781 = vmatpush3.bf16.msra.mxu1 %v4034_v45  ;;  %v2737_v28 = vpop.permute.xlu1 %2736  ;;  %v2732_v50 = vpop.permute.xlu0 %2731  ;;  %v1957_v4 = vpack.c.bf16 %v5411_v11, %v5468_v16  ;;  %v6226_v45 = vpack.c.bf16 %v5329_v35, %v5318_v47  ;;  %v6227_v11 = vpack.c.bf16 %v5032_v59, %v5041_v42 }
 0x1c5   :  { %3798 = vmatprep.subr.bf16.mxu1 %v4037_v48  ;;  %v5475_v1 = vmul.f32 %v2737_v28, %v998_v23  ;;  %v5477_v9 = vmul.f32 %v2732_v50, %v999_v6  ;;  %v1956_v33 = vpack.c.bf16 %v1947_v55, %v5441_v60  ;;  %v6230_v59 = vpack.c.bf16 %v5373_v34, %v5362_v26  ;;  %v6234_v50 = vld [vmem:[#allocation82_spill] sm:$0xff] }
 0x1c6   :  { %v1674_v55 = vmul.f32 %v6232_v32, %v4691_v61  ;;  %v6236_v34 = vpack.c.bf16 %v5176_v31, %v5197_v51  ;;  %v6238_v31 = vpack.c.bf16 %v5237_v18, %v5219_v20  ;;  %v6239_v51 = vpack.c.bf16 %v5277_v44, %v5279_v13  ;;  %v6248_v13 = vld [vmem:[#allocation93_spill] sm:$0xff] }
 0x1c7   :  { %3767 = vmatmul.mubr.msk.bf16.gmra.mrb[4].mxu1 %vm268_vm0, %v6225_v37  ;;  %v2780_v41 = vpack.c.bf16 %v5475_v1, %v5477_v9  ;;  %v6242_v20 = vpack.c.bf16 %v5333_v25, %v5335_v58  ;;  %v6243_v44 = vpack.c.bf16 %v5379_v12, %v5389_v8  ;;  %v6246_v18 = vpack.c.bf16 %v5444_v40, %v5425_v17  ;;  %v6251_v12 = vld [vmem:[#allocation102_spill] sm:$0xff]  ;;  %v6253_v25 = vld [vmem:[#allocation59_spill] sm:$0xff]  ;;  %v6257_v17 = vld [vmem:[#allocation16_spill] sm:$0xff] }
 0x1c8   :  { %3770 = vmatprep.mubr.msk.bf16.mxu1 %vm268_vm0, %v6226_v45  ;;  %v1097_v27 = vpop.permute.xlu1 %1096  ;;  %v1092_v49 = vpop.permute.xlu0 %1091  ;;  %v6254_v58 = vld [vmem:[#allocation107_spill] sm:$0xff]  ;;  %v4041_v8 = vld [vmem:[#allocation7 + $0x80] sm:$0xff]  }
 0x1c9   :  { %v1122_v63 = vmul.f32 %v1097_v27, %v998_v23  ;;  %v1121_v57 = vmul.f32 %v1092_v49, %v999_v6  ;;  %v6229_v23 = vpack.c.bf16 %v5358_v52, %v5349_v21  ;;  %v6231_v6 = vld [vmem:[#allocation35_spill] sm:$0xff]  ;;  %v6233_v52 = vld [vmem:[#allocation58_spill] sm:$0xff]  ;;  %v6255_v40 = vpack.c.bf16 %v6253_v25, %v6254_v58 }
 0x1ca   :  { %v1673_v16 = vmul.f32 %v6231_v6, %v6140_v22  ;;  %v6235_v37 = vpack.c.bf16 %v6233_v52, %v6234_v50  ;;  %v4042_v6 = vld [vmem:[#allocation7 + $0x88] sm:$0xff]   ;;  %v6279_v52 = vld [vmem:[#allocation104_spill] sm:$0xff]  ;;  %v6280_v50 = vld [vmem:[#allocation105_spill] sm:$0xff] }
 0x1cb   :  { %3711 = vmatmul.mubr.msk.bf16.gmra.mrb[24].mxu0 %vm268_vm0, %v6227_v11  ;;  %v1131_v7 = vpack.c.bf16 %v1122_v63, %v1121_v57  ;;  %v6262_v63 = vld [vmem:[#allocation81_spill] sm:$0xff]  ;;  %v6264_v11 = vld [vmem:[#allocation87_spill] sm:$0xff] }
 0x1cc   :  { %3714 = vmatprep.mubr.msk.bf16.mxu0 %vm268_vm0, %v6228_v36  ;;  %v2747_v60 = vpop.permute.xlu1 %2746  ;;  %v2742_v19 = vpop.permute.xlu0 %2741  ;;  %v1682_v49 = vpack.c.bf16 %v1674_v55, %v1673_v16  ;;  %v6263_v57 = vpack.c.bf16 %v5159_v29, %v6262_v63  ;;  %v6273_v16 = vld [vmem:[#allocation94_spill] sm:$0xff]  ;;  %v6274_v29 = vld [vmem:[#allocation97_spill] sm:$0xff] }
 0x1cd   :  { %v5500_v47 = vmul.f32 %v2747_v60, %v996_v38  ;;  %v5502_v35 = vmul.f32 %v2742_v19, %v997_v39  ;;  %v6267_v60 = vld [vmem:[#allocation90_spill] sm:$0xff]  ;;  %v6268_v19 = vld [vmem:[#allocation91_spill] sm:$0xff]  ;;  %v6275_v32 = vpack.c.bf16 %v6273_v16, %v6274_v29 }
 0x1ce   :  { %v6276_v55 = vld [vmem:[#allocation98_spill] sm:$0xff] }
 0x1cf   :  { %3771 = vmatmul.mubr.msk.bf16.gmra.mrb[8].mxu1 %vm268_vm0, %v6229_v23  ;;  %v2781_v42 = vpack.c.bf16 %v5500_v47, %v5502_v35  ;;  %v6269_v23 = vpack.c.bf16 %v6267_v60, %v6268_v19 }
 0x1d0   :  { %3774 = vmatprep.mubr.msk.bf16.mxu1 %vm268_vm0, %v6230_v59  ;;  %v1107_v3 = vpop.permute.xlu1 %1106  ;;  %v1102_v46 = vpop.permute.xlu0 %1101  ;;  %v6270_v59 = vld [vmem:[#allocation84_spill] sm:$0xff] }
 0x1d1   :  { %v1124_v28 = vmul.f32 %v1107_v3, %v996_v38  ;;  %v1123_v21 = vmul.f32 %v1102_v46, %v997_v39  ;;  %v6237_v38 = vpack.c.bf16 %v5214_v5, %v5193_v2  ;;  %v6241_v2 = vpack.c.bf16 %v5312_v0, %v5257_v54  ;;  %v4039_v5 = vld [vmem:[#allocation7 + $0x70] sm:$0xff]   ;;  %v6271_v3 = vld [vmem:[#allocation86_spill] sm:$0xff] }
 0x1d2   :  { %v6245_v54 = vpack.c.bf16 %v5416_v10, %v5397_v30  ;;  %v6250_v0 = vld [vmem:[#allocation100_spill] sm:$0xff]  ;;  %v6272_v46 = vpack.c.bf16 %v6270_v59, %v6271_v3 }
 0x1d3   :  { %3715 = vmatmul.mubr.msk.bf16.gmra.mrb[28].mxu0 %vm268_vm0, %v6235_v37  ;;  %v1132_v45 = vpack.c.bf16 %v1124_v28, %v1123_v21  ;;  %v6256_v10 = vld [vmem:[#allocation52_spill] sm:$0xff]  ;;  %v6277_v28 = vld [vmem:[#allocation103_spill] sm:$0xff]  ;;  %v6281_v37 = vpack.c.bf16 %v6279_v52, %v6280_v50 }
 0x1d4   :  { %3722 = vmatprep.mubr.msk.bf16.mxu0 %vm268_vm0, %v6236_v34  ;;  %v2757_v26 = vpop.permute.xlu1 %2756  ;;  %v2752_v27 = vpop.permute.xlu0 %2751  ;;  %v6278_v21 = vpack.c.bf16 %v6276_v55, %v6277_v28  ;;  %v6283_v34 = vld [vmem:[#allocation63_spill] sm:$0xff] }
 0x1d5   :  { %v2774_v22 = vmul.f32 %v2757_v26, %v5139_v24  ;;  %v2773_v61 = vmul.f32 %v2752_v27, %v5186_v56  ;;  %v4038_v24 = vld [vmem:[#allocation7 + $0x68] sm:$0xff]   ;;  %v6240_v56 = vpack.c.bf16 %v5263_v15, %v5229_v14  ;;  %v6244_v14 = vpack.c.bf16 %v5367_v43, %v5321_v62  ;;  %v6247_v15 = vld [vmem:[#allocation96_spill] sm:$0xff]  ;;  %v4040_v62 = vld [vmem:[#allocation7 + $0x78] sm:$0xff]  }
 0x1d6   :  { %v6249_v30 = vpack.c.bf16 %v6247_v15, %v6248_v13  ;;  %v6252_v43 = vpack.c.bf16 %v6250_v0, %v6251_v12  ;;  %v6285_v27 = vld [vmem:[#allocation78_spill] sm:$0xff]  ;;  %v6306_v12 = vld [vmem:[#allocation65_spill] sm:$0xff] }
 0x1d7   :  { %3775 = vmatmul.mubr.msk.bf16.gmra.mrb[12].mxu1 %vm268_vm0, %v1682_v49  ;;  %v2782_v39 = vpack.c.bf16 %v2774_v22, %v2773_v61  ;;  %v6286_v49 = vld [vmem:[#allocation12_spill] sm:$0xff]  ;;  %v6301_v15 = vld [vmem:[#allocation62_spill] sm:$0xff] }
 0x1d8   :  { %3782 = vmatprep.mubr.msk.bf16.mxu1 %vm268_vm0, %v6237_v38  ;;  %v6287_v22 = vpack.c.bf16 %v6285_v27, %v6286_v49  ;;  %v6288_v61 = vld [vmem:[#allocation56_spill] sm:$0xff]  ;;  %v6289_v38 = vld [vmem:[#allocation55_spill] sm:$0xff] }
 0x1db   :  { %3723 = vmatmul.mubr.msk.bf16.vlgmr.msra.gmra.mrb[16].mxu0 %vm268_vm0, %v6238_v31  ;;  %v6290_v31 = vpack.c.bf16 %v6288_v61, %v6289_v38 }
 0x1dc   :  { %3726 = vmatprep.mubr.msk.bf16.mxu0 %vm268_vm0, %v6239_v51  ;;  %v6291_v51 = vld [vmem:[#allocation57_spill] sm:$0xff] }
 0x1df   :  { %3783 = vmatmul.mubr.msk.bf16.vlgmr.msra.gmra.mrb[0].mxu1 %vm268_vm0, %v6240_v56 }
 0x1e0   :  { %3799 = vmatpush3.bf16.msra.mxu1 %v4037_v48  ;;  %3786 = vmatprep.mubr.msk.bf16.mxu1 %vm268_vm0, %v6241_v2  ;;  %v6258_v48 = vpack.c.bf16 %v6256_v10, %v6257_v17  ;;  %v6294_v2 = vld [vmem:[#allocation67_spill] sm:$0xff] }
 0x1e1   :  { %3800 = vmatprep.subr.bf16.mxu1 %v4038_v24 }
 0x1e3   :  { %3727 = vmatmul.mubr.msk.bf16.gmra.mrb[20].mxu0 %vm268_vm0, %v6242_v20 }
 0x1e4   :  { %3730 = vmatprep.mubr.msk.bf16.mxu0 %vm268_vm0, %v6243_v44  ;;  %3801 = vmatpush3.bf16.msra.mxu1 %v4038_v24  ;;  %v6292_v24 = vld [vmem:[#allocation13_spill] sm:$0xff]  ;;  %v6297_v44 = vld [vmem:[#allocation15_spill] sm:$0xff] }
 0x1e5   :  { %3818 = vmatprep.subr.bf16.mxu1 %v4039_v5  ;;  %v6293_v56 = vpack.c.bf16 %v6291_v51, %v6292_v24 }
 0x1e7   :  { %3787 = vmatmul.mubr.msk.bf16.gmra.mrb[4].mxu1 %vm268_vm0, %v6244_v14  ;;  %v6298_v14 = vld [vmem:[#allocation68_spill] sm:$0xff] }
 0x1e8   :  { %3790 = vmatprep.mubr.msk.bf16.mxu1 %vm268_vm0, %v6245_v54  ;;  %v6299_v54 = vpack.c.bf16 %v6297_v44, %v6298_v14 }
 0x1eb   :  { %3731 = vmatmul.mubr.msk.bf16.gmra.mrb[24].mxu0 %vm268_vm0, %v1130_v53  ;;  %v6259_v53 = vld [vmem:[#allocation14_spill] sm:$0xff] }
 0x1ec   :  { %3734 = vmatprep.mubr.msk.bf16.mxu0 %vm268_vm0, %v1131_v7  ;;  %v6265_v7 = vld [vmem:[#allocation89_spill] sm:$0xff] }
 0x1ed   :  { %v6266_v36 = vpack.c.bf16 %v6264_v11, %v6265_v7 }
 0x1ef   :  { %3791 = vmatmul.mubr.msk.bf16.gmra.mrb[8].mxu1 %vm268_vm0, %v6246_v18  ;;  %v6300_v18 = vld [vmem:[#allocation71_spill] sm:$0xff] }
 0x1f0   :  { %3794 = vmatprep.mubr.msk.bf16.mxu1 %vm268_vm0, %v1956_v33  ;;  %v6302_v13 = vpack.c.bf16 %v6300_v18, %v6301_v15 }
 0x1f3   :  { %3735 = vmatmul.mubr.msk.bf16.gmra.mrb[28].mxu0 %vm268_vm0, %v1132_v45  ;;  %v6282_v45 = vld [vmem:[#allocation109_spill] sm:$0xff] }
 0x1f4   :  { %v6284_v26 = vpack.c.bf16 %v6282_v45, %v6283_v34 }
 0x1f7   :  { %3795 = vmatmul.mubr.msk.bf16.gmra.mrb[12].mxu1 %vm268_vm0, %v1957_v4  ;;  %v6260_v4 = vld [vmem:[#allocation64_spill] sm:$0xff] }
 0x1f8   :  { %3802 = vmatprep.mubr.msk.bf16.mxu1 %vm268_vm0, %v6249_v30  ;;  %v6261_v33 = vpack.c.bf16 %v6259_v53, %v6260_v4  ;;  %v6303_v30 = vld [vmem:[#allocation60_spill] sm:$0xff] }
 0x1ff   :  { %3803 = vmatmul.mubr.msk.bf16.vlgmr.msra.gmra.mrb[0].mxu1 %vm268_vm0, %v6252_v43  ;;  %v6307_v43 = vld [vmem:[#allocation66_spill] sm:$0xff] }
 0x200   :  { %3819 = vmatpush3.bf16.msra.mxu1 %v4039_v5  ;;  %3806 = vmatprep.mubr.msk.bf16.mxu1 %vm268_vm0, %v6255_v40  ;;  %v6295_v5 = vld [vmem:[#allocation18_spill] sm:$0xff]  ;;  %v6308_v25 = vpack.c.bf16 %v6306_v12, %v6307_v43 }
 0x201   :  { %3820 = vmatprep.subr.bf16.mxu1 %v4040_v62  ;;  %v6296_v20 = vpack.c.bf16 %v6294_v2, %v6295_v5 }
 0x204   :  { %3821 = vmatpush3.bf16.msra.mxu1 %v4040_v62  ;;  %v6304_v62 = vld [vmem:[#allocation61_spill] sm:$0xff] }
 0x205   :  { %3838 = vmatprep.subr.bf16.mxu1 %v4041_v8  ;;  %v6305_v0 = vpack.c.bf16 %v6303_v30, %v6304_v62 }
 0x207   :  { %3807 = vmatmul.mubr.msk.bf16.gmra.mrb[4].mxu1 %vm268_vm0, %v6258_v48 }
 0x208   :  { %3810 = vmatprep.mubr.msk.bf16.mxu1 %vm268_vm0, %v6261_v33 }
 0x20f   :  { %3811 = vmatmul.mubr.msk.bf16.gmra.mrb[8].mxu1 %vm268_vm0, %v6263_v57  ;;  %v4044_v57 = vld [vmem:[%s5931_s4 + $0x8] sm:$0xff]  }
 0x210   :  { %3814 = vmatprep.mubr.msk.bf16.mxu1 %vm268_vm0, %v6266_v36 }
 0x217   :  { %3815 = vmatmul.mubr.msk.bf16.gmra.mrb[12].mxu1 %vm268_vm0, %v6269_v23 }
 0x218   :  { %3822 = vmatprep.mubr.msk.bf16.mxu1 %vm268_vm0, %v6272_v46 }
 0x21f   :  { %3823 = vmatmul.mubr.msk.bf16.vlgmr.msra.gmra.mrb[0].mxu1 %vm268_vm0, %v6275_v32 }
 0x220   :  { %3839 = vmatpush3.bf16.msra.mxu1 %v4041_v8  ;;  %3826 = vmatprep.mubr.msk.bf16.mxu1 %vm268_vm0, %v6278_v21 }
 0x221   :  { %3840 = vmatprep.subr.bf16.mxu1 %v4042_v6 }
 0x224   :  { %3841 = vmatpush3.bf16.msra.mxu1 %v4042_v6 }
 0x227   :  { %3827 = vmatmul.mubr.msk.bf16.gmra.mrb[4].mxu1 %vm268_vm0, %v6281_v37 }
 0x228   :  { %3830 = vmatprep.mubr.msk.bf16.mxu1 %vm268_vm0, %v6284_v26 }
 0x22f   :  { %3831 = vmatmul.mubr.msk.bf16.gmra.mrb[8].mxu1 %vm268_vm0, %v6287_v22 }
 0x230   :  { %3834 = vmatprep.mubr.msk.bf16.mxu1 %vm268_vm0, %v6290_v31 }
 0x237   :  { %3835 = vmatmul.mubr.msk.bf16.gmra.mrb[12].mxu1 %vm268_vm0, %v6293_v56 }
 0x238   :  { %3842 = vmatprep.mubr.msk.bf16.mxu1 %vm268_vm0, %v6296_v20 }
 0x23f   :  { %3843 = vmatmul.mubr.msk.bf16.vlgmr.msra.gmra.mrb[0].mxu1 %vm268_vm0, %v6299_v54 }
 0x240   :  { %3846 = vmatprep.mubr.msk.bf16.mxu1 %vm268_vm0, %v6302_v13 }
 0x247   :  { %3847 = vmatmul.mubr.msk.bf16.gmra.mrb[4].mxu1 %vm268_vm0, %v6305_v0 }
 0x248   :  { %3850 = vmatprep.mubr.msk.bf16.mxu1 %vm268_vm0, %v6308_v25 }
 0x24f   :  { %3851 = vmatmul.mubr.msk.bf16.gmra.mrb[8].mxu1 %vm268_vm0, %v2780_v41 }
 0x250   :  { %3854 = vmatprep.mubr.msk.bf16.mxu1 %vm268_vm0, %v2781_v42 }
 0x257   :  { %3855 = vmatmul.mubr.msk.bf16.gmra.mrb[12].mxu1 %vm268_vm0, %v2782_v39  ;;  %v4043_v39 = vld [vmem:[%s5931_s4] sm:$0xff]  }
 0x258   :  { %3858 = vmatprep.subr.bf16.mxu0 %v4043_v39 }
 0x259   :  { %3859 = vmatpush3.bf16.msra.mxu0 %v4043_v39 }
 0x25a   :  { %3860 = vmatprep.subr.bf16.mxu0 %v4044_v57 }
 0x25d   :  { %3861 = vmatpush3.bf16.msra.mxu0 %v4044_v57 }
 0x2ae   :  { %v3724_v58 = vpop.f32.mrb[16].mxu0 }
 0x2af   :  { %v1208_v40 = vpop.f32.mrb[17].mxu0 }
 0x2b0   :  { %v3725_v8 = vpop.f32.mrb[18].mxu0 }
 0x2b1   :  { %v1211_v10 = vpop.f32.mrb[19].mxu0 }
 0x2b6   :  { %v3728_v17 = vpop.f32.mrb[20].mxu0 }
 0x2b7   :  { %v1224_v48 = vpop.f32.mrb[21].mxu0 }
 0x2b8   :  { %v3729_v53 = vpop.f32.mrb[22].mxu0 }
 0x2b9   :  { %v1227_v4 = vpop.f32.mrb[23].mxu0 }
 0x2be   :  { %v3732_v33 = vpop.f32.mrb[24].mxu0 }
 0x2bf   :  { %v5667_v63 = vpop.f32.mrb[25].mxu0 }
 0x2c0   :  { %v5669_v1 = vpop.f32.mrb[26].mxu0 }
 0x2c1   :  { %v5671_v9 = vpop.f32.mrb[27].mxu0 }
 0x2c6   :  { %v5673_v41 = vpop.f32.mrb[28].mxu0 }
 0x2c7   :  { %v5675_v47 = vpop.f32.mrb[29].mxu0 }
 0x2c8   :  { %v5677_v35 = vpop.f32.mrb[30].mxu0 }
 0x2c9   :  { %v5679_v42 = vpop.f32.mrb[31].mxu0 }
 0x312   :  { %v3844_v11 = vpop.f32.mrb[0].mxu1 }
 0x313   :  { %v5687_v7 = vadd.f32 %v3844_v11, %v3724_v58  ;;  %v2858_v36 = vpop.f32.mrb[1].mxu1 }
 0x314   :  { %v5689_v60 = vadd.f32 %v2858_v36, %v1208_v40  ;;  %v3845_v19 = vpop.f32.mrb[2].mxu1 }
 0x315   :  { %v5691_v23 = vadd.f32 %v3845_v19, %v3725_v8  ;;  %v2861_v59 = vpop.f32.mrb[3].mxu1  ;;  %v2979_v6 = vmul.f32 %v5687_v7, %v5687_v7  ;;  %v2942_v21 = vsel %vm268_vm0, %v5687_v7, 0.0 }
 0x316   :  { %v2977_v3 = vmul.f32 %v5689_v60, %v5689_v60  ;;  %v5695_v46 = vadd.f32 %v2861_v59, %v1211_v10  ;;  %v2939_v16 = vsel %vm268_vm0, %v5689_v60, 0.0 }
 0x317   :  { %v2980_v55 = vmul.f32 %v5691_v23, %v5691_v23  ;;  %v2996_v49 = vsel %vm268_vm0, %v2979_v6, 0.0  ;;  %v2944_v22 = vsel %vm268_vm0, %v5691_v23, 0.0 }
 0x318   :  { %v2940_v29 = vsel %vm268_vm0, %v5695_v46, 0.0  ;;  %v2978_v32 = vmul.f32 %v5695_v46, %v5695_v46  ;;  %v2993_v52 = vsel %vm268_vm0, %v2977_v3, 0.0 }
 0x319   :  { %v2941_v28 = vadd.f32 %v2940_v29, %v2939_v16  ;;  %v2998_v31 = vsel %vm268_vm0, %v2980_v55, 0.0 }
 0x31a   :  { %v2994_v50 = vsel %vm268_vm0, %v2978_v32, 0.0  ;;  %v3848_v37 = vpop.f32.mrb[4].mxu1 }
 0x31b   :  { %v2943_v45 = vadd.f32 %v2942_v21, %v2941_v28  ;;  %v2995_v34 = vadd.f32 %v2994_v50, %v2993_v52  ;;  %v5711_v26 = vadd.f32 %v3848_v37, %v3728_v17  ;;  %v2874_v27 = vpop.f32.mrb[5].mxu1 }
 0x31c   :  { %v5716_v61 = vadd.f32 %v2874_v27, %v1224_v48  ;;  %v3849_v38 = vpop.f32.mrb[6].mxu1 }
 0x31d   :  { %v2997_v51 = vadd.f32 %v2996_v49, %v2995_v34  ;;  %v2945_v24 = vadd.f32 %v2944_v22, %v2943_v45  ;;  %v2877_v56 = vpop.f32.mrb[7].mxu1  ;;  %v5723_v20 = vadd.f32 %v3849_v38, %v3729_v53  ;;  %v2983_v13 = vmul.f32 %v5711_v26, %v5711_v26 }
 0x31e   :  { %v2946_v2 = vsel %vm268_vm0, %v5716_v61, 0.0  ;;  %v2981_v5 = vmul.f32 %v5716_v61, %v5716_v61  ;;  %v5725_v44 = vadd.f32 %v2877_v56, %v1227_v4  ;;  %v2950_v12 = vsel %vm268_vm0, %v5711_v26, 0.0 }
 0x31f   :  { %v2947_v14 = vadd.f32 %v2946_v2, %v2945_v24  ;;  %v2999_v54 = vadd.f32 %v2998_v31, %v2997_v51  ;;  %v2984_v25 = vmul.f32 %v5723_v20, %v5723_v20  ;;  %v2952_v17 = vsel %vm268_vm0, %v5723_v20, 0.0 }
 0x320   :  { %v3000_v18 = vsel %vm268_vm0, %v2981_v5, 0.0  ;;  %v2948_v15 = vsel %vm268_vm0, %v5725_v44, 0.0  ;;  %v2982_v0 = vmul.f32 %v5725_v44, %v5725_v44  ;;  %v3004_v39 = vsel %vm268_vm0, %v2983_v13, 0.0 }
 0x321   :  { %v3001_v30 = vadd.f32 %v3000_v18, %v2999_v54  ;;  %v2949_v62 = vadd.f32 %v2948_v15, %v2947_v14 }
 0x322   :  { %v3852_v43 = vpop.f32.mrb[8].mxu1  ;;  %v3002_v40 = vsel %vm268_vm0, %v2982_v0, 0.0 }
 0x323   :  { %v2951_v58 = vadd.f32 %v2950_v12, %v2949_v62  ;;  %v5739_v8 = vadd.f32 %v3852_v43, %v3732_v33  ;;  %v2890_v10 = vpop.f32.mrb[9].mxu1  ;;  %v3003_v48 = vadd.f32 %v3002_v40, %v3001_v30 }
 0x324   :  { %v5744_v53 = vadd.f32 %v2890_v10, %v5667_v63  ;;  %v3853_v4 = vpop.f32.mrb[10].mxu1  ;;  %v3006_v63 = vsel %vm268_vm0, %v2984_v25, 0.0 }
 0x325   :  { %v2953_v57 = vadd.f32 %v2952_v17, %v2951_v58  ;;  %v5748_v11 = vadd.f32 %v3853_v4, %v5669_v1  ;;  %v2893_v36 = vpop.f32.mrb[11].mxu1  ;;  %v3005_v19 = vadd.f32 %v3004_v39, %v3003_v48  ;;  %v2987_v55 = vmul.f32 %v5739_v8, %v5739_v8 }
 0x326   :  { %v2954_v33 = vsel %vm268_vm0, %v5744_v53, 0.0  ;;  %v2985_v59 = vmul.f32 %v5744_v53, %v5744_v53  ;;  %v5755_v3 = vadd.f32 %v2893_v36, %v5671_v9  ;;  %v2958_v9 = vsel %vm268_vm0, %v5739_v8, 0.0 }
 0x327   :  { %v2955_v6 = vadd.f32 %v2954_v33, %v2953_v57  ;;  %v3007_v16 = vadd.f32 %v3006_v63, %v3005_v19  ;;  %v2988_v37 = vmul.f32 %v5748_v11, %v5748_v11  ;;  %v2960_v49 = vsel %vm268_vm0, %v5748_v11, 0.0 }
 0x328   :  { %v3008_v29 = vsel %vm268_vm0, %v2985_v59, 0.0  ;;  %v2956_v1 = vsel %vm268_vm0, %v5755_v3, 0.0  ;;  %v2986_v32 = vmul.f32 %v5755_v3, %v5755_v3  ;;  %v3012_v51 = vsel %vm268_vm0, %v2987_v55, 0.0 }
 0x329   :  { %v2957_v28 = vadd.f32 %v2956_v1, %v2955_v6  ;;  %v3009_v21 = vadd.f32 %v3008_v29, %v3007_v16 }
 0x32a   :  { %v3010_v52 = vsel %vm268_vm0, %v2986_v32, 0.0  ;;  %v3856_v50 = vpop.f32.mrb[12].mxu1 }
 0x32b   :  { %v2959_v45 = vadd.f32 %v2958_v9, %v2957_v28  ;;  %v5771_v34 = vadd.f32 %v3856_v50, %v5673_v41  ;;  %v2906_v27 = vpop.f32.mrb[13].mxu1  ;;  %v3011_v22 = vadd.f32 %v3010_v52, %v3009_v21 }
 0x32c   :  { %v5776_v38 = vadd.f32 %v2906_v27, %v5675_v47  ;;  %v3857_v31 = vpop.f32.mrb[14].mxu1  ;;  %v3014_v47 = vsel %vm268_vm0, %v2988_v37, 0.0 }
 0x32d   :  { %v2961_v24 = vadd.f32 %v2960_v49, %v2959_v45  ;;  %v5780_v56 = vadd.f32 %v3857_v31, %v5677_v35  ;;  %v2909_v2 = vpop.f32.mrb[15].mxu1  ;;  %v3013_v5 = vadd.f32 %v3012_v51, %v3011_v22  ;;  %v2991_v62 = vmul.f32 %v5771_v34, %v5771_v34  ;;  %v2937_v45 = vld [vmem:[%s5934_s7] sm:$0x1]  ;;  %v6309_v51 = vld [vmem:[#allocation76_spill] sm:$0xff] }
 0x32e   :  { %v2962_v41 = vsel %vm268_vm0, %v5776_v38, 0.0  ;;  %v2989_v14 = vmul.f32 %v5776_v38, %v5776_v38  ;;  %v3893_v54 = vadd.f32 %v2909_v2, %v5679_v42  ;;  %v2966_v12 = vsel %vm268_vm0, %v5771_v34, 0.0  ;;  %v2938_v22 = vld [vmem:[%s5935_s8] sm:$0x1] }
 0x32f   :  { %v2963_v18 = vadd.f32 %v2962_v41, %v2961_v24  ;;  %v3015_v15 = vadd.f32 %v3014_v47, %v3013_v5  ;;  %v2992_v42 = vmul.f32 %v5780_v56, %v5780_v56  ;;  %v2968_v40 = vsel %vm268_vm0, %v5780_v56, 0.0 }
 0x330   :  { %v3016_v13 = vsel %vm268_vm0, %v2989_v14, 0.0  ;;  %v2964_v30 = vsel %vm268_vm0, %v3893_v54, 0.0  ;;  %v2990_v35 = vmul.f32 %v3893_v54, %v3893_v54  ;;  %v3020_v17 = vsel %vm268_vm0, %v2991_v62, 0.0 }
 0x331   :  { %v2965_v0 = vadd.f32 %v2964_v30, %v2963_v18  ;;  %v3017_v43 = vadd.f32 %v3016_v13, %v3015_v15  ;;  %v3022_v39 = vsel %vm268_vm0, %v2992_v42, 0.0 }
 0x332   :  { %v3018_v25 = vsel %vm268_vm0, %v2990_v35, 0.0 }
 0x333   :  { %v2967_v58 = vadd.f32 %v2966_v12, %v2965_v0  ;;  %v3019_v10 = vadd.f32 %v3018_v25, %v3017_v43 }
 0x335   :  { %v2969_v48 = vadd.f32 %v2968_v40, %v2967_v58  ;;  %v3021_v4 = vadd.f32 %v3020_v17, %v3019_v10 }
 0x337   :  { %v2970_v57 = vrot.slane %v2969_v48, 4  ;;  %v3023_v36 = vadd.f32 %v3022_v39, %v3021_v4 }
 0x339   :  { %v2971_v19 = vadd.f32 %v2970_v57, %v2969_v48  ;;  %v3024_v33 = vrot.slane %v3023_v36, 4 }
 0x33b   :  { %v2972_v59 = vrot.slane %v2971_v19, 2  ;;  %v3025_v63 = vadd.f32 %v3024_v33, %v3023_v36 }
 0x33d   :  { %v2973_v6 = vadd.f32 %v2972_v59, %v2971_v19  ;;  %v3026_v16 = vrot.slane %v3025_v63, 2 }
 0x33f   :  { %v2974_v29 = vrot.slane %v2973_v6, 1  ;;  %v3027_v1 = vadd.f32 %v3026_v16, %v3025_v63 }
 0x341   :  { %v2975_v32 = vadd.f32 %v2974_v29, %v2973_v6  ;;  %v3028_v55 = vrot.slane %v3027_v1, 1 }
 0x343   :  { %v2976_v28 = vmul.f32 0.0078125, %v2975_v32  ;;  %v3029_v9 = vadd.f32 %v3028_v55, %v3027_v1 }
 0x345   :  { %v3031_v21 = vmul.f32 %v2976_v28, %v2976_v28  ;;  %v3030_v52 = vmul.f32 0.0078125, %v3029_v9 }
 0x347   :  { %v3032_v50 = vsub.f32 %v3030_v52, %v3031_v21 }
 0x349   :  { %v3033_v37 = vadd.f32 1e-05, %v3032_v50 }
 0x34b   :  { %4047 = vrsqrt.f32 %v3033_v37 }
 0x355   :  { %v4048_v27 = vpop.eup %4047 }
 0x356   :  { %v3035_v49 = vmul.f32 %v4048_v27, %v2937_v45 }
 0x358   :  { %v3036_v31 = vmul.f32 %v3035_v49, %v2976_v28  ;;  %v3042_v24 = vrot.slane %v3035_v49, %v6309_v51 }
 0x35a   :  { %v3037_v2 = vsub.f32 %v2938_v22, %v3036_v31  ;;  %v3057_v5 = vmul.f32 %v3893_v54, %v3042_v24  ;;  %v3044_v41 = vmul.f32 %v5689_v60, %v3042_v24  ;;  %v3045_v14 = vmul.f32 %v5695_v46, %v3042_v24 }
 0x35b   :  { %v3046_v47 = vmul.f32 %v5687_v7, %v3042_v24  ;;  %v3047_v18 = vmul.f32 %v5691_v23, %v3042_v24  ;;  %v3048_v15 = vmul.f32 %v5716_v61, %v3042_v24  ;;  %v3049_v13 = vmul.f32 %v5725_v44, %v3042_v24 }
 0x35c   :  { %v3064_v30 = vrot.slane %v3037_v2, %v6309_v51  ;;  %v3050_v35 = vmul.f32 %v5711_v26, %v3042_v24  ;;  %v3051_v62 = vmul.f32 %v5723_v20, %v3042_v24  ;;  %v3052_v54 = vmul.f32 %v5744_v53, %v3042_v24 }
 0x35d   :  { %v3053_v60 = vmul.f32 %v5755_v3, %v3042_v24  ;;  %v3054_v46 = vmul.f32 %v5739_v8, %v3042_v24  ;;  %v3055_v7 = vmul.f32 %v5748_v11, %v3042_v24  ;;  %v3056_v23 = vmul.f32 %v5776_v38, %v3042_v24 }
 0x35e   :  { %v3079_v0 = vadd.f32 %v3064_v30, %v3057_v5  ;;  %v3066_v61 = vadd.f32 %v3064_v30, %v3044_v41  ;;  %v3067_v12 = vadd.f32 %v3064_v30, %v3045_v14  ;;  %v3068_v44 = vadd.f32 %v3064_v30, %v3046_v47 }
 0x35f   :  { %v3069_v43 = vadd.f32 %v3064_v30, %v3047_v18  ;;  %v3070_v25 = vadd.f32 %v3064_v30, %v3048_v15  ;;  %v3071_v42 = vadd.f32 %v3064_v30, %v3049_v13  ;;  %v3072_v26 = vadd.f32 %v3064_v30, %v3050_v35 }
 0x360   :  { %v3095_v58 = vmax.f32 %v3079_v0, 0.0  ;;  %v3082_v20 = vmax.f32 %v3066_v61, 0.0  ;;  %v3083_v40 = vmax.f32 %v3067_v12, 0.0  ;;  %v3084_v53 = vmax.f32 %v3068_v44, 0.0 }
 0x361   :  { %v3085_v10 = vmax.f32 %v3069_v43, 0.0  ;;  %v3086_v3 = vmax.f32 %v3070_v25, 0.0  ;;  %v3087_v17 = vmax.f32 %v3071_v42, 0.0  ;;  %v3073_v8 = vadd.f32 %v3064_v30, %v3051_v62 }
 0x362   :  { %v3098_v48 = vpack.c.bf16 %v3083_v40, %v3082_v20  ;;  %v3088_v11 = vmax.f32 %v3072_v26, 0.0  ;;  %v3074_v4 = vadd.f32 %v3064_v30, %v3052_v54  ;;  %v3075_v38 = vadd.f32 %v3064_v30, %v3053_v60 }
 0x363   :  { %v3099_v39 = vpack.c.bf16 %v3085_v10, %v3084_v53  ;;  %v3100_v57 = vpack.c.bf16 %v3087_v17, %v3086_v3  ;;  %v3089_v36 = vmax.f32 %v3073_v8, 0.0  ;;  %v3076_v19 = vadd.f32 %v3064_v30, %v3054_v46 }
 0x364   :  { %3862 = vmatprep.mubr.msk.bf16.mxu0 %vm268_vm0, %v3098_v48  ;;  %v3090_v33 = vmax.f32 %v3074_v4, 0.0  ;;  %v3091_v59 = vmax.f32 %v3075_v38, 0.0  ;;  %v3077_v63 = vadd.f32 %v3064_v30, %v3055_v7  ;;  %v3078_v6 = vadd.f32 %v3064_v30, %v3056_v23 }
 0x365   :  { %3863 = vmatmul.mubr.msk.bf16.vlgmr.msra.gmra.mrb[32].mxu0 %vm268_vm0, %v3099_v39  ;;  %v3101_v16 = vpack.c.bf16 %v3089_v36, %v3088_v11  ;;  %v3092_v29 = vmax.f32 %v3076_v19, 0.0  ;;  %v3058_v1 = vmul.f32 %v5771_v34, %v3042_v24  ;;  %v3059_v32 = vmul.f32 %v5780_v56, %v3042_v24 }
 0x366   :  { %3866 = vmatprep.mubr.msk.bf16.mxu0 %vm268_vm0, %v3100_v57  ;;  %v3102_v55 = vpack.c.bf16 %v3091_v59, %v3090_v33  ;;  %v3093_v28 = vmax.f32 %v3077_v63, 0.0  ;;  %v3094_v9 = vmax.f32 %v3078_v6, 0.0 }
 0x367   :  { %v3080_v21 = vadd.f32 %v3064_v30, %v3058_v1  ;;  %v3081_v52 = vadd.f32 %v3064_v30, %v3059_v32 }
 0x368   :  { %v3103_v50 = vpack.c.bf16 %v3093_v28, %v3092_v29  ;;  %v3104_v37 = vpack.c.bf16 %v3095_v58, %v3094_v9 }
 0x369   :  { %v3096_v45 = vmax.f32 %v3080_v21, 0.0  ;;  %v3097_v27 = vmax.f32 %v3081_v52, 0.0 }
 0x36b   :  { %v3105_v49 = vpack.c.bf16 %v3097_v27, %v3096_v45 }
 0x36d   :  { %3867 = vmatmul.mubr.msk.bf16.gmra.mrb[36].mxu0 %vm268_vm0, %v3101_v16 }
 0x36e   :  { %3870 = vmatprep.mubr.msk.bf16.mxu0 %vm268_vm0, %v3102_v55 }
 0x375   :  { %3871 = vmatmul.mubr.msk.bf16.gmra.mrb[40].mxu0 %vm268_vm0, %v3103_v50 }
 0x376   :  { %3874 = vmatprep.mubr.msk.bf16.mxu0 %vm268_vm0, %v3104_v37 }
 0x37d   :  { %3875 = vmatmul.mubr.msk.bf16.gmra.mrb[44].mxu0 %vm268_vm0, %v3105_v49 }
 0x438   :  { %v5832_v34 = vpop.f32.mrb[32].mxu0 }
 0x439   :  { %v5834_v56 = vpop.f32.mrb[33].mxu0  ;;  %v3269_v41 = vmul.f32 %v5832_v34, %v5832_v34 }
 0x43a   :  { %v5836_v22 = vpop.f32.mrb[34].mxu0  ;;  %v3267_v24 = vmul.f32 %v5834_v56, %v5834_v56 }
 0x43b   :  { %v5838_v31 = vpop.f32.mrb[35].mxu0  ;;  %v3270_v18 = vmul.f32 %v5836_v22, %v5836_v22 }
 0x43c   :  { %v3245_v2 = vadd.f32 %v5838_v31, %v5834_v56  ;;  %v3268_v5 = vmul.f32 %v5838_v31, %v5838_v31 }
 0x43e   :  { %v3246_v14 = vadd.f32 %v5832_v34, %v3245_v2  ;;  %v3283_v47 = vadd.f32 %v3268_v5, %v3267_v24 }
 0x440   :  { %v3284_v15 = vadd.f32 %v3283_v47, %v3269_v41  ;;  %v5851_v13 = vpop.f32.mrb[36].mxu0  ;;  %v3247_v30 = vadd.f32 %v5836_v22, %v3246_v14 }
 0x441   :  { %v5854_v35 = vpop.f32.mrb[37].mxu0  ;;  %v3273_v12 = vmul.f32 %v5851_v13, %v5851_v13 }
 0x442   :  { %v3248_v62 = vadd.f32 %v3247_v30, %v5854_v35  ;;  %v3271_v54 = vmul.f32 %v5854_v35, %v5854_v35  ;;  %v3285_v60 = vadd.f32 %v3284_v15, %v3270_v18  ;;  %v5859_v46 = vpop.f32.mrb[38].mxu0 }
 0x443   :  { %v5861_v7 = vpop.f32.mrb[39].mxu0  ;;  %v3274_v25 = vmul.f32 %v5859_v46, %v5859_v46 }
 0x444   :  { %v3286_v23 = vadd.f32 %v3285_v60, %v3271_v54  ;;  %v3249_v0 = vadd.f32 %v3248_v62, %v5861_v7  ;;  %v3272_v61 = vmul.f32 %v5861_v7, %v5861_v7 }
 0x446   :  { %v3250_v44 = vadd.f32 %v5851_v13, %v3249_v0  ;;  %v3287_v43 = vadd.f32 %v3286_v23, %v3272_v61 }
 0x448   :  { %v3288_v42 = vadd.f32 %v3287_v43, %v3273_v12  ;;  %v5871_v26 = vpop.f32.mrb[40].mxu0  ;;  %v3251_v58 = vadd.f32 %v5859_v46, %v3250_v44  ;;  %v3243_v44 = vld [vmem:[%s5936_s9] sm:$0x1]  ;;  %s4169_s9 = smov [#allocation8]  }
 0x449   :  { %v5874_v20 = vpop.f32.mrb[41].mxu0  ;;  %v3277_v4 = vmul.f32 %v5871_v26, %v5871_v26 }
 0x44a   :  { %v3252_v40 = vadd.f32 %v3251_v58, %v5874_v20  ;;  %v3275_v53 = vmul.f32 %v5874_v20, %v5874_v20  ;;  %v3289_v10 = vadd.f32 %v3288_v42, %v3274_v25  ;;  %v5879_v3 = vpop.f32.mrb[42].mxu0  ;;  %v3244_v42 = vld [vmem:[%s5937_s10] sm:$0x1]  ;;  %s3409_s10 = sshll.u32 %s4169_s9, 4  ;;  %s3410_s10 = int_to_ptr.vmem [resolvable:$true] %s3409_s10 }
 0x44b   :  { %v5881_v17 = vpop.f32.mrb[43].mxu0  ;;  %v3278_v57 = vmul.f32 %v5879_v3, %v5879_v3  ;;  %s4133_s24 = scalar_lea.vmem %s3410_s10, 2048  ;;  %p4138_p11 = scmp.lt.s32.totalorder %s3410_s10, %s3410_s10 }
 0x44c   :  { %v3290_v8 = vadd.f32 %v3289_v10, %v3275_v53  ;;  %v3253_v48 = vadd.f32 %v3252_v40, %v5881_v17  ;;  %v3276_v11 = vmul.f32 %v5881_v17, %v5881_v17  ;;  %p4134_p10 = scmp.ne.s32.totalorder %s3410_s10, %s4133_s24  ;;  %p4139_p12 = scmp.lt.s32.totalorder %s4133_s24, %s4133_s24 }
 0x44e   :  { %v3254_v38 = vadd.f32 %v5871_v26, %v3253_v48  ;;  %v3291_v39 = vadd.f32 %v3290_v8, %v3276_v11  ;;  %p4140_p13 = por %p4139_p12, %p4138_p11 }
 0x450   :  { %v3292_v36 = vadd.f32 %v3291_v39, %v3277_v4  ;;  %v3876_v19 = vpop.f32.mrb[44].mxu0  ;;  %v3255_v33 = vadd.f32 %v5879_v3, %v3254_v38  ;;  %p4141_p0 = pnand %p4140_p13, %p4134_p10 }
 0x451   :  { %v3228_v59 = vpop.f32.mrb[45].mxu0  ;;  %v3281_v9 = vmul.f32 %v3876_v19, %v3876_v19 }
 0x452   :  { %v3256_v63 = vadd.f32 %v3255_v33, %v3228_v59  ;;  %v3279_v6 = vmul.f32 %v3228_v59, %v3228_v59  ;;  %v3293_v16 = vadd.f32 %v3292_v36, %v3278_v57  ;;  %v3877_v29 = vpop.f32.mrb[46].mxu0 }
 0x453   :  { %v3231_v1 = vpop.f32.mrb[47].mxu0  ;;  %v3282_v50 = vmul.f32 %v3877_v29, %v3877_v29 }
 0x454   :  { %v3294_v32 = vadd.f32 %v3293_v16, %v3279_v6  ;;  %v3257_v55 = vadd.f32 %v3256_v63, %v3231_v1  ;;  %v3280_v28 = vmul.f32 %v3231_v1, %v3231_v1 }
 0x456   :  { %v3258_v21 = vadd.f32 %v3876_v19, %v3257_v55  ;;  %v3295_v52 = vadd.f32 %v3294_v32, %v3280_v28 }
 0x458   :  { %v3259_v37 = vadd.f32 %v3877_v29, %v3258_v21  ;;  %v3296_v45 = vadd.f32 %v3295_v52, %v3281_v9 }
 0x45a   :  { %v3260_v27 = vrot.slane %v3259_v37, 4  ;;  %v3297_v49 = vadd.f32 %v3296_v45, %v3282_v50 }
 0x45c   :  { %v3261_v24 = vadd.f32 %v3260_v27, %v3259_v37  ;;  %v3298_v2 = vrot.slane %v3297_v49, 4 }
 0x45e   :  { %v3262_v5 = vrot.slane %v3261_v24, 2  ;;  %v3299_v41 = vadd.f32 %v3298_v2, %v3297_v49 }
 0x460   :  { %v3263_v14 = vadd.f32 %v3262_v5, %v3261_v24  ;;  %v3300_v47 = vrot.slane %v3299_v41, 2 }
 0x462   :  { %v3264_v18 = vrot.slane %v3263_v14, 1  ;;  %v3301_v15 = vadd.f32 %v3300_v47, %v3299_v41 }
 0x464   :  { %v3265_v30 = vadd.f32 %v3264_v18, %v3263_v14  ;;  %v3302_v62 = vrot.slane %v3301_v15, 1 }
 0x466   :  { %v3266_v54 = vmul.f32 0.0078125, %v3265_v30  ;;  %v3303_v60 = vadd.f32 %v3302_v62, %v3301_v15 }
 0x468   :  { %v3304_v23 = vmul.f32 0.0078125, %v3303_v60  ;;  %v3305_v0 = vmul.f32 %v3266_v54, %v3266_v54 }
 0x46a   :  { %v3306_v61 = vsub.f32 %v3304_v23, %v3305_v0  ;;  %v4053_v23 = vld [vmem:[#allocation2 + $0x8] sm:$0xff] }
 0x46c   :  { %v3307_v12 = vadd.f32 1e-05, %v3306_v61  ;;  %v4054_v61 = vld [vmem:[#allocation2 + $0x10] sm:$0xff] }
 0x46e   :  { %4049 = vrsqrt.f32 %v3307_v12 }
 0x478   :  { %v4050_v43 = vpop.eup %4049 }
 0x479   :  { %v3309_v25 = vmul.f32 %v4050_v43, %v3243_v44  ;;  %v4055_v44 = vld [vmem:[#allocation2 + $0x18] sm:$0xff] }
 0x47b   :  { %v3310_v58 = vmul.f32 %v3309_v25, %v3266_v54  ;;  %v3316_v40 = vrot.slane %v3309_v25, %v6309_v51  ;;  %v4052_v54 = vld [vmem:[#allocation2] sm:$0xff] }
 0x47c   :  { %v4056_v25 = vld [vmem:[#allocation2 + $0x20] sm:$0xff] }
 0x47d   :  { %v3311_v53 = vsub.f32 %v3244_v42, %v3310_v58  ;;  %v3331_v10 = vmul.f32 %v3316_v40, %v3231_v1  ;;  %v3318_v8 = vmul.f32 %v3316_v40, %v5834_v56  ;;  %v3319_v48 = vmul.f32 %v3316_v40, %v5838_v31  ;;  %v4057_v58 = vld [vmem:[#allocation2 + $0x28] sm:$0xff] }
 0x47e   :  { %v3320_v11 = vmul.f32 %v5832_v34, %v3316_v40  ;;  %v3321_v4 = vmul.f32 %v5836_v22, %v3316_v40  ;;  %v3322_v38 = vmul.f32 %v3316_v40, %v5854_v35  ;;  %v3323_v39 = vmul.f32 %v3316_v40, %v5861_v7 }
 0x47f   :  { %v3338_v57 = vrot.slane %v3311_v53, %v6309_v51  ;;  %v3324_v36 = vmul.f32 %v5851_v13, %v3316_v40  ;;  %v3325_v33 = vmul.f32 %v5859_v46, %v3316_v40  ;;  %v3326_v63 = vmul.f32 %v3316_v40, %v5874_v20  ;;  %v4058_v53 = vld [vmem:[#allocation2 + $0x30] sm:$0xff] }
 0x480   :  { %v3327_v56 = vmul.f32 %v3316_v40, %v5881_v17  ;;  %v3328_v31 = vmul.f32 %v5871_v26, %v3316_v40  ;;  %v3329_v34 = vmul.f32 %v5879_v3, %v3316_v40  ;;  %v3330_v6 = vmul.f32 %v3316_v40, %v3228_v59  ;;  %v4051_v26 = vld [vmem:[#allocation2 + $0x68] sm:$0xff] }
 0x481   :  { %v3353_v22 = vadd.f32 %v3338_v57, %v3331_v10  ;;  %v3332_v16 = vmul.f32 %v3876_v19, %v3316_v40  ;;  %v3333_v35 = vmul.f32 %v3877_v29, %v3316_v40  ;;  %v3340_v1 = vadd.f32 %v3338_v57, %v3318_v8  ;;  %v4059_v8 = vld [vmem:[#allocation2 + $0x38] sm:$0xff] }
 0x482   :  { %v3341_v7 = vadd.f32 %v3338_v57, %v3319_v48  ;;  %v3342_v32 = vadd.f32 %v3338_v57, %v3320_v11  ;;  %v3343_v51 = vadd.f32 %v3338_v57, %v3321_v4  ;;  %v3344_v55 = vadd.f32 %v3338_v57, %v3322_v38  ;;  %v4060_v11 = vld [vmem:[#allocation2 + $0x40] sm:$0xff]  ;;  %v4061_v38 = vld [vmem:[#allocation2 + $0x48] sm:$0xff] }
 0x483   :  { %v3369_v13 = vmax.f32 %v3353_v22, 0.0  ;;  %v3345_v28 = vadd.f32 %v3338_v57, %v3323_v39  ;;  %v3346_v46 = vadd.f32 %v3338_v57, %v3324_v36  ;;  %v3347_v9 = vadd.f32 %v3338_v57, %v3325_v33  ;;  %v4063_v33 = vld [vmem:[#allocation2 + $0x58] sm:$0xff] }
 0x484   :  { %v3348_v20 = vadd.f32 %v3338_v57, %v3326_v63  ;;  %v3349_v21 = vadd.f32 %v3338_v57, %v3327_v56  ;;  %v3350_v17 = vadd.f32 %v3338_v57, %v3328_v31  ;;  %v3351_v52 = vadd.f32 %v3338_v57, %v3329_v34  ;;  %v4064_v56 = vld [vmem:[#allocation2 + $0x60] sm:$0xff]  ;;  %v4065_v34 = vld [vmem:[#allocation2 + $0x70] sm:$0xff]  ;;  %v4066_v22 = vld [vmem:[#allocation2 + $0x78] sm:$0xff] }
 0x485   :  { %v3385_v50 = vadd.f32 %v4051_v26, %v3369_v13  ;;  %v3352_v3 = vadd.f32 %v3338_v57, %v3330_v6  ;;  %v3354_v59 = vadd.f32 %v3338_v57, %v3332_v16  ;;  %v3355_v37 = vadd.f32 %v3338_v57, %v3333_v35  ;;  %v4062_v57 = vld [vmem:[#allocation2 + $0x50] sm:$0xff] }
 0x486   :  { %v3356_v19 = vmax.f32 %v3340_v1, 0.0  ;;  %v3357_v29 = vmax.f32 %v3341_v7, 0.0  ;;  %v3358_v45 = vmax.f32 %v3342_v32, 0.0  ;;  %v3359_v27 = vmax.f32 %v3343_v51, 0.0 }
 0x487   :  { %3401 = vst [vmem:[#allocation8 + $0x68] sm:$0xff] %v3385_v50  ;;  %v3360_v49 = vmax.f32 %v3344_v55, 0.0  ;;  %v3361_v24 = vmax.f32 %v3345_v28, 0.0  ;;  %v3362_v2 = vmax.f32 %v3346_v46, 0.0  ;;  %v3363_v5 = vmax.f32 %v3347_v9, 0.0 }
 0x488   :  { %v3364_v41 = vmax.f32 %v3348_v20, 0.0  ;;  %v3365_v14 = vmax.f32 %v3349_v21, 0.0  ;;  %v3366_v47 = vmax.f32 %v3350_v17, 0.0  ;;  %v3367_v18 = vmax.f32 %v3351_v52, 0.0 }
 0x489   :  { %v3368_v15 = vmax.f32 %v3352_v3, 0.0  ;;  %v3370_v30 = vmax.f32 %v3354_v59, 0.0  ;;  %v3371_v62 = vmax.f32 %v3355_v37, 0.0  ;;  %v3372_v60 = vadd.f32 %v4052_v54, %v3356_v19 }
 0x48a   :  { %v3373_v0 = vadd.f32 %v4053_v23, %v3357_v29  ;;  %v3374_v12 = vadd.f32 %v4054_v61, %v3358_v45  ;;  %v3375_v43 = vadd.f32 %v4055_v44, %v3359_v27  ;;  %v3376_v42 = vadd.f32 %v4056_v25, %v3360_v49 }
 0x48b   :  { %v3377_v40 = vadd.f32 %v4057_v58, %v3361_v24  ;;  %v3378_v10 = vadd.f32 %v4058_v53, %v3362_v2  ;;  %v3379_v48 = vadd.f32 %v4059_v8, %v3363_v5  ;;  %v3380_v4 = vadd.f32 %v4060_v11, %v3364_v41  ;;  %3388 = vst [vmem:[#allocation8] sm:$0xff] %v3372_v60 }
 0x48c   :  { %v3381_v39 = vadd.f32 %v4061_v38, %v3365_v14  ;;  %v3382_v36 = vadd.f32 %v4062_v57, %v3366_v47  ;;  %v3383_v63 = vadd.f32 %v4063_v33, %v3367_v18  ;;  %v3384_v31 = vadd.f32 %v4064_v56, %v3368_v15  ;;  %3389 = vst [vmem:[#allocation8 + $0x8] sm:$0xff] %v3373_v0 }
 0x48d   :  { %3390 = vst [vmem:[#allocation8 + $0x10] sm:$0xff] %v3374_v12  ;;  %3391 = vst [vmem:[#allocation8 + $0x18] sm:$0xff] %v3375_v43  ;;  %v3386_v6 = vadd.f32 %v4065_v34, %v3370_v30  ;;  %v3387_v16 = vadd.f32 %v4066_v22, %v3371_v62 }
 0x48e   :  { %3392 = vst [vmem:[#allocation8 + $0x20] sm:$0xff] %v3376_v42  ;;  %3393 = vst [vmem:[#allocation8 + $0x28] sm:$0xff] %v3377_v40 }
 0x48f   :  { %3394 = vst [vmem:[#allocation8 + $0x30] sm:$0xff] %v3378_v10  ;;  %3395 = vst [vmem:[#allocation8 + $0x38] sm:$0xff] %v3379_v48 }
 0x490   :  { %3396 = vst [vmem:[#allocation8 + $0x40] sm:$0xff] %v3380_v4  ;;  %3397 = vst [vmem:[#allocation8 + $0x48] sm:$0xff] %v3381_v39 }
 0x491   :  { %3398 = vst [vmem:[#allocation8 + $0x50] sm:$0xff] %v3382_v36  ;;  %3399 = vst [vmem:[#allocation8 + $0x58] sm:$0xff] %v3383_v63 }
 0x492   :  { %3400 = vst [vmem:[#allocation8 + $0x60] sm:$0xff] %v3384_v31  ;;  %3402 = vst [vmem:[#allocation8 + $0x70] sm:$0xff] %v3386_v6 }
 0x493   :  { %3403 = vst [vmem:[#allocation8 + $0x78] sm:$0xff] %v3387_v16 }
 0x494   :  { %4144 = shalt.err (!%p4141_p0)
}
 0x495   :  { %s4145_s27 = scalar_lea.hbm %s5938_s11, 2048 }
 0x496   :  { %p4146_p1 = scmp.ne.s32.totalorder %s5938_s11, %s4145_s27  ;;  %p4149_p2 = scmp.lt.u32.totalorder %s4145_s27, %s5938_s11 }
 0x498   :  { %p4151_p3 = pnand %p4149_p2, %p4146_p1 }
 0x49a   :  { %4154 = shalt.err (!%p4151_p3)
}
 0x49b   :  { %3415 = dma.vmem_to_hbm [thread:$0]  %s3410_s10, 2048, %s5938_s11, [#allocation4], %s4163_s29, %s4163_s29, %s4164_s30  }
 0x49c   :  { %4159 = dma.done.wait [#allocation4], 2048  }
 0x49d   :  { %4160 = vsyncadd [#allocation4], 4294965248 }
 0x49e   :  { %3419 = vsyncpa [#allocation3], 1 }
 0x49f   :  { %3420 = vsyncpa [#allocation6], 1 }
 0x4a0   :  { %3421 = vsyncpa [#allocation4], 1 }

</bundles_post_ra>
